<compile_context>
chip_gen: v7x
topology: tpu7x:2x2x1
jax: 0.10.0
libtpu: 0.0.40
codegen_flags: <defaults>
</compile_context>

<pallas_src>
import math

import jax
import jax.numpy as jnp
from jax.experimental import pallas as pl
from jax.experimental.pallas import tpu as pltpu

H, W, A = 6, 7, 7        # board height / width / action size (fixed by the module)
C = 128                  # residual-tower width
N_RES = 19               # number of residual blocks
YS, XS = 8, 8            # padded board tile; activation row index r = b*64 + y*8 + x
GUARD = 16               # zero guard rows above/below the row stack (>= 9 needed for 3x3 taps)

# row offsets of the 9 taps of a 3x3 / stride-1 / pad-1 conv in the r = b*64 + y*8 + x layout
_TAP_OFF = tuple((ky - 1) * XS + (kx - 1) for ky in range(3) for kx in range(3))


# ----------------------------------------------------------------------------------------
# Fused Pallas kernel: ConvBlock (step 0) + ResBlock-i (every step) + OutBlock (last step)
# ----------------------------------------------------------------------------------------
def _conv3x3(src_ref, w_ref, tap_base, nrows):
    """3x3 'same' conv as 9 row-shifted (nrows,C)x(C,C) bf16 MXU matmuls, f32 accumulation.

    src_ref: (GUARD + nrows + GUARD, C) f32 VMEM scratch; its guard rows and pad rows
    (x == 7 or y >= 6) are zero, which implements the conv's zero padding for free.
    """
    acc = None
    for t, off in enumerate(_TAP_OFF):
        tap = src_ref[pl.ds(GUARD + off, nrows), :].astype(jnp.bfloat16)
        y = jnp.dot(tap, w_ref[tap_base + t], preferred_element_type=jnp.float32)
        acc = y if acc is None else acc + y
    return acc


def _c4zero_kernel(xcol_ref, w0_ref, sb0_ref, mask_ref, w_ref, sb_ref,
                   wcomb_ref, bcomb_ref, wfc1_ref, bfc1_ref, wfc2_ref, bfc2_ref,
                   wfcp_ref, bfcp_ref, gt_ref,
                   p_ref, v_ref,
                   s_scr, h_scr):
    i = pl.program_id(0)
    nrows = mask_ref.shape[0]                 # R = 64 * B
    ctr = pl.ds(GUARD, nrows)                 # "board" region of the guarded scratch
    mask = mask_ref[...]                      # (R, C): 1.0 at real board cells, 0.0 at pad rows

    # ---- ConvBlock (first grid step only): 1 -> 128 3x3 conv + folded BN + ReLU -------------
    @pl.when(i == 0)
    def _init():
        s_scr[...] = jnp.zeros(s_scr.shape, jnp.float32)
        h_scr[...] = jnp.zeros(h_scr.shape, jnp.float32)
        a0 = jnp.dot(xcol_ref[...], w0_ref[...], preferred_element_type=jnp.float32)
        s_scr[ctr, :] = jnp.maximum(a0 * sb0_ref[0:1, :] + sb0_ref[1:2, :], 0.0) * mask

    s = s_scr[ctr, :]                         # (R, C) resident activation, f32

    # ---- ResBlock i:  h = relu(bn1(conv1(s)));  s = relu(bn2(conv2(h)) + s) -----------------
    h = jnp.maximum(_conv3x3(s_scr, w_ref, 0, nrows) * sb_ref[0:1, :] + sb_ref[1:2, :],
                    0.0) * mask
    h_scr[ctr, :] = h
    o = jnp.maximum(_conv3x3(h_scr, w_ref, 9, nrows) * sb_ref[2:3, :] + sb_ref[3:4, :] + s,
                    0.0) * mask
    s_scr[ctr, :] = o

    # ---- OutBlock (last grid step only): fused 1x1 convs + value / policy heads -------------
    @pl.when(i == pl.num_programs(0) - 1)
    def _heads():
        # Both 1x1 convs (+ folded BN) in one matmul: cols 0..31 = policy feats, col 32 = value.
        hz = jnp.maximum(
            jnp.dot(o, wcomb_ref[...], preferred_element_type=jnp.float32) + bcomb_ref[...],
            0.0)                                                     # (R, 64)
        pmat = hz[:, 0:32]                                           # (R, 32)
        vcol = hz[:, 32:33]                                          # (R, 1)
        gt = gt_ref[...]                                             # (B, R) one-hot row selector

        # value head: Linear(42, 32) + ReLU, Linear(32, 1) + tanh
        tv = vcol * wfc1_ref[...]                                    # (R, 32), zero at pad rows
        vhid = jnp.maximum(
            jnp.dot(gt, tv, preferred_element_type=jnp.float32) + bfc1_ref[...], 0.0)  # (B, 32)
        v_ref[...] = jnp.tanh(
            jnp.sum(vhid * wfc2_ref[...], axis=1, keepdims=True) + bfc2_ref[...])      # (B, 1)

        # policy head: Linear(1344, 7) then logsoftmax(...).exp() == softmax (stable)
        n_act = wfcp_ref.shape[0]
        cols = [jnp.sum(pmat * wfcp_ref[a], axis=1, keepdims=True) for a in range(n_act)]
        inner = jnp.concatenate(cols, axis=1)                        # (R, A)
        logits = jnp.dot(gt, inner, preferred_element_type=jnp.float32) + bfcp_ref[...]  # (B, A)
        m = jnp.max(logits, axis=1, keepdims=True)
        e = jnp.exp(logits - m)
        p_ref[...] = e / jnp.sum(e, axis=1, keepdims=True)


# ----------------------------------------------------------------------------------------
# Forward-pass wrapper
# ----------------------------------------------------------------------------------------
def c4zero_forward(x_nchw, kp):
    """x (B, 1, 6, 7) NCHW -> (policy (B, 7), value (B, 1)).  kp = prepare_kernel_params(...)."""
    B = x_nchw.shape[0]
    R = B * YS * XS

    # Host glue (pure data movement): im2col of the tiny 1-channel input for the first conv,
    # laid out in the kernel's padded row format (pad rows and pad taps are zero).
    x = x_nchw.reshape(B, H, W).astype(jnp.float32)
    xp = jnp.pad(x, ((0, 0), (1, 1), (1, 1)))
    taps = [xp[:, dy:dy + H, dx:dx + W] for dy in range(3) for dx in range(3)]
    col = jnp.stack(taps, axis=-1)                                          # (B, 6, 7, 9)
    xcol = jnp.zeros((B, YS, XS, 16), jnp.float32).at[:, :H, :W, :9].set(col)
    xcol = xcol.reshape(R, 16)

    flops = 2 * R * C * C * 18 * N_RES + 2 * R * 16 * C + 2 * R * C * 64
    bytes_accessed = (N_RES * 18 * C * C * 2 + N_RES * 4 * C * 4 + R * 16 * 4 + R * C * 4 +
                      (A + 1) * R * 32 * 4 + C * 64 * 4 + B * R * 4 + B * (A + 1) * 4)

    grid_spec = pltpu.PrefetchScalarGridSpec(
        num_scalar_prefetch=0,
        grid=(N_RES,),
        in_specs=[
            pl.BlockSpec((R, 16), lambda i: (0, 0)),                  # xcol (ConvBlock im2col)
            pl.BlockSpec((16, C), lambda i: (0, 0)),                  # ConvBlock weight
            pl.BlockSpec((2, C), lambda i: (0, 0)),                   # [scale0; bias0]
            pl.BlockSpec((R, C), lambda i: (0, 0)),                   # valid-row mask
            pl.BlockSpec((None, 18, C, C), lambda i: (i, 0, 0, 0)),   # streamed block weights (bf16)
            pl.BlockSpec((None, 4, C), lambda i: (i, 0, 0)),          # streamed [s1;b1;s2;b2]
            pl.BlockSpec((C, 64), lambda i: (0, 0)),                  # fused 1x1 head conv weights
            pl.BlockSpec((1, 64), lambda i: (0, 0)),                  # fused 1x1 head conv bias
            pl.BlockSpec((R, 32), lambda i: (0, 0)),                  # fc1 weight (row layout)
            pl.BlockSpec((1, 32), lambda i: (0, 0)),                  # fc1 bias
            pl.BlockSpec((1, 32), lambda i: (0, 0)),                  # fc2 weight (row)
            pl.BlockSpec((1, 1), lambda i: (0, 0)),                   # fc2 bias
            pl.BlockSpec((A, R, 32), lambda i: (0, 0, 0)),            # policy fc weight (row layout)
            pl.BlockSpec((1, A), lambda i: (0, 0)),                   # policy fc bias
            pl.BlockSpec((B, R), lambda i: (0, 0)),                   # batch one-hot selector
        ],
        out_specs=(
            pl.BlockSpec((B, A), lambda i: (0, 0)),
            pl.BlockSpec((B, 1), lambda i: (0, 0)),
        ),
        scratch_shapes=[
            pltpu.VMEM((2 * GUARD + R, C), jnp.float32),              # resident activation s
            pltpu.VMEM((2 * GUARD + R, C), jnp.float32),              # intermediate h
        ],
    )
    p, v = pl.pallas_call(
        _c4zero_kernel,
        out_shape=(jax.ShapeDtypeStruct((B, A), jnp.float32),
                   jax.ShapeDtypeStruct((B, 1), jnp.float32)),
        grid_spec=grid_spec,
        compiler_params=pltpu.CompilerParams(dimension_semantics=("arbitrary",)),
        cost_estimate=pl.CostEstimate(flops=flops, transcendentals=B * (A + 1),
                                      bytes_accessed=bytes_accessed),
    )(xcol, kp['w0'], kp['sb0'], kp['mask'], kp['w_res'], kp['sb_res'],
      kp['wcomb'], kp['bcomb'], kp['wfc1_re'], kp['bfc1'], kp['wfc2'], kp['bfc2'],
      kp['wfc_re'], kp['bfc'], kp['gt'])
    return p, v


# ----------------------------------------------------------------------------------------
# Deterministic synthetic parameters (shapes from the PyTorch module), BN folded (eval mode)
# ----------------------------------------------------------------------------------------
def _uniform(key, shape, fan_in):
    return jax.random.uniform(key, shape, jnp.float32, -1.0, 1.0) / math.sqrt(fan_in)


def _bn_fold(key, c, conv_bias=None, eps=1e-5):
    k1, k2, k3, k4 = jax.random.split(key, 4)
    gamma = 1.0 + 0.1 * jax.random.normal(k1, (c,), jnp.float32)
    beta = 0.1 * jax.random.normal(k2, (c,), jnp.float32)
    mean = 0.1 * jax.random.normal(k3, (c,), jnp.float32)
    var = 0.5 + jax.random.uniform(k4, (c,), jnp.float32)
    scale = gamma / jnp.sqrt(var + eps)
    bias = beta - mean * scale
    if conv_bias is not None:
        bias = bias + conv_bias * scale
    return scale.reshape(1, c), bias.reshape(1, c)


def init_params(key):
    ks = iter(jax.random.split(key, 128))
    params = {}
    # ConvBlock: Conv2d(1, 128, 3, pad=1) + BN(128); weight stored (tap = ky*3+kx, cout)
    w0 = _uniform(next(ks), (9, C), 9 * 1)
    b0 = _uniform(next(ks), (C,), 9 * 1)
    s0, bb0 = _bn_fold(next(ks), C, conv_bias=b0)
    params['conv'] = {'w': w0, 'scale': s0, 'bias': bb0}
    # 19 ResBlocks: Conv2d(128,128,3,pad=1,bias=False) + BN, twice; weights (tap, cin, cout)
    res = []
    for _ in range(N_RES):
        w1 = _uniform(next(ks), (9, C, C), 9 * C)
        s1, b1 = _bn_fold(next(ks), C)
        w2 = _uniform(next(ks), (9, C, C), 9 * C)
        s2, b2 = _bn_fold(next(ks), C)
        res.append({'w1': w1, 's1': s1, 'b1': b1, 'w2': w2, 's2': s2, 'b2': b2})
    params['res'] = res
    # OutBlock (head weights stored in x @ W form; wfc rows in torch (c, h, w) flatten order)
    wv = _uniform(next(ks), (C, 1), C)
    bvc = _uniform(next(ks), (1,), C)
    sv, bv = _bn_fold(next(ks), 1, conv_bias=bvc)
    wp = _uniform(next(ks), (C, 32), C)
    bpc = _uniform(next(ks), (32,), C)
    sp, bp = _bn_fold(next(ks), 32, conv_bias=bpc)
    wfc1 = _uniform(next(ks), (H * W, 32), H * W)
    bfc1 = _uniform(next(ks), (1, 32), H * W)
    wfc2 = _uniform(next(ks), (32, 1), 32)
    bfc2 = _uniform(next(ks), (1, 1), 32)
    wfc = _uniform(next(ks), (32 * H * W, A), 32 * H * W)
    bfc = _uniform(next(ks), (1, A), 32 * H * W)
    params['out'] = {'wv': wv, 'sv': sv, 'bv': bv, 'wp': wp, 'sp': sp, 'bp': bp,
                     'wfc1': wfc1, 'bfc1': bfc1, 'wfc2': wfc2, 'bfc2': bfc2,
                     'wfc': wfc, 'bfc': bfc}
    return params


def prepare_kernel_params(params, B):
    """Rearrange parameters into the layouts the fused kernel consumes (setup-time glue)."""
    R = B * YS * XS
    out = params['out']
    # ConvBlock
    w0k = jnp.zeros((16, C), jnp.float32).at[:9, :].set(params['conv']['w'])
    sb0 = jnp.concatenate([params['conv']['scale'], params['conv']['bias']], axis=0)
    # Residual tower: stacked bf16 weights (streamed) + f32 scale/bias
    w_res = jnp.stack([jnp.concatenate([b['w1'], b['w2']], axis=0) for b in params['res']],
                      axis=0).astype(jnp.bfloat16)                      # (19, 18, C, C)
    sb_res = jnp.stack([jnp.concatenate([b['s1'], b['b1'], b['s2'], b['b2']], axis=0)
                        for b in params['res']], axis=0)                # (19, 4, C)
    # Valid-row mask for the r = b*64 + y*8 + x layout
    yy, xx = jnp.meshgrid(jnp.arange(YS), jnp.arange(XS), indexing='ij')
    valid = ((yy < H) & (xx < W)).astype(jnp.float32).reshape(YS * XS, 1)
    mask = jnp.tile(valid, (B, C))                                       # (R, C)
    # OutBlock: the two 1x1 convs fused into one matmul (BN scale folded into the weights)
    wcomb = jnp.zeros((C, 64), jnp.float32)
    wcomb = wcomb.at[:, 0:32].set(out['wp'] * out['sp'])
    wcomb = wcomb.at[:, 32:33].set(out['wv'] * out['sv'])
    bcomb = jnp.zeros((1, 64), jnp.float32)
    bcomb = bcomb.at[:, 0:32].set(out['bp'])
    bcomb = bcomb.at[:, 32:33].set(out['bv'])
    # fc1 weight rearranged to the padded-row layout (zero at pad rows), tiled over batch
    w1p = jnp.zeros((YS, XS, 32), jnp.float32).at[:H, :W, :].set(out['wfc1'].reshape(H, W, 32))
    wfc1_re = jnp.tile(w1p.reshape(YS * XS, 32), (B, 1))                 # (R, 32)
    # policy fc weight (torch rows are (c, h, w)) rearranged to (A, R, 32), zero at pad rows
    wfc_cyxa = out['wfc'].reshape(32, H, W, A)
    wp_pad = jnp.zeros((YS, XS, 32, A), jnp.float32).at[:H, :W, :, :].set(
        jnp.transpose(wfc_cyxa, (1, 2, 0, 3)))
    wfc_re = jnp.transpose(jnp.tile(wp_pad.reshape(YS * XS, 32, A), (B, 1, 1)), (2, 0, 1))
    # batch one-hot row selector (B, R)
    gt = (jnp.arange(R)[None, :] // (YS * XS) == jnp.arange(B)[:, None]).astype(jnp.float32)
    return {'w0': w0k, 'sb0': sb0, 'mask': mask, 'w_res': w_res, 'sb_res': sb_res,
            'wcomb': wcomb, 'bcomb': bcomb, 'wfc1_re': wfc1_re, 'bfc1': out['bfc1'],
            'wfc2': out['wfc2'].reshape(1, 32), 'bfc2': out['bfc2'],
            'wfc_re': wfc_re, 'bfc': out['bfc'], 'gt': gt}


# ----------------------------------------------------------------------------------------
# Pure-JAX reference (same math, same bf16-rounded weights) for validation
# ----------------------------------------------------------------------------------------
def _im2col_3x3(x):
    B, h, w, c = x.shape
    xp = jnp.pad(x, ((0, 0), (1, 1), (1, 1), (0, 0)))
    cols = [xp[:, dy:dy + h, dx:dx + w, :] for dy in range(3) for dx in range(3)]
    return jnp.concatenate(cols, axis=-1).reshape(B * h * w, 9 * c)


def c4zero_forward_ref(x_nchw, params):
    B = x_nchw.shape[0]
    x = jnp.transpose(x_nchw.reshape(B, 1, H, W), (0, 2, 3, 1)).astype(jnp.float32)
    col0 = _im2col_3x3(x)                                                 # (B*42, 9)
    s = jnp.maximum((col0 @ params['conv']['w']) * params['conv']['scale']
                    + params['conv']['bias'], 0.0)
    s = s.reshape(B, H, W, C)
    for blk in params['res']:
        c1 = _im2col_3x3(s).astype(jnp.bfloat16)
        w1 = blk['w1'].reshape(9 * C, C).astype(jnp.bfloat16)
        h = jnp.maximum(jnp.dot(c1, w1, preferred_element_type=jnp.float32) * blk['s1']
                        + blk['b1'], 0.0)
        c2 = _im2col_3x3(h.reshape(B, H, W, C)).astype(jnp.bfloat16)
        w2 = blk['w2'].reshape(9 * C, C).astype(jnp.bfloat16)
        o = jnp.maximum(jnp.dot(c2, w2, preferred_element_type=jnp.float32) * blk['s2']
                        + blk['b2'] + s.reshape(B * H * W, C), 0.0)
        s = o.reshape(B, H, W, C)
    out = params['out']
    x2 = s.reshape(B * H * W, C)
    vh = jnp.maximum((x2 @ out['wv']) * out['sv'] + out['bv'], 0.0)       # (B*42, 1)
    ph = jnp.maximum((x2 @ out['wp']) * out['sp'] + out['bp'], 0.0)       # (B*42, 32)
    v = jnp.maximum(vh.reshape(B, H * W) @ out['wfc1'] + out['bfc1'], 0.0)
    v = jnp.tanh(v @ out['wfc2'] + out['bfc2'])
    pflat = jnp.transpose(ph.reshape(B, H, W, 32), (0, 3, 1, 2)).reshape(B, H * W * 32)
    logits = pflat @ out['wfc'] + out['bfc']
    return jax.nn.softmax(logits, axis=1), v


if __name__ == "__main__":
    key = jax.random.PRNGKey(0)
    k_params, k_x = jax.random.split(key)
    params = init_params(k_params)
    B = 2
    kp = prepare_kernel_params(params, B)
    x = jax.random.normal(k_x, (B, 1, H, W), jnp.float32)     # batch of connect-4 boards (NCHW)

    fwd = jax.jit(c4zero_forward)
    p, v = fwd(x, kp)
    jax.block_until_ready((p, v))

    p_r, v_r = jax.jit(c4zero_forward_ref)(x, params)

    assert p.shape == (B, A) and v.shape == (B, 1)
    assert bool(jnp.all(jnp.isfinite(p))) and bool(jnp.all(jnp.isfinite(v)))
    assert bool(jnp.allclose(jnp.sum(p, axis=1), 1.0, atol=1e-5))
    assert bool(jnp.all(jnp.abs(v) <= 1.0))
    assert bool(jnp.allclose(p, p_r, atol=2e-2, rtol=2e-2))
    assert bool(jnp.allclose(v, v_r, atol=2e-2, rtol=2e-2))
    print("KERNEL_OK")
</pallas_src>

<mosaic_0001>
module attributes {stable_mosaic.version = 11 : i64} {
  func.func @_c4zero_kernel(%arg0: i32, %arg1: memref<128x16xf32, #tpu.memory_space<vmem>>, %arg2: memref<16x128xf32, #tpu.memory_space<vmem>>, %arg3: memref<2x128xf32, #tpu.memory_space<vmem>>, %arg4: memref<128x128xf32, #tpu.memory_space<vmem>>, %arg5: memref<1x18x128x128xbf16, #tpu.memory_space<vmem>>, %arg6: memref<1x4x128xf32, #tpu.memory_space<vmem>>, %arg7: memref<128x64xf32, #tpu.memory_space<vmem>>, %arg8: memref<1x64xf32, #tpu.memory_space<vmem>>, %arg9: memref<128x32xf32, #tpu.memory_space<vmem>>, %arg10: memref<1x32xf32, #tpu.memory_space<vmem>>, %arg11: memref<1x32xf32, #tpu.memory_space<vmem>>, %arg12: memref<1x1xf32, #tpu.memory_space<vmem>>, %arg13: memref<7x128x32xf32, #tpu.memory_space<vmem>>, %arg14: memref<1x7xf32, #tpu.memory_space<vmem>>, %arg15: memref<2x128xf32, #tpu.memory_space<vmem>>, %arg16: memref<2x7xf32, #tpu.memory_space<vmem>>, %arg17: memref<2x1xf32, #tpu.memory_space<vmem>>, %arg18: memref<160x128xf32, #tpu.memory_space<vmem>>, %arg19: memref<160x128xf32, #tpu.memory_space<vmem>>) attributes {dimension_semantics = [#tpu.dimension_semantics<arbitrary>], iteration_bounds = array<i64: 19>, scalar_prefetch = 0 : i64, scratch_operands = 2 : i64, tpu.core_type = #tpu.core_type<tc>, window_params = [{pipeline_mode = #tpu.pipeline_mode<synchronous>, transform_indices = @transform_0, window_bounds = array<i64: 128, 16>}, {pipeline_mode = #tpu.pipeline_mode<synchronous>, transform_indices = @transform_1, window_bounds = array<i64: 16, 128>}, {pipeline_mode = #tpu.pipeline_mode<synchronous>, transform_indices = @transform_2, window_bounds = array<i64: 2, 128>}, {pipeline_mode = #tpu.pipeline_mode<synchronous>, transform_indices = @transform_3, window_bounds = array<i64: 128, 128>}, {transform_indices = @transform_4, window_bounds = array<i64: 1, 18, 128, 128>}, {transform_indices = @transform_5, window_bounds = array<i64: 1, 4, 128>}, {pipeline_mode = #tpu.pipeline_mode<synchronous>, transform_indices = @transform_6, window_bounds = array<i64: 128, 64>}, {pipeline_mode = #tpu.pipeline_mode<synchronous>, transform_indices = @transform_7, window_bounds = array<i64: 1, 64>}, {pipeline_mode = #tpu.pipeline_mode<synchronous>, transform_indices = @transform_8, window_bounds = array<i64: 128, 32>}, {pipeline_mode = #tpu.pipeline_mode<synchronous>, transform_indices = @transform_9, window_bounds = array<i64: 1, 32>}, {pipeline_mode = #tpu.pipeline_mode<synchronous>, transform_indices = @transform_10, window_bounds = array<i64: 1, 32>}, {pipeline_mode = #tpu.pipeline_mode<synchronous>, transform_indices = @transform_11, window_bounds = array<i64: 1, 1>}, {pipeline_mode = #tpu.pipeline_mode<synchronous>, transform_indices = @transform_12, window_bounds = array<i64: 7, 128, 32>}, {pipeline_mode = #tpu.pipeline_mode<synchronous>, transform_indices = @transform_13, window_bounds = array<i64: 1, 7>}, {pipeline_mode = #tpu.pipeline_mode<synchronous>, transform_indices = @transform_14, window_bounds = array<i64: 2, 128>}, {pipeline_mode = #tpu.pipeline_mode<synchronous>, transform_indices = @transform_15, window_bounds = array<i64: 2, 7>}, {pipeline_mode = #tpu.pipeline_mode<synchronous>, transform_indices = @transform_16, window_bounds = array<i64: 2, 1>}]} {
    %c0 = arith.constant 0 : index
    %c0_0 = arith.constant 0 : index
    %0 = vector.load %arg4[%c0, %c0_0] : memref<128x128xf32, #tpu.memory_space<vmem>>, vector<128x128xf32>
    %c0_i32 = arith.constant 0 : i32
    %1 = arith.cmpi eq, %arg0, %c0_i32 : i32
    %2 = arith.extui %1 : i1 to i32
    %c0_i32_1 = arith.constant 0 : i32
    %3 = arith.cmpi ne, %2, %c0_i32_1 : i32
    scf.if %3 {
      %cst_128 = arith.constant 0.000000e+00 : f32
      %139 = vector.broadcast %cst_128 : f32 to vector<160x128xf32>
      %c0_129 = arith.constant 0 : index
      %c0_130 = arith.constant 0 : index
      %140 = vector.load %arg18[%c0_129, %c0_130] : memref<160x128xf32, #tpu.memory_space<vmem>>, vector<160x128xf32>
      tpu.vector_store %arg18[%c0_129, %c0_130], %139 {strides = array<i32>} : memref<160x128xf32, #tpu.memory_space<vmem>>, vector<160x128xf32>,
      %cst_131 = arith.constant 0.000000e+00 : f32
      %141 = vector.broadcast %cst_131 : f32 to vector<160x128xf32>
      %c0_132 = arith.constant 0 : index
      %c0_133 = arith.constant 0 : index
      %142 = vector.load %arg19[%c0_132, %c0_133] : memref<160x128xf32, #tpu.memory_space<vmem>>, vector<160x128xf32>
      tpu.vector_store %arg19[%c0_132, %c0_133], %141 {strides = array<i32>} : memref<160x128xf32, #tpu.memory_space<vmem>>, vector<160x128xf32>,
      %c0_134 = arith.constant 0 : index
      %c0_135 = arith.constant 0 : index
      %143 = vector.load %arg1[%c0_134, %c0_135] : memref<128x16xf32, #tpu.memory_space<vmem>>, vector<128x16xf32>
      %c0_136 = arith.constant 0 : index
      %c0_137 = arith.constant 0 : index
      %144 = vector.load %arg2[%c0_136, %c0_137] : memref<16x128xf32, #tpu.memory_space<vmem>>, vector<16x128xf32>
      %cst_138 = arith.constant dense<0.000000e+00> : vector<128x128xf32>
      %145 = tpu.matmul %143, %144, %cst_138 {dimension_numbers = #tpu.dot_dimension_numbers<[1], [0], [0], [1], [0, 0, 1, 1], [], []>} : vector<128x16xf32>, vector<16x128xf32>, vector<128x128xf32> -> vector<128x128xf32>
      %c0_139 = arith.constant 0 : index
      %c0_140 = arith.constant 0 : index
      %146 = vector.load %arg3[%c0_139, %c0_140] : memref<2x128xf32, #tpu.memory_space<vmem>>, vector<1x128xf32>
      %147 = vector.broadcast %146 : vector<1x128xf32> to vector<128x128xf32>
      %148 = arith.mulf %145, %147 : vector<128x128xf32>
      %c1_141 = arith.constant 1 : index
      %c0_142 = arith.constant 0 : index
      %149 = vector.load %arg3[%c1_141, %c0_142] : memref<2x128xf32, #tpu.memory_space<vmem>>, vector<1x128xf32>
      %150 = vector.broadcast %149 : vector<1x128xf32> to vector<128x128xf32>
      %151 = arith.addf %148, %150 : vector<128x128xf32>
      %cst_143 = arith.constant 0.000000e+00 : f32
      %152 = vector.broadcast %cst_143 : f32 to vector<128x128xf32>
      %153 = arith.maximumf %151, %152 : vector<128x128xf32>
      %154 = arith.mulf %153, %0 : vector<128x128xf32>
      %c16_144 = arith.constant 16 : index
      %c0_145 = arith.constant 0 : index
      %155 = vector.load %arg18[%c16_144, %c0_145] : memref<160x128xf32, #tpu.memory_space<vmem>>, vector<128x128xf32>
      tpu.vector_store %arg18[%c16_144, %c0_145], %154 {strides = array<i32>} : memref<160x128xf32, #tpu.memory_space<vmem>>, vector<128x128xf32>,
    } else {
    }
    %c16 = arith.constant 16 : index
    %c0_2 = arith.constant 0 : index
    %4 = vector.load %arg18[%c16, %c0_2] : memref<160x128xf32, #tpu.memory_space<vmem>>, vector<128x128xf32>
    %c7 = arith.constant 7 : index
    %c0_3 = arith.constant 0 : index
    %5 = vector.load %arg18[%c7, %c0_3] : memref<160x128xf32, #tpu.memory_space<vmem>>, vector<128x128xf32>
    %6 = arith.truncf %5 : vector<128x128xf32> to vector<128x128xbf16>
    %c0_4 = arith.constant 0 : index
    %c0_5 = arith.constant 0 : index
    %c0_6 = arith.constant 0 : index
    %c0_7 = arith.constant 0 : index
    %7 = vector.load %arg5[%c0_4, %c0_5, %c0_6, %c0_7] : memref<1x18x128x128xbf16, #tpu.memory_space<vmem>>, vector<1x1x128x128xbf16>
    %8 = vector.shape_cast %7 : vector<1x1x128x128xbf16> to vector<128x128xbf16>
    %cst = arith.constant dense<0.000000e+00> : vector<128x128xf32>
    %9 = tpu.matmul %6, %8, %cst {dimension_numbers = #tpu.dot_dimension_numbers<[1], [0], [0], [1], [0, 0, 1, 1], [], []>} : vector<128x128xbf16>, vector<128x128xbf16>, vector<128x128xf32> -> vector<128x128xf32>
    %c8 = arith.constant 8 : index
    %c0_8 = arith.constant 0 : index
    %10 = vector.load %arg18[%c8, %c0_8] : memref<160x128xf32, #tpu.memory_space<vmem>>, vector<128x128xf32>
    %11 = arith.truncf %10 : vector<128x128xf32> to vector<128x128xbf16>
    %c0_9 = arith.constant 0 : index
    %c1 = arith.constant 1 : index
    %c0_10 = arith.constant 0 : index
    %c0_11 = arith.constant 0 : index
    %12 = vector.load %arg5[%c0_9, %c1, %c0_10, %c0_11] : memref<1x18x128x128xbf16, #tpu.memory_space<vmem>>, vector<1x1x128x128xbf16>
    %13 = vector.shape_cast %12 : vector<1x1x128x128xbf16> to vector<128x128xbf16>
    %cst_12 = arith.constant dense<0.000000e+00> : vector<128x128xf32>
    %14 = tpu.matmul %11, %13, %cst_12 {dimension_numbers = #tpu.dot_dimension_numbers<[1], [0], [0], [1], [0, 0, 1, 1], [], []>} : vector<128x128xbf16>, vector<128x128xbf16>, vector<128x128xf32> -> vector<128x128xf32>
    %15 = arith.addf %9, %14 : vector<128x128xf32>
    %c9 = arith.constant 9 : index
    %c0_13 = arith.constant 0 : index
    %16 = vector.load %arg18[%c9, %c0_13] : memref<160x128xf32, #tpu.memory_space<vmem>>, vector<128x128xf32>
    %17 = arith.truncf %16 : vector<128x128xf32> to vector<128x128xbf16>
    %c0_14 = arith.constant 0 : index
    %c2 = arith.constant 2 : index
    %c0_15 = arith.constant 0 : index
    %c0_16 = arith.constant 0 : index
    %18 = vector.load %arg5[%c0_14, %c2, %c0_15, %c0_16] : memref<1x18x128x128xbf16, #tpu.memory_space<vmem>>, vector<1x1x128x128xbf16>
    %19 = vector.shape_cast %18 : vector<1x1x128x128xbf16> to vector<128x128xbf16>
    %cst_17 = arith.constant dense<0.000000e+00> : vector<128x128xf32>
    %20 = tpu.matmul %17, %19, %cst_17 {dimension_numbers = #tpu.dot_dimension_numbers<[1], [0], [0], [1], [0, 0, 1, 1], [], []>} : vector<128x128xbf16>, vector<128x128xbf16>, vector<128x128xf32> -> vector<128x128xf32>
    %21 = arith.addf %15, %20 : vector<128x128xf32>
    %c15 = arith.constant 15 : index
    %c0_18 = arith.constant 0 : index
    %22 = vector.load %arg18[%c15, %c0_18] : memref<160x128xf32, #tpu.memory_space<vmem>>, vector<128x128xf32>
    %23 = arith.truncf %22 : vector<128x128xf32> to vector<128x128xbf16>
    %c0_19 = arith.constant 0 : index
    %c3 = arith.constant 3 : index
    %c0_20 = arith.constant 0 : index
    %c0_21 = arith.constant 0 : index
    %24 = vector.load %arg5[%c0_19, %c3, %c0_20, %c0_21] : memref<1x18x128x128xbf16, #tpu.memory_space<vmem>>, vector<1x1x128x128xbf16>
    %25 = vector.shape_cast %24 : vector<1x1x128x128xbf16> to vector<128x128xbf16>
    %cst_22 = arith.constant dense<0.000000e+00> : vector<128x128xf32>
    %26 = tpu.matmul %23, %25, %cst_22 {dimension_numbers = #tpu.dot_dimension_numbers<[1], [0], [0], [1], [0, 0, 1, 1], [], []>} : vector<128x128xbf16>, vector<128x128xbf16>, vector<128x128xf32> -> vector<128x128xf32>
    %27 = arith.addf %21, %26 : vector<128x128xf32>
    %c16_23 = arith.constant 16 : index
    %c0_24 = arith.constant 0 : index
    %28 = vector.load %arg18[%c16_23, %c0_24] : memref<160x128xf32, #tpu.memory_space<vmem>>, vector<128x128xf32>
    %29 = arith.truncf %28 : vector<128x128xf32> to vector<128x128xbf16>
    %c0_25 = arith.constant 0 : index
    %c4 = arith.constant 4 : index
    %c0_26 = arith.constant 0 : index
    %c0_27 = arith.constant 0 : index
    %30 = vector.load %arg5[%c0_25, %c4, %c0_26, %c0_27] : memref<1x18x128x128xbf16, #tpu.memory_space<vmem>>, vector<1x1x128x128xbf16>
    %31 = vector.shape_cast %30 : vector<1x1x128x128xbf16> to vector<128x128xbf16>
    %cst_28 = arith.constant dense<0.000000e+00> : vector<128x128xf32>
    %32 = tpu.matmul %29, %31, %cst_28 {dimension_numbers = #tpu.dot_dimension_numbers<[1], [0], [0], [1], [0, 0, 1, 1], [], []>} : vector<128x128xbf16>, vector<128x128xbf16>, vector<128x128xf32> -> vector<128x128xf32>
    %33 = arith.addf %27, %32 : vector<128x128xf32>
    %c17 = arith.constant 17 : index
    %c0_29 = arith.constant 0 : index
    %34 = vector.load %arg18[%c17, %c0_29] : memref<160x128xf32, #tpu.memory_space<vmem>>, vector<128x128xf32>
    %35 = arith.truncf %34 : vector<128x128xf32> to vector<128x128xbf16>
    %c0_30 = arith.constant 0 : index
    %c5 = arith.constant 5 : index
    %c0_31 = arith.constant 0 : index
    %c0_32 = arith.constant 0 : index
    %36 = vector.load %arg5[%c0_30, %c5, %c0_31, %c0_32] : memref<1x18x128x128xbf16, #tpu.memory_space<vmem>>, vector<1x1x128x128xbf16>
    %37 = vector.shape_cast %36 : vector<1x1x128x128xbf16> to vector<128x128xbf16>
    %cst_33 = arith.constant dense<0.000000e+00> : vector<128x128xf32>
    %38 = tpu.matmul %35, %37, %cst_33 {dimension_numbers = #tpu.dot_dimension_numbers<[1], [0], [0], [1], [0, 0, 1, 1], [], []>} : vector<128x128xbf16>, vector<128x128xbf16>, vector<128x128xf32> -> vector<128x128xf32>
    %39 = arith.addf %33, %38 : vector<128x128xf32>
    %c23 = arith.constant 23 : index
    %c0_34 = arith.constant 0 : index
    %40 = vector.load %arg18[%c23, %c0_34] : memref<160x128xf32, #tpu.memory_space<vmem>>, vector<128x128xf32>
    %41 = arith.truncf %40 : vector<128x128xf32> to vector<128x128xbf16>
    %c0_35 = arith.constant 0 : index
    %c6 = arith.constant 6 : index
    %c0_36 = arith.constant 0 : index
    %c0_37 = arith.constant 0 : index
    %42 = vector.load %arg5[%c0_35, %c6, %c0_36, %c0_37] : memref<1x18x128x128xbf16, #tpu.memory_space<vmem>>, vector<1x1x128x128xbf16>
    %43 = vector.shape_cast %42 : vector<1x1x128x128xbf16> to vector<128x128xbf16>
    %cst_38 = arith.constant dense<0.000000e+00> : vector<128x128xf32>
    %44 = tpu.matmul %41, %43, %cst_38 {dimension_numbers = #tpu.dot_dimension_numbers<[1], [0], [0], [1], [0, 0, 1, 1], [], []>} : vector<128x128xbf16>, vector<128x128xbf16>, vector<128x128xf32> -> vector<128x128xf32>
    %45 = arith.addf %39, %44 : vector<128x128xf32>
    %c24 = arith.constant 24 : index
    %c0_39 = arith.constant 0 : index
    %46 = vector.load %arg18[%c24, %c0_39] : memref<160x128xf32, #tpu.memory_space<vmem>>, vector<128x128xf32>
    %47 = arith.truncf %46 : vector<128x128xf32> to vector<128x128xbf16>
    %c0_40 = arith.constant 0 : index
    %c7_41 = arith.constant 7 : index
    %c0_42 = arith.constant 0 : index
    %c0_43 = arith.constant 0 : index
    %48 = vector.load %arg5[%c0_40, %c7_41, %c0_42, %c0_43] : memref<1x18x128x128xbf16, #tpu.memory_space<vmem>>, vector<1x1x128x128xbf16>
    %49 = vector.shape_cast %48 : vector<1x1x128x128xbf16> to vector<128x128xbf16>
    %cst_44 = arith.constant dense<0.000000e+00> : vector<128x128xf32>
    %50 = tpu.matmul %47, %49, %cst_44 {dimension_numbers = #tpu.dot_dimension_numbers<[1], [0], [0], [1], [0, 0, 1, 1], [], []>} : vector<128x128xbf16>, vector<128x128xbf16>, vector<128x128xf32> -> vector<128x128xf32>
    %51 = arith.addf %45, %50 : vector<128x128xf32>
    %c25 = arith.constant 25 : index
    %c0_45 = arith.constant 0 : index
    %52 = vector.load %arg18[%c25, %c0_45] : memref<160x128xf32, #tpu.memory_space<vmem>>, vector<128x128xf32>
    %53 = arith.truncf %52 : vector<128x128xf32> to vector<128x128xbf16>
    %c0_46 = arith.constant 0 : index
    %c8_47 = arith.constant 8 : index
    %c0_48 = arith.constant 0 : index
    %c0_49 = arith.constant 0 : index
    %54 = vector.load %arg5[%c0_46, %c8_47, %c0_48, %c0_49] : memref<1x18x128x128xbf16, #tpu.memory_space<vmem>>, vector<1x1x128x128xbf16>
    %55 = vector.shape_cast %54 : vector<1x1x128x128xbf16> to vector<128x128xbf16>
    %cst_50 = arith.constant dense<0.000000e+00> : vector<128x128xf32>
    %56 = tpu.matmul %53, %55, %cst_50 {dimension_numbers = #tpu.dot_dimension_numbers<[1], [0], [0], [1], [0, 0, 1, 1], [], []>} : vector<128x128xbf16>, vector<128x128xbf16>, vector<128x128xf32> -> vector<128x128xf32>
    %57 = arith.addf %51, %56 : vector<128x128xf32>
    %c0_51 = arith.constant 0 : index
    %c0_52 = arith.constant 0 : index
    %c0_53 = arith.constant 0 : index
    %58 = vector.load %arg6[%c0_51, %c0_52, %c0_53] : memref<1x4x128xf32, #tpu.memory_space<vmem>>, vector<1x1x128xf32>
    %59 = vector.shape_cast %58 : vector<1x1x128xf32> to vector<1x128xf32>
    %60 = vector.broadcast %59 : vector<1x128xf32> to vector<128x128xf32>
    %61 = arith.mulf %57, %60 : vector<128x128xf32>
    %c0_54 = arith.constant 0 : index
    %c1_55 = arith.constant 1 : index
    %c0_56 = arith.constant 0 : index
    %62 = vector.load %arg6[%c0_54, %c1_55, %c0_56] : memref<1x4x128xf32, #tpu.memory_space<vmem>>, vector<1x1x128xf32>
    %63 = vector.shape_cast %62 : vector<1x1x128xf32> to vector<1x128xf32>
    %64 = vector.broadcast %63 : vector<1x128xf32> to vector<128x128xf32>
    %65 = arith.addf %61, %64 : vector<128x128xf32>
    %cst_57 = arith.constant 0.000000e+00 : f32
    %66 = vector.broadcast %cst_57 : f32 to vector<128x128xf32>
    %67 = arith.maximumf %65, %66 : vector<128x128xf32>
    %68 = arith.mulf %67, %0 : vector<128x128xf32>
    %c16_58 = arith.constant 16 : index
    %c0_59 = arith.constant 0 : index
    %69 = vector.load %arg19[%c16_58, %c0_59] : memref<160x128xf32, #tpu.memory_space<vmem>>, vector<128x128xf32>
    tpu.vector_store %arg19[%c16_58, %c0_59], %68 {strides = array<i32>} : memref<160x128xf32, #tpu.memory_space<vmem>>, vector<128x128xf32>,
    %c7_60 = arith.constant 7 : index
    %c0_61 = arith.constant 0 : index
    %70 = vector.load %arg19[%c7_60, %c0_61] : memref<160x128xf32, #tpu.memory_space<vmem>>, vector<128x128xf32>
    %71 = arith.truncf %70 : vector<128x128xf32> to vector<128x128xbf16>
    %c0_62 = arith.constant 0 : index
    %c9_63 = arith.constant 9 : index
    %c0_64 = arith.constant 0 : index
    %c0_65 = arith.constant 0 : index
    %72 = vector.load %arg5[%c0_62, %c9_63, %c0_64, %c0_65] : memref<1x18x128x128xbf16, #tpu.memory_space<vmem>>, vector<1x1x128x128xbf16>
    %73 = vector.shape_cast %72 : vector<1x1x128x128xbf16> to vector<128x128xbf16>
    %cst_66 = arith.constant dense<0.000000e+00> : vector<128x128xf32>
    %74 = tpu.matmul %71, %73, %cst_66 {dimension_numbers = #tpu.dot_dimension_numbers<[1], [0], [0], [1], [0, 0, 1, 1], [], []>} : vector<128x128xbf16>, vector<128x128xbf16>, vector<128x128xf32> -> vector<128x128xf32>
    %c8_67 = arith.constant 8 : index
    %c0_68 = arith.constant 0 : index
    %75 = vector.load %arg19[%c8_67, %c0_68] : memref<160x128xf32, #tpu.memory_space<vmem>>, vector<128x128xf32>
    %76 = arith.truncf %75 : vector<128x128xf32> to vector<128x128xbf16>
    %c0_69 = arith.constant 0 : index
    %c10 = arith.constant 10 : index
    %c0_70 = arith.constant 0 : index
    %c0_71 = arith.constant 0 : index
    %77 = vector.load %arg5[%c0_69, %c10, %c0_70, %c0_71] : memref<1x18x128x128xbf16, #tpu.memory_space<vmem>>, vector<1x1x128x128xbf16>
    %78 = vector.shape_cast %77 : vector<1x1x128x128xbf16> to vector<128x128xbf16>
    %cst_72 = arith.constant dense<0.000000e+00> : vector<128x128xf32>
    %79 = tpu.matmul %76, %78, %cst_72 {dimension_numbers = #tpu.dot_dimension_numbers<[1], [0], [0], [1], [0, 0, 1, 1], [], []>} : vector<128x128xbf16>, vector<128x128xbf16>, vector<128x128xf32> -> vector<128x128xf32>
    %80 = arith.addf %74, %79 : vector<128x128xf32>
    %c9_73 = arith.constant 9 : index
    %c0_74 = arith.constant 0 : index
    %81 = vector.load %arg19[%c9_73, %c0_74] : memref<160x128xf32, #tpu.memory_space<vmem>>, vector<128x128xf32>
    %82 = arith.truncf %81 : vector<128x128xf32> to vector<128x128xbf16>
    %c0_75 = arith.constant 0 : index
    %c11 = arith.constant 11 : index
    %c0_76 = arith.constant 0 : index
    %c0_77 = arith.constant 0 : index
    %83 = vector.load %arg5[%c0_75, %c11, %c0_76, %c0_77] : memref<1x18x128x128xbf16, #tpu.memory_space<vmem>>, vector<1x1x128x128xbf16>
    %84 = vector.shape_cast %83 : vector<1x1x128x128xbf16> to vector<128x128xbf16>
    %cst_78 = arith.constant dense<0.000000e+00> : vector<128x128xf32>
    %85 = tpu.matmul %82, %84, %cst_78 {dimension_numbers = #tpu.dot_dimension_numbers<[1], [0], [0], [1], [0, 0, 1, 1], [], []>} : vector<128x128xbf16>, vector<128x128xbf16>, vector<128x128xf32> -> vector<128x128xf32>
    %86 = arith.addf %80, %85 : vector<128x128xf32>
    %c15_79 = arith.constant 15 : index
    %c0_80 = arith.constant 0 : index
    %87 = vector.load %arg19[%c15_79, %c0_80] : memref<160x128xf32, #tpu.memory_space<vmem>>, vector<128x128xf32>
    %88 = arith.truncf %87 : vector<128x128xf32> to vector<128x128xbf16>
    %c0_81 = arith.constant 0 : index
    %c12 = arith.constant 12 : index
    %c0_82 = arith.constant 0 : index
    %c0_83 = arith.constant 0 : index
    %89 = vector.load %arg5[%c0_81, %c12, %c0_82, %c0_83] : memref<1x18x128x128xbf16, #tpu.memory_space<vmem>>, vector<1x1x128x128xbf16>
    %90 = vector.shape_cast %89 : vector<1x1x128x128xbf16> to vector<128x128xbf16>
    %cst_84 = arith.constant dense<0.000000e+00> : vector<128x128xf32>
    %91 = tpu.matmul %88, %90, %cst_84 {dimension_numbers = #tpu.dot_dimension_numbers<[1], [0], [0], [1], [0, 0, 1, 1], [], []>} : vector<128x128xbf16>, vector<128x128xbf16>, vector<128x128xf32> -> vector<128x128xf32>
    %92 = arith.addf %86, %91 : vector<128x128xf32>
    %c16_85 = arith.constant 16 : index
    %c0_86 = arith.constant 0 : index
    %93 = vector.load %arg19[%c16_85, %c0_86] : memref<160x128xf32, #tpu.memory_space<vmem>>, vector<128x128xf32>
    %94 = arith.truncf %93 : vector<128x128xf32> to vector<128x128xbf16>
    %c0_87 = arith.constant 0 : index
    %c13 = arith.constant 13 : index
    %c0_88 = arith.constant 0 : index
    %c0_89 = arith.constant 0 : index
    %95 = vector.load %arg5[%c0_87, %c13, %c0_88, %c0_89] : memref<1x18x128x128xbf16, #tpu.memory_space<vmem>>, vector<1x1x128x128xbf16>
    %96 = vector.shape_cast %95 : vector<1x1x128x128xbf16> to vector<128x128xbf16>
    %cst_90 = arith.constant dense<0.000000e+00> : vector<128x128xf32>
    %97 = tpu.matmul %94, %96, %cst_90 {dimension_numbers = #tpu.dot_dimension_numbers<[1], [0], [0], [1], [0, 0, 1, 1], [], []>} : vector<128x128xbf16>, vector<128x128xbf16>, vector<128x128xf32> -> vector<128x128xf32>
    %98 = arith.addf %92, %97 : vector<128x128xf32>
    %c17_91 = arith.constant 17 : index
    %c0_92 = arith.constant 0 : index
    %99 = vector.load %arg19[%c17_91, %c0_92] : memref<160x128xf32, #tpu.memory_space<vmem>>, vector<128x128xf32>
    %100 = arith.truncf %99 : vector<128x128xf32> to vector<128x128xbf16>
    %c0_93 = arith.constant 0 : index
    %c14 = arith.constant 14 : index
    %c0_94 = arith.constant 0 : index
    %c0_95 = arith.constant 0 : index
    %101 = vector.load %arg5[%c0_93, %c14, %c0_94, %c0_95] : memref<1x18x128x128xbf16, #tpu.memory_space<vmem>>, vector<1x1x128x128xbf16>
    %102 = vector.shape_cast %101 : vector<1x1x128x128xbf16> to vector<128x128xbf16>
    %cst_96 = arith.constant dense<0.000000e+00> : vector<128x128xf32>
    %103 = tpu.matmul %100, %102, %cst_96 {dimension_numbers = #tpu.dot_dimension_numbers<[1], [0], [0], [1], [0, 0, 1, 1], [], []>} : vector<128x128xbf16>, vector<128x128xbf16>, vector<128x128xf32> -> vector<128x128xf32>
    %104 = arith.addf %98, %103 : vector<128x128xf32>
    %c23_97 = arith.constant 23 : index
    %c0_98 = arith.constant 0 : index
    %105 = vector.load %arg19[%c23_97, %c0_98] : memref<160x128xf32, #tpu.memory_space<vmem>>, vector<128x128xf32>
    %106 = arith.truncf %105 : vector<128x128xf32> to vector<128x128xbf16>
    %c0_99 = arith.constant 0 : index
    %c15_100 = arith.constant 15 : index
    %c0_101 = arith.constant 0 : index
    %c0_102 = arith.constant 0 : index
    %107 = vector.load %arg5[%c0_99, %c15_100, %c0_101, %c0_102] : memref<1x18x128x128xbf16, #tpu.memory_space<vmem>>, vector<1x1x128x128xbf16>
    %108 = vector.shape_cast %107 : vector<1x1x128x128xbf16> to vector<128x128xbf16>
    %cst_103 = arith.constant dense<0.000000e+00> : vector<128x128xf32>
    %109 = tpu.matmul %106, %108, %cst_103 {dimension_numbers = #tpu.dot_dimension_numbers<[1], [0], [0], [1], [0, 0, 1, 1], [], []>} : vector<128x128xbf16>, vector<128x128xbf16>, vector<128x128xf32> -> vector<128x128xf32>
    %110 = arith.addf %104, %109 : vector<128x128xf32>
    %c24_104 = arith.constant 24 : index
    %c0_105 = arith.constant 0 : index
    %111 = vector.load %arg19[%c24_104, %c0_105] : memref<160x128xf32, #tpu.memory_space<vmem>>, vector<128x128xf32>
    %112 = arith.truncf %111 : vector<128x128xf32> to vector<128x128xbf16>
    %c0_106 = arith.constant 0 : index
    %c16_107 = arith.constant 16 : index
    %c0_108 = arith.constant 0 : index
    %c0_109 = arith.constant 0 : index
    %113 = vector.load %arg5[%c0_106, %c16_107, %c0_108, %c0_109] : memref<1x18x128x128xbf16, #tpu.memory_space<vmem>>, vector<1x1x128x128xbf16>
    %114 = vector.shape_cast %113 : vector<1x1x128x128xbf16> to vector<128x128xbf16>
    %cst_110 = arith.constant dense<0.000000e+00> : vector<128x128xf32>
    %115 = tpu.matmul %112, %114, %cst_110 {dimension_numbers = #tpu.dot_dimension_numbers<[1], [0], [0], [1], [0, 0, 1, 1], [], []>} : vector<128x128xbf16>, vector<128x128xbf16>, vector<128x128xf32> -> vector<128x128xf32>
    %116 = arith.addf %110, %115 : vector<128x128xf32>
    %c25_111 = arith.constant 25 : index
    %c0_112 = arith.constant 0 : index
    %117 = vector.load %arg19[%c25_111, %c0_112] : memref<160x128xf32, #tpu.memory_space<vmem>>, vector<128x128xf32>
    %118 = arith.truncf %117 : vector<128x128xf32> to vector<128x128xbf16>
    %c0_113 = arith.constant 0 : index
    %c17_114 = arith.constant 17 : index
    %c0_115 = arith.constant 0 : index
    %c0_116 = arith.constant 0 : index
    %119 = vector.load %arg5[%c0_113, %c17_114, %c0_115, %c0_116] : memref<1x18x128x128xbf16, #tpu.memory_space<vmem>>, vector<1x1x128x128xbf16>
    %120 = vector.shape_cast %119 : vector<1x1x128x128xbf16> to vector<128x128xbf16>
    %cst_117 = arith.constant dense<0.000000e+00> : vector<128x128xf32>
    %121 = tpu.matmul %118, %120, %cst_117 {dimension_numbers = #tpu.dot_dimension_numbers<[1], [0], [0], [1], [0, 0, 1, 1], [], []>} : vector<128x128xbf16>, vector<128x128xbf16>, vector<128x128xf32> -> vector<128x128xf32>
    %122 = arith.addf %116, %121 : vector<128x128xf32>
    %c0_118 = arith.constant 0 : index
    %c2_119 = arith.constant 2 : index
    %c0_120 = arith.constant 0 : index
    %123 = vector.load %arg6[%c0_118, %c2_119, %c0_120] : memref<1x4x128xf32, #tpu.memory_space<vmem>>, vector<1x1x128xf32>
    %124 = vector.shape_cast %123 : vector<1x1x128xf32> to vector<1x128xf32>
    %125 = vector.broadcast %124 : vector<1x128xf32> to vector<128x128xf32>
    %126 = arith.mulf %122, %125 : vector<128x128xf32>
    %c0_121 = arith.constant 0 : index
    %c3_122 = arith.constant 3 : index
    %c0_123 = arith.constant 0 : index
    %127 = vector.load %arg6[%c0_121, %c3_122, %c0_123] : memref<1x4x128xf32, #tpu.memory_space<vmem>>, vector<1x1x128xf32>
    %128 = vector.shape_cast %127 : vector<1x1x128xf32> to vector<1x128xf32>
    %129 = vector.broadcast %128 : vector<1x128xf32> to vector<128x128xf32>
    %130 = arith.addf %126, %129 : vector<128x128xf32>
    %131 = arith.addf %130, %4 : vector<128x128xf32>
    %cst_124 = arith.constant 0.000000e+00 : f32
    %132 = vector.broadcast %cst_124 : f32 to vector<128x128xf32>
    %133 = arith.maximumf %131, %132 : vector<128x128xf32>
    %134 = arith.mulf %133, %0 : vector<128x128xf32>
    %c16_125 = arith.constant 16 : index
    %c0_126 = arith.constant 0 : index
    %135 = vector.load %arg18[%c16_125, %c0_126] : memref<160x128xf32, #tpu.memory_space<vmem>>, vector<128x128xf32>
    tpu.vector_store %arg18[%c16_125, %c0_126], %134 {strides = array<i32>} : memref<160x128xf32, #tpu.memory_space<vmem>>, vector<128x128xf32>,
    %c18_i32 = arith.constant 18 : i32
    %136 = arith.cmpi eq, %arg0, %c18_i32 : i32
    %137 = arith.extui %136 : i1 to i32
    %c0_i32_127 = arith.constant 0 : i32
    %138 = arith.cmpi ne, %137, %c0_i32_127 : i32
    scf.if %138 {
      %c0_128 = arith.constant 0 : index
      %c0_129 = arith.constant 0 : index
      %139 = vector.load %arg7[%c0_128, %c0_129] : memref<128x64xf32, #tpu.memory_space<vmem>>, vector<128x64xf32>
      %cst_130 = arith.constant dense<0.000000e+00> : vector<128x64xf32>
      %140 = tpu.matmul %134, %139, %cst_130 {dimension_numbers = #tpu.dot_dimension_numbers<[1], [0], [0], [1], [0, 0, 1, 1], [], []>} : vector<128x128xf32>, vector<128x64xf32>, vector<128x64xf32> -> vector<128x64xf32>
      %c0_131 = arith.constant 0 : index
      %c0_132 = arith.constant 0 : index
      %141 = vector.load %arg8[%c0_131, %c0_132] : memref<1x64xf32, #tpu.memory_space<vmem>>, vector<1x64xf32>
      %142 = vector.broadcast %141 : vector<1x64xf32> to vector<128x64xf32>
      %143 = arith.addf %140, %142 : vector<128x64xf32>
      %cst_133 = arith.constant 0.000000e+00 : f32
      %144 = vector.broadcast %cst_133 : f32 to vector<128x64xf32>
      %145 = arith.maximumf %143, %144 : vector<128x64xf32>
      %146 = vector.extract_strided_slice %145 {offsets = [0, 0], sizes = [128, 32], strides = [1, 1]} : vector<128x64xf32> to vector<128x32xf32>
      %147 = vector.extract_strided_slice %145 {offsets = [0, 32], sizes = [128, 1], strides = [1, 1]} : vector<128x64xf32> to vector<128x1xf32>
      %c0_134 = arith.constant 0 : index
      %c0_135 = arith.constant 0 : index
      %148 = vector.load %arg15[%c0_134, %c0_135] : memref<2x128xf32, #tpu.memory_space<vmem>>, vector<2x128xf32>
      %c0_136 = arith.constant 0 : index
      %c0_137 = arith.constant 0 : index
      %149 = vector.load %arg9[%c0_136, %c0_137] : memref<128x32xf32, #tpu.memory_space<vmem>>, vector<128x32xf32>
      %150 = vector.broadcast %147 : vector<128x1xf32> to vector<128x32xf32>
      %151 = arith.mulf %150, %149 : vector<128x32xf32>
      %cst_138 = arith.constant dense<0.000000e+00> : vector<2x32xf32>
      %152 = tpu.matmul %148, %151, %cst_138 {dimension_numbers = #tpu.dot_dimension_numbers<[1], [0], [0], [1], [0, 0, 1, 1], [], []>} : vector<2x128xf32>, vector<128x32xf32>, vector<2x32xf32> -> vector<2x32xf32>
      %c0_139 = arith.constant 0 : index
      %c0_140 = arith.constant 0 : index
      %153 = vector.load %arg10[%c0_139, %c0_140] : memref<1x32xf32, #tpu.memory_space<vmem>>, vector<1x32xf32>
      %154 = vector.broadcast %153 : vector<1x32xf32> to vector<2x32xf32>
      %155 = arith.addf %152, %154 : vector<2x32xf32>
      %cst_141 = arith.constant 0.000000e+00 : f32
      %156 = vector.broadcast %cst_141 : f32 to vector<2x32xf32>
      %157 = arith.maximumf %155, %156 : vector<2x32xf32>
      %c0_142 = arith.constant 0 : index
      %c0_143 = arith.constant 0 : index
      %158 = vector.load %arg11[%c0_142, %c0_143] : memref<1x32xf32, #tpu.memory_space<vmem>>, vector<1x32xf32>
      %159 = vector.broadcast %158 : vector<1x32xf32> to vector<2x32xf32>
      %160 = arith.mulf %157, %159 : vector<2x32xf32>
      %cst_144 = arith.constant dense<0.000000e+00> : vector<2xf32>
      %161 = vector.multi_reduction <add>, %160, %cst_144 [1] : vector<2x32xf32> to vector<2xf32>
      %162 = vector.shape_cast %161 : vector<2xf32> to vector<2x1xf32>
      %c0_145 = arith.constant 0 : index
      %c0_146 = arith.constant 0 : index
      %163 = vector.load %arg12[%c0_145, %c0_146] : memref<1x1xf32, #tpu.memory_space<vmem>>, vector<1x1xf32>
      %164 = vector.broadcast %163 : vector<1x1xf32> to vector<2x1xf32>
      %165 = arith.addf %162, %164 : vector<2x1xf32>
      %166 = math.tanh %165 : vector<2x1xf32>
      %c0_147 = arith.constant 0 : index
      %c0_148 = arith.constant 0 : index
      %167 = vector.load %arg17[%c0_147, %c0_148] : memref<2x1xf32, #tpu.memory_space<vmem>>, vector<2x1xf32>
      tpu.vector_store %arg17[%c0_147, %c0_148], %166 {strides = array<i32>} : memref<2x1xf32, #tpu.memory_space<vmem>>, vector<2x1xf32>,
      %c0_149 = arith.constant 0 : index
      %c0_150 = arith.constant 0 : index
      %c0_151 = arith.constant 0 : index
      %168 = vector.load %arg13[%c0_149, %c0_150, %c0_151] : memref<7x128x32xf32, #tpu.memory_space<vmem>>, vector<1x128x32xf32>
      %169 = vector.shape_cast %168 : vector<1x128x32xf32> to vector<128x32xf32>
      %170 = arith.mulf %146, %169 : vector<128x32xf32>
      %cst_152 = arith.constant dense<0.000000e+00> : vector<128xf32>
      %171 = vector.multi_reduction <add>, %170, %cst_152 [1] : vector<128x32xf32> to vector<128xf32>
      %172 = vector.shape_cast %171 : vector<128xf32> to vector<128x1xf32>
      %c1_153 = arith.constant 1 : index
      %c0_154 = arith.constant 0 : index
      %c0_155 = arith.constant 0 : index
      %173 = vector.load %arg13[%c1_153, %c0_154, %c0_155] : memref<7x128x32xf32, #tpu.memory_space<vmem>>, vector<1x128x32xf32>
      %174 = vector.shape_cast %173 : vector<1x128x32xf32> to vector<128x32xf32>
      %175 = arith.mulf %146, %174 : vector<128x32xf32>
      %cst_156 = arith.constant dense<0.000000e+00> : vector<128xf32>
      %176 = vector.multi_reduction <add>, %175, %cst_156 [1] : vector<128x32xf32> to vector<128xf32>
      %177 = vector.shape_cast %176 : vector<128xf32> to vector<128x1xf32>
      %c2_157 = arith.constant 2 : index
      %c0_158 = arith.constant 0 : index
      %c0_159 = arith.constant 0 : index
      %178 = vector.load %arg13[%c2_157, %c0_158, %c0_159] : memref<7x128x32xf32, #tpu.memory_space<vmem>>, vector<1x128x32xf32>
      %179 = vector.shape_cast %178 : vector<1x128x32xf32> to vector<128x32xf32>
      %180 = arith.mulf %146, %179 : vector<128x32xf32>
      %cst_160 = arith.constant dense<0.000000e+00> : vector<128xf32>
      %181 = vector.multi_reduction <add>, %180, %cst_160 [1] : vector<128x32xf32> to vector<128xf32>
      %182 = vector.shape_cast %181 : vector<128xf32> to vector<128x1xf32>
      %c3_161 = arith.constant 3 : index
      %c0_162 = arith.constant 0 : index
      %c0_163 = arith.constant 0 : index
      %183 = vector.load %arg13[%c3_161, %c0_162, %c0_163] : memref<7x128x32xf32, #tpu.memory_space<vmem>>, vector<1x128x32xf32>
      %184 = vector.shape_cast %183 : vector<1x128x32xf32> to vector<128x32xf32>
      %185 = arith.mulf %146, %184 : vector<128x32xf32>
      %cst_164 = arith.constant dense<0.000000e+00> : vector<128xf32>
      %186 = vector.multi_reduction <add>, %185, %cst_164 [1] : vector<128x32xf32> to vector<128xf32>
      %187 = vector.shape_cast %186 : vector<128xf32> to vector<128x1xf32>
      %c4_165 = arith.constant 4 : index
      %c0_166 = arith.constant 0 : index
      %c0_167 = arith.constant 0 : index
      %188 = vector.load %arg13[%c4_165, %c0_166, %c0_167] : memref<7x128x32xf32, #tpu.memory_space<vmem>>, vector<1x128x32xf32>
      %189 = vector.shape_cast %188 : vector<1x128x32xf32> to vector<128x32xf32>
      %190 = arith.mulf %146, %189 : vector<128x32xf32>
      %cst_168 = arith.constant dense<0.000000e+00> : vector<128xf32>
      %191 = vector.multi_reduction <add>, %190, %cst_168 [1] : vector<128x32xf32> to vector<128xf32>
      %192 = vector.shape_cast %191 : vector<128xf32> to vector<128x1xf32>
      %c5_169 = arith.constant 5 : index
      %c0_170 = arith.constant 0 : index
      %c0_171 = arith.constant 0 : index
      %193 = vector.load %arg13[%c5_169, %c0_170, %c0_171] : memref<7x128x32xf32, #tpu.memory_space<vmem>>, vector<1x128x32xf32>
      %194 = vector.shape_cast %193 : vector<1x128x32xf32> to vector<128x32xf32>
      %195 = arith.mulf %146, %194 : vector<128x32xf32>
      %cst_172 = arith.constant dense<0.000000e+00> : vector<128xf32>
      %196 = vector.multi_reduction <add>, %195, %cst_172 [1] : vector<128x32xf32> to vector<128xf32>
      %197 = vector.shape_cast %196 : vector<128xf32> to vector<128x1xf32>
      %c6_173 = arith.constant 6 : index
      %c0_174 = arith.constant 0 : index
      %c0_175 = arith.constant 0 : index
      %198 = vector.load %arg13[%c6_173, %c0_174, %c0_175] : memref<7x128x32xf32, #tpu.memory_space<vmem>>, vector<1x128x32xf32>
      %199 = vector.shape_cast %198 : vector<1x128x32xf32> to vector<128x32xf32>
      %200 = arith.mulf %146, %199 : vector<128x32xf32>
      %cst_176 = arith.constant dense<0.000000e+00> : vector<128xf32>
      %201 = vector.multi_reduction <add>, %200, %cst_176 [1] : vector<128x32xf32> to vector<128xf32>
      %202 = vector.shape_cast %201 : vector<128xf32> to vector<128x1xf32>
      %203 = tpu.concatenate %172, %177, %182, %187, %192, %197, %202 in 1 : vector<128x1xf32>, vector<128x1xf32>, vector<128x1xf32>, vector<128x1xf32>, vector<128x1xf32>, vector<128x1xf32>, vector<128x1xf32> -> vector<128x7xf32>
      %cst_177 = arith.constant dense<0.000000e+00> : vector<2x7xf32>
      %204 = tpu.matmul %148, %203, %cst_177 {dimension_numbers = #tpu.dot_dimension_numbers<[1], [0], [0], [1], [0, 0, 1, 1], [], []>} : vector<2x128xf32>, vector<128x7xf32>, vector<2x7xf32> -> vector<2x7xf32>
      %c0_178 = arith.constant 0 : index
      %c0_179 = arith.constant 0 : index
      %205 = vector.load %arg14[%c0_178, %c0_179] : memref<1x7xf32, #tpu.memory_space<vmem>>, vector<1x7xf32>
      %206 = vector.broadcast %205 : vector<1x7xf32> to vector<2x7xf32>
      %207 = arith.addf %204, %206 : vector<2x7xf32>
      %cst_180 = arith.constant dense<0xFF800000> : vector<2xf32>
      %208 = vector.multi_reduction <maximumf>, %207, %cst_180 [1] : vector<2x7xf32> to vector<2xf32>
      %209 = vector.shape_cast %208 : vector<2xf32> to vector<2x1xf32>
      %210 = vector.broadcast %209 : vector<2x1xf32> to vector<2x7xf32>
      %211 = arith.subf %207, %210 : vector<2x7xf32>
      %212 = math.exp %211 : vector<2x7xf32>
      %cst_181 = arith.constant dense<0.000000e+00> : vector<2xf32>
      %213 = vector.multi_reduction <add>, %212, %cst_181 [1] : vector<2x7xf32> to vector<2xf32>
      %214 = vector.shape_cast %213 : vector<2xf32> to vector<2x1xf32>
      %215 = vector.broadcast %214 : vector<2x1xf32> to vector<2x7xf32>
      %216 = arith.divf %212, %215 : vector<2x7xf32>
      %c0_182 = arith.constant 0 : index
      %c0_183 = arith.constant 0 : index
      %217 = vector.load %arg16[%c0_182, %c0_183] : memref<2x7xf32, #tpu.memory_space<vmem>>, vector<2x7xf32>
      tpu.vector_store %arg16[%c0_182, %c0_183], %216 {strides = array<i32>} : memref<2x7xf32, #tpu.memory_space<vmem>>, vector<2x7xf32>,
    } else {
    }
    return
  }
  func.func @transform_0(%arg0: i32) -> (i32, i32) {
    %c0_i32 = arith.constant 0 : i32
    %c0_i32_0 = arith.constant 0 : i32
    %c0_i32_1 = arith.constant 0 : i32
    return %c0_i32, %c0_i32_0 : i32, i32
  }
  func.func @transform_1(%arg0: i32) -> (i32, i32) {
    %c0_i32 = arith.constant 0 : i32
    %c0_i32_0 = arith.constant 0 : i32
    %c0_i32_1 = arith.constant 0 : i32
    return %c0_i32, %c0_i32_0 : i32, i32
  }
  func.func @transform_2(%arg0: i32) -> (i32, i32) {
    %c0_i32 = arith.constant 0 : i32
    %c0_i32_0 = arith.constant 0 : i32
    %c0_i32_1 = arith.constant 0 : i32
    return %c0_i32, %c0_i32_0 : i32, i32
  }
  func.func @transform_3(%arg0: i32) -> (i32, i32) {
    %c0_i32 = arith.constant 0 : i32
    %c0_i32_0 = arith.constant 0 : i32
    %c0_i32_1 = arith.constant 0 : i32
    return %c0_i32, %c0_i32_0 : i32, i32
  }
  func.func @transform_4(%arg0: i32) -> (i32, i32, i32, i32) {
    %c0_i32 = arith.constant 0 : i32
    %c0_i32_0 = arith.constant 0 : i32
    %c0_i32_1 = arith.constant 0 : i32
    %c0_i32_2 = arith.constant 0 : i32
    return %arg0, %c0_i32, %c0_i32_0, %c0_i32_1 : i32, i32, i32, i32
  }
  func.func @transform_5(%arg0: i32) -> (i32, i32, i32) {
    %c0_i32 = arith.constant 0 : i32
    %c0_i32_0 = arith.constant 0 : i32
    %c0_i32_1 = arith.constant 0 : i32
    return %arg0, %c0_i32, %c0_i32_0 : i32, i32, i32
  }
  func.func @transform_6(%arg0: i32) -> (i32, i32) {
    %c0_i32 = arith.constant 0 : i32
    %c0_i32_0 = arith.constant 0 : i32
    %c0_i32_1 = arith.constant 0 : i32
    return %c0_i32, %c0_i32_0 : i32, i32
  }
  func.func @transform_7(%arg0: i32) -> (i32, i32) {
    %c0_i32 = arith.constant 0 : i32
    %c0_i32_0 = arith.constant 0 : i32
    %c0_i32_1 = arith.constant 0 : i32
    return %c0_i32, %c0_i32_0 : i32, i32
  }
  func.func @transform_8(%arg0: i32) -> (i32, i32) {
    %c0_i32 = arith.constant 0 : i32
    %c0_i32_0 = arith.constant 0 : i32
    %c0_i32_1 = arith.constant 0 : i32
    return %c0_i32, %c0_i32_0 : i32, i32
  }
  func.func @transform_9(%arg0: i32) -> (i32, i32) {
    %c0_i32 = arith.constant 0 : i32
    %c0_i32_0 = arith.constant 0 : i32
    %c0_i32_1 = arith.constant 0 : i32
    return %c0_i32, %c0_i32_0 : i32, i32
  }
  func.func @transform_10(%arg0: i32) -> (i32, i32) {
    %c0_i32 = arith.constant 0 : i32
    %c0_i32_0 = arith.constant 0 : i32
    %c0_i32_1 = arith.constant 0 : i32
    return %c0_i32, %c0_i32_0 : i32, i32
  }
  func.func @transform_11(%arg0: i32) -> (i32, i32) {
    %c0_i32 = arith.constant 0 : i32
    %c0_i32_0 = arith.constant 0 : i32
    %c0_i32_1 = arith.constant 0 : i32
    return %c0_i32, %c0_i32_0 : i32, i32
  }
  func.func @transform_12(%arg0: i32) -> (i32, i32, i32) {
    %c0_i32 = arith.constant 0 : i32
    %c0_i32_0 = arith.constant 0 : i32
    %c0_i32_1 = arith.constant 0 : i32
    %c0_i32_2 = arith.constant 0 : i32
    return %c0_i32, %c0_i32_0, %c0_i32_1 : i32, i32, i32
  }
  func.func @transform_13(%arg0: i32) -> (i32, i32) {
    %c0_i32 = arith.constant 0 : i32
    %c0_i32_0 = arith.constant 0 : i32
    %c0_i32_1 = arith.constant 0 : i32
    return %c0_i32, %c0_i32_0 : i32, i32
  }
  func.func @transform_14(%arg0: i32) -> (i32, i32) {
    %c0_i32 = arith.constant 0 : i32
    %c0_i32_0 = arith.constant 0 : i32
    %c0_i32_1 = arith.constant 0 : i32
    return %c0_i32, %c0_i32_0 : i32, i32
  }
  func.func @transform_15(%arg0: i32) -> (i32, i32) {
    %c0_i32 = arith.constant 0 : i32
    %c0_i32_0 = arith.constant 0 : i32
    %c0_i32_1 = arith.constant 0 : i32
    return %c0_i32, %c0_i32_0 : i32, i32
  }
  func.func @transform_16(%arg0: i32) -> (i32, i32) {
    %c0_i32 = arith.constant 0 : i32
    %c0_i32_0 = arith.constant 0 : i32
    %c0_i32_1 = arith.constant 0 : i32
    return %c0_i32, %c0_i32_0 : i32, i32
  }
}

</mosaic_0001>

<bundles_post_ra>
// kernel: c4zero_forward.1
= control target key start
LH: loop header
LB: loop body
LE: loop exit
PB: predicated region body
PF: predicated region fallthrough
CT: control target
= control target key end

     0   :  { %s11205_s0 = inlined_call_operand.vmem [shape: f32[128,16], index: 0, kind: input, shape index: {}]   ;;  %s11206_s1 = inlined_call_operand.hbm [shape: f32[16,128], index: 1, kind: input, shape index: {}]   ;;  %s11207_s2 = inlined_call_operand.hbm [shape: f32[2,128], index: 2, kind: input, shape index: {}]   ;;  %s11208_s3 = inlined_call_operand.hbm [shape: f32[128,128], index: 3, kind: input, shape index: {}]   ;;  %s11209_s4 = inlined_call_operand.hbm [shape: bf16[19,18,128,128], index: 4, kind: input, shape index: {}]   ;;  %s11210_s5 = inlined_call_operand.hbm [shape: f32[19,4,128], index: 5, kind: input, shape index: {}]   ;;  %s11211_s6 = inlined_call_operand.vmem [shape: f32[128,64], index: 6, kind: input, shape index: {}]   ;;  %s11212_s7 = inlined_call_operand.hbm [shape: f32[1,64], index: 7, kind: input, shape index: {}]   ;;  %s11213_s8 = inlined_call_operand.vmem [shape: f32[128,32], index: 8, kind: input, shape index: {}]   ;;  %s11214_s9 = inlined_call_operand.hbm [shape: f32[1,32], index: 9, kind: input, shape index: {}]   ;;  %s11215_s10 = inlined_call_operand.hbm [shape: f32[1,32], index: 10, kind: input, shape index: {}]   ;;  %s11216_s11 = inlined_call_operand.<no memory space> [shape: f32[1,1], index: 11, kind: input, shape index: {}]   ;;  %s11217_s12 = inlined_call_operand.vmem [shape: f32[7,128,32], index: 12, kind: input, shape index: {}]   ;;  %s11218_s13 = inlined_call_operand.hbm [shape: f32[1,7], index: 13, kind: input, shape index: {}]   ;;  %s11219_s14 = inlined_call_operand.hbm [shape: f32[2,128], index: 14, kind: input, shape index: {}]   ;;  %s11220_s15 = inlined_call_operand.hbm [shape: f32[2,7], index: 15, kind: output, shape index: {0}]   ;;  %s11221_s16 = inlined_call_operand.vmem [shape: f32[2,1], index: 16, kind: output, shape index: {1}]  }
   0x1   :  { %11283 = sst [smem:[#allocation57_spill]] %s11205_s0  ;;  %v22_v0 = vstv %s11216_s11 }
   0x2   :  { %11284 = sst [smem:[#allocation58_spill]] %s11207_s2  ;;  %23 = vst [vmem:[#allocation4] sm:$0x1] %v22_v0 }
   0x3   :  { %11285 = sst [smem:[#allocation59_spill]] %s11209_s4 }
   0x4   :  { %11286 = sst [smem:[#allocation60_spill]] %s11211_s6 }
   0x5   :  { %11287 = sst [smem:[#allocation61_spill]] %s11212_s7 }
   0x6   :  { %11288 = sst [smem:[#allocation62_spill]] %s11213_s8 }
   0x7   :  { %11289 = sst [smem:[#allocation63_spill]] %s11215_s10 }
   0x8   :  { %11290 = sst [smem:[#allocation64_spill]] %s11217_s12 }
   0x9   :  { %11291 = sst [smem:[#allocation65_spill]] %s11220_s15 }
   0xa   :  { %11292 = sst [smem:[#allocation66_spill]] %s11221_s16 }
   0xb   :  { %24 = vsyncpa [#allocation6], 0 }
   0xc   :  { %25 = vsyncpa [#allocation9], 0 }
   0xd   :  { %26 = vsyncpa [#allocation12], 0 }
   0xe   :  { %28 = vsyncpa [#allocation12 + $0x1], 0 }
   0xf   :  { %29 = vsyncpa [#allocation15], 0 }
  0x10   :  { %30 = vsyncpa [#allocation18], 0 }
  0x11   :  { %31 = vsyncpa [#allocation21], 0 }
  0x12   :  { %32 = vsyncpa [#allocation7], 0  ;;  %s8908_s23 = smov 0   ;;  %s8910_s24 = smov 0  }
  0x13   :  { %s8912_s25 = smov 0   ;;  %s8914_s26 = smov 0  }
  0x14 LB: > { %s8800_s11 = smov [#allocation8]   ;;  %s8929_s28 = sadd.s32 4294967295, %s8798_s26   ;;  %s8798_s26 = sphi %s8914_s26, %s11417_s26   ;;  %s8794_s25 = sphi %s8912_s25, %s11421_s25   ;;  %s8790_s24 = sphi %s8910_s24, %s11420_s24   ;;  %s8786_s23 = sphi %s8908_s23, %s11419_s23  }
  0x15   : > { %s439_s27 = sshll.u32 %s8800_s11, 4  ;;  %p6106_p0 = scmp.ge.s32.totalorder %s8798_s26, 1  ;;  %s440_s27 = int_to_ptr.vmem [resolvable:$true] %s439_s27 }
  0x16   : > { %p11224_p1 = scmp.eq.s32.totalorder %s8929_s28, 0  ;;  %p410_p2 = scmp.lt.s32.totalorder %s8798_s26, 20 }
  0x17   : > { %s8801_s30 = smov [#allocation14]   ;;  %s8802_s17 = smov [#allocation17]  }
  0x18   : > { %p8935_p4 = pnand %p6106_p0, %p410_p2  ;;  %s466_s0 = sshll.u32 %s8801_s30, 4  ;;  %s8941_s0 = int_to_ptr.vmem [resolvable:$true] %s466_s0 }
  0x19   : > { %s491_s18 = sshll.u32 %s8802_s17, 4  ;;  %s11295_s2 = sld [smem:[#allocation58_spill]]  ;;  %s8949_s18 = int_to_ptr.vmem [resolvable:$true] %s491_s18 }
  0x1a   : > { %s11293_s29 = scalar_select %p8935_p4, 1, 0 }
  0x1b   : > { %p8161_p5 = pneg %p8935_p4 }
  0x1d   : > { %p8945_p6 = pnand %p8161_p5, %p11224_p1 }
  0x1f   : > { %s11294_s19 = scalar_select %p8945_p6, 1, 0 }
  0x20   : > { %s8430_s22 = scalar_lea.hbm %s11295_s2, 32  ;;  %p8959_p8 = pneg %p8945_p6 }
  0x21   : > { %p8431_p7 = scmp.ne.s32.totalorder %s11295_s2, %s8430_s22  ;;  %p8437_p11 = scmp.lt.u32.totalorder %s8430_s22, %s11295_s2 }
  0x23   : > { %p8433_p9 = pnand %p8959_p8, %p8431_p7 }
  0x25   : > { %p8434_p10 = pneg %p8433_p9 }
  0x27   : > { %p8439_p12 = pnand %p8437_p11, %p8434_p10 }
  0x29   : > { %8442 = shalt.err (!%p8439_p12)
}
  0x2a   : > { %s8443_s20 = scalar_lea.vmem %s440_s27, 32  ;;  %p8451_p5 = scmp.lt.s32.totalorder %s440_s27, %s440_s27 }
  0x2b   : > { %p8444_p13 = scmp.ne.s32.totalorder %s440_s27, %s8443_s20  ;;  %p8452_p3 = scmp.lt.s32.totalorder %s8443_s20, %s8443_s20 }
  0x2d   : > { %p8446_p0 = pnand %p8444_p13, %p8959_p8  ;;  %p8453_p1 = por %p8452_p3, %p8451_p5 }
  0x2f   : > { %p8447_p2 = pneg %p8446_p0 }
  0x31   : > { %p8454_p4 = pnand %p8453_p1, %p8447_p2 }
  0x33   : > { %8457 = shalt.err (!%p8454_p4)
}
  0x34   : > { %8167 = dma.hbm_to_vmem [thread:$0]  (!%p8945_p6), %s11295_s2, 32, %s440_s27, [#allocation9]  }
  0x35   : > { %s11297_s7 = sld [smem:[#allocation61_spill]] }
  0x3b   : > { %s8458_s11 = scalar_lea.hbm %s11297_s7, 16 }
  0x3c   : > { %p8459_p7 = scmp.ne.s32.totalorder %s11297_s7, %s8458_s11  ;;  %p8465_p1 = scmp.lt.u32.totalorder %s8458_s11, %s11297_s7 }
  0x3e   : > { %p8461_p9 = pnand %p8459_p7, %p8959_p8 }
  0x40   : > { %p8462_p3 = pneg %p8461_p9 }
  0x42   : > { %p8467_p4 = pnand %p8465_p1, %p8462_p3 }
  0x44   : > { %8470 = shalt.err (!%p8467_p4)
}
  0x45   : > { %s8471_s27 = scalar_lea.vmem %s8941_s0, 16  ;;  %s8478_s8 = scalar_lea.vmem %s8941_s0, 32 }
  0x46   : > { %p8472_p10 = scmp.ne.s32.totalorder %s8941_s0, %s8471_s27  ;;  %p8479_p13 = scmp.lt.s32.totalorder %s8941_s0, %s8941_s0 }
  0x47   : > { %p8480_p0 = scmp.lt.s32.totalorder %s8478_s8, %s8471_s27 }
  0x48   : > { %p8474_p11 = pnand %p8472_p10, %p8959_p8 }
  0x49   : > { %p8481_p2 = por %p8480_p0, %p8479_p13 }
  0x4a   : > { %p8475_p12 = pneg %p8474_p11 }
  0x4c   : > { %p8482_p5 = pnand %p8481_p2, %p8475_p12 }
  0x4e   : > { %8485 = shalt.err (!%p8482_p5)
}
  0x4f   : > { %8173 = dma.hbm_to_vmem [thread:$0]  (!%p8945_p6), %s11297_s7, 16, %s8941_s0, [#allocation15]  }
  0x50   : > { %s11298_s10 = sld [smem:[#allocation63_spill]] }
  0x56   : > { %s8486_s22 = scalar_lea.hbm %s11298_s10, 16 }
  0x57   : > { %p8487_p7 = scmp.ne.s32.totalorder %s11298_s10, %s8486_s22  ;;  %p8493_p1 = scmp.lt.u32.totalorder %s8486_s22, %s11298_s10 }
  0x59   : > { %p8489_p9 = pnand %p8487_p7, %p8959_p8 }
  0x5b   : > { %p8490_p3 = pneg %p8489_p9 }
  0x5d   : > { %p8495_p4 = pnand %p8493_p1, %p8490_p3 }
  0x5f   : > { %8498 = shalt.err (!%p8495_p4)
}
  0x60   : > { %s8499_s0 = scalar_lea.vmem %s8949_s18, 16  ;;  %s8506_s8 = scalar_lea.vmem %s8949_s18, 32 }
  0x61   : > { %p8500_p10 = scmp.ne.s32.totalorder %s8949_s18, %s8499_s0  ;;  %p8507_p13 = scmp.lt.s32.totalorder %s8949_s18, %s8949_s18 }
  0x62   : > { %p8508_p0 = scmp.lt.s32.totalorder %s8506_s8, %s8499_s0 }
  0x63   : > { %p8502_p11 = pnand %p8500_p10, %p8959_p8 }
  0x64   : > { %p8509_p2 = por %p8508_p0, %p8507_p13 }
  0x65   : > { %p8503_p12 = pneg %p8502_p11 }
  0x67   : > { %p8510_p5 = pnand %p8509_p2, %p8503_p12 }
  0x69   : > { %8513 = shalt.err (!%p8510_p5)
}
  0x6a   : > { %8179 = dma.hbm_to_vmem [thread:$0]  (!%p8945_p6), %s11298_s10, 16, %s8949_s18, [#allocation18]  }
  0x6b   : > { %s9024_s21 = sadd.s32 1, %s8798_s26   ;;  %s129_s22 = sadd.s32 1, %s8794_s25 }
  0x6c   : > { %11299 = sst [smem:[#allocation30_spill]] %s9024_s21  ;;  %s126_s16 = ssub.s32 %s8798_s26, %s9024_s21 }
  0x6d   : > { %p127_p7 = scmp.eq.s32.totalorder %s126_s16, 0  ;;  %p136_p9 = scmp.ne.s32.totalorder %s8794_s25, %s8790_s24 }
  0x6e   : > { %p137_p3 = scmp.eq.s32.totalorder %s8798_s26, 0  ;;  %p142_p1 = scmp.ne.s32.totalorder %s8790_s24, %s8786_s23 }
  0x6f   : > { %s9035_s11 = scalar_select %p127_p7, %s8794_s25, %s129_s22  }
  0x70   : > { %p138_p4 = por %p137_p3, %p136_p9  ;;  %p11301_p10 = scmp.eq.s32.totalorder %s8929_s28, 0 }
  0x71   : > { %11300 = sst [smem:[#allocation31_spill]] %s9035_s11  ;;  %p8201_p12 = scmp.lt.s32.totalorder %s8798_s26, 19 }
  0x72   : > { %p9039_p11 = por %p11301_p10, %p142_p1  ;;  %s530_s18 = sand.u32 1, %s8798_s26  }
  0x73   : > { %s11228_s20 = sand.u32 1, %s8794_s25   ;;  %p9048_p13 = pnand %p8201_p12, %p138_p4 }
  0x74   : > { %s11302_s17 = scalar_select %p9039_p11, 1, 0 }
  0x75   : > { %s8118_s27 = smul.u32 1152, %s11228_s20  ;;  %s11305_s4 = sld [smem:[#allocation59_spill]] }
  0x76   : > { %11303 = sst [smem:[#allocation32_spill]] %s11302_s17  ;;  %s8119_s23 = smul.u32 18432, %s8798_s26 }
  0x77   : > { %s11304_s0 = scalar_select %p9048_p13, 1, 0 }
  0x78   : > { %s534_s16 = scalar_lea.vmem [#allocation11], %s8118_s27  ;;  %s9060_s20 = scalar_lea.sflag [#allocation12], %s530_s18 }
  0x79   : > { %s541_s22 = sshll.u32 %s534_s16, 4  ;;  %p11232_p2 = pneg %p9048_p13  ;;  %s9058_s22 = int_to_ptr.vmem [resolvable:$true] %s541_s22 }
  0x7b   : > { %s9056_s15 = scalar_lea.hbm %s11305_s4, %s8119_s23  ;;  %s8519_s12 = scalar_lea.hbm %s11305_s4, 350208 }
  0x7c   : > { %s8514_s2 = scalar_lea.hbm %s9056_s15, 18432  ;;  %p8520_p9 = scmp.lt.u32.totalorder %s9056_s15, %s11305_s4 }
  0x7d   : > { %p8515_p0 = scmp.ne.s32.totalorder %s9056_s15, %s8514_s2  ;;  %p8521_p3 = scmp.lt.u32.totalorder %s8519_s12, %s8514_s2 }
  0x7e   : > { %p8523_p4 = scmp.lt.u32.totalorder %s8514_s2, %s9056_s15 }
  0x7f   : > { %p8517_p5 = pnand %p11232_p2, %p8515_p0  ;;  %p8522_p1 = por %p8521_p3, %p8520_p9 }
  0x81   : > { %p8518_p7 = pneg %p8517_p5  ;;  %p8524_p10 = por %p8523_p4, %p8522_p1 }
  0x83   : > { %p8525_p12 = pnand %p8524_p10, %p8518_p7 }
  0x85   : > { %8528 = shalt.err (!%p8525_p12)
}
  0x86   : > { %s8529_s18 = scalar_lea.vmem %s9058_s22, 18432  ;;  %s8803_s27 = smov [#allocation11]  }
  0x87   : > { %p8530_p0 = scmp.ne.s32.totalorder %s9058_s22, %s8529_s18  ;;  %s8534_s16 = sshll.u32 %s8803_s27, 4  ;;  %s8535_s16 = int_to_ptr.vmem [resolvable:$false] %s8534_s16 }
  0x88   : > { %s8536_s7 = scalar_lea.vmem %s8535_s16, 36864  ;;  %p8537_p6 = scmp.lt.s32.totalorder %s9058_s22, %s8535_s16 }
  0x89   : > { %p8532_p5 = pnand %p8530_p0, %p11232_p2  ;;  %p8538_p9 = scmp.lt.s32.totalorder %s8536_s7, %s8529_s18 }
  0x8b   : > { %p8533_p11 = pneg %p8532_p5  ;;  %p8539_p3 = por %p8538_p9, %p8537_p6 }
  0x8d   : > { %p8540_p1 = pnand %p8539_p3, %p8533_p11 }
  0x8f   : > { %8543 = shalt.err (!%p8540_p1)
}
  0x90   : > { %s8804_s2 = smov 64   ;;  %s8805_s10 = smov 4  }
  0x91   : > { %8189 = dma.hbm_to_vmem [thread:$0]  (!%p9048_p13), %s9056_s15, 18432, %s9058_s22, %s9060_s20, %s8804_s2, %s8804_s2, %s8805_s10  }
  0x92   : > { %s8806_s23 = smov [#allocation5]   ;;  %s8544_s16 = scalar_lea.hbm %s11206_s1, 256 }
  0x93   : > { %s425_s8 = sshll.u32 %s8806_s23, 4  ;;  %p8545_p6 = scmp.ne.s32.totalorder %s11206_s1, %s8544_s16  ;;  %s426_s8 = int_to_ptr.vmem [resolvable:$true] %s425_s8 }
  0x94   : > { %p8551_p4 = scmp.lt.u32.totalorder %s8544_s16, %s11206_s1 }
  0x95   : > { %p8547_p11 = pnand %p8545_p6, %p8959_p8 }
  0x97   : > { %p8548_p7 = pneg %p8547_p11 }
  0x99   : > { %p8553_p10 = pnand %p8551_p4, %p8548_p7 }
  0x9b   : > { %8556 = shalt.err (!%p8553_p10)
}
  0x9c   : > { %s8557_s15 = scalar_lea.vmem %s426_s8, 256  ;;  %p8565_p9 = scmp.lt.s32.totalorder %s426_s8, %s426_s8 }
  0x9d   : > { %p8558_p12 = scmp.ne.s32.totalorder %s426_s8, %s8557_s15  ;;  %p8566_p3 = scmp.lt.s32.totalorder %s8557_s15, %s8557_s15 }
  0x9f   : > { %p8560_p0 = pnand %p8558_p12, %p8959_p8  ;;  %p8567_p1 = por %p8566_p3, %p8565_p9 }
  0xa1   : > { %p8561_p5 = pneg %p8560_p0 }
  0xa3   : > { %p8568_p2 = pnand %p8567_p1, %p8561_p5 }
  0xa5   : > { %8571 = shalt.err (!%p8568_p2)
}
  0xa6   : > { %s8807_s22 = smov 128   ;;  %s8808_s2 = smov 8  }
  0xa7   : > { %p11306_p6 = scmp.ne.s32.totalorder %s11294_s19, 0  ;;  %s8809_s10 = smov [#allocation10]  }
  0xa8   : > { %s449_s23 = sshll.u32 %s8809_s10, 4  ;;  %s8810_s12 = smov [#allocation16]   ;;  %s450_s23 = int_to_ptr.vmem [resolvable:$true] %s449_s23 }
  0xa9   : > { %8164 = dma.hbm_to_vmem [thread:$0]  (!%p11306_p6), %s11206_s1, 256, %s426_s8, [#allocation6], %s8807_s22, %s8807_s22, %s8808_s2  }
  0xaa   : > { %s480_s27 = sshll.u32 %s8810_s12, 4  ;;  %s8572_s7 = scalar_lea.hbm %s11208_s3, 2048  ;;  %s481_s27 = int_to_ptr.vmem [resolvable:$true] %s480_s27 }
  0xab   : > { %p8573_p2 = scmp.ne.s32.totalorder %s11208_s3, %s8572_s7  ;;  %p8579_p4 = scmp.lt.u32.totalorder %s8572_s7, %s11208_s3 }
  0xad   : > { %p8575_p11 = pnand %p8573_p2, %p8959_p8 }
  0xaf   : > { %p8576_p7 = pneg %p8575_p11 }
  0xb1   : > { %p8581_p10 = pnand %p8579_p4, %p8576_p7 }
  0xb3   : > { %8584 = shalt.err (!%p8581_p10)
}
  0xb4   : > { %s8585_s8 = scalar_lea.vmem %s450_s23, 2048  ;;  %p8593_p9 = scmp.lt.s32.totalorder %s450_s23, %s450_s23 }
  0xb5   : > { %p8586_p12 = scmp.ne.s32.totalorder %s450_s23, %s8585_s8  ;;  %p8594_p3 = scmp.lt.s32.totalorder %s8585_s8, %s8585_s8 }
  0xb7   : > { %p8588_p0 = pnand %p8586_p12, %p8959_p8  ;;  %p8595_p1 = por %p8594_p3, %p8593_p9 }
  0xb9   : > { %p8589_p5 = pneg %p8588_p0 }
  0xbb   : > { %p8596_p13 = pnand %p8595_p1, %p8589_p5 }
  0xbd   : > { %8599 = shalt.err (!%p8596_p13)
}
  0xbe   : > { %8170 = dma.hbm_to_vmem [thread:$0]  (!%p11306_p6), %s11208_s3, 2048, %s450_s23, [#allocation9], %s8807_s22, %s8807_s22, %s8808_s2  }
  0xbf   : > { %s8600_s11 = scalar_lea.hbm %s11214_s9, 16 }
  0xc0   : > { %p8601_p2 = scmp.ne.s32.totalorder %s11214_s9, %s8600_s11  ;;  %p8607_p13 = scmp.lt.u32.totalorder %s8600_s11, %s11214_s9 }
  0xc2   : > { %p8603_p11 = pnand %p8601_p2, %p8959_p8 }
  0xc4   : > { %p8604_p7 = pneg %p8603_p11 }
  0xc6   : > { %p8609_p4 = pnand %p8607_p13, %p8604_p7 }
  0xc8   : > { %8612 = shalt.err (!%p8609_p4)
}
  0xc9   : > { %s8613_s7 = scalar_lea.vmem %s481_s27, 16  ;;  %s8620_s22 = scalar_lea.vmem %s481_s27, 32 }
  0xca   : > { %p8614_p10 = scmp.ne.s32.totalorder %s481_s27, %s8613_s7  ;;  %p8621_p5 = scmp.lt.s32.totalorder %s481_s27, %s481_s27 }
  0xcb   : > { %p8622_p9 = scmp.lt.s32.totalorder %s8620_s22, %s8613_s7 }
  0xcc   : > { %p8616_p12 = pnand %p8614_p10, %p8959_p8 }
  0xcd   : > { %p8623_p3 = por %p8622_p9, %p8621_p5 }
  0xce   : > { %p8617_p0 = pneg %p8616_p12 }
  0xd0   : > { %p8624_p1 = pnand %p8623_p3, %p8617_p0 }
  0xd2   : > { %8627 = shalt.err (!%p8624_p1)
}
  0xd3   : > { %8176 = dma.hbm_to_vmem [thread:$0]  (!%p11306_p6), %s11214_s9, 16, %s481_s27, [#allocation15]  }
  0xd4   : > { %s8811_s15 = smov [#allocation19]   ;;  %s8812_s21 = smov [#allocation20]  }
  0xd5   : > { %s508_s8 = sshll.u32 %s8811_s15, 4  ;;  %s519_s4 = sshll.u32 %s8812_s21, 4  ;;  %s509_s8 = int_to_ptr.vmem [resolvable:$true] %s508_s8  ;;  %s520_s4 = int_to_ptr.vmem [resolvable:$true] %s519_s4 }
  0xd6   : > { %s8628_s11 = scalar_lea.hbm %s11218_s13, 16 }
  0xd7   : > { %p8629_p2 = scmp.ne.s32.totalorder %s11218_s13, %s8628_s11  ;;  %p8635_p13 = scmp.lt.u32.totalorder %s8628_s11, %s11218_s13 }
  0xd9   : > { %p8631_p11 = pnand %p8629_p2, %p8959_p8 }
  0xdb   : > { %p8632_p7 = pneg %p8631_p11 }
  0xdd   : > { %p8637_p4 = pnand %p8635_p13, %p8632_p7 }
  0xdf   : > { %8640 = shalt.err (!%p8637_p4)
}
  0xe0   : > { %s8641_s27 = scalar_lea.vmem %s509_s8, 16  ;;  %s8648_s7 = scalar_lea.vmem %s509_s8, 32 }
  0xe1   : > { %p8642_p10 = scmp.ne.s32.totalorder %s509_s8, %s8641_s27  ;;  %p8649_p5 = scmp.lt.s32.totalorder %s509_s8, %s509_s8 }
  0xe2   : > { %p8650_p9 = scmp.lt.s32.totalorder %s8648_s7, %s8641_s27 }
  0xe3   : > { %p8644_p12 = pnand %p8642_p10, %p8959_p8 }
  0xe4   : > { %p8651_p3 = por %p8650_p9, %p8649_p5 }
  0xe5   : > { %p8645_p0 = pneg %p8644_p12 }
  0xe7   : > { %p8652_p1 = pnand %p8651_p3, %p8645_p0 }
  0xe9   : > { %8655 = shalt.err (!%p8652_p1)
}
  0xea   : > { %8182 = dma.hbm_to_vmem [thread:$0]  (!%p11306_p6), %s11218_s13, 16, %s509_s8, [#allocation18]  }
  0xeb   : > { %s11307_s23 = sand.u32 1, %s8794_s25   ;;  %s8656_s17 = scalar_lea.hbm %s11219_s14, 32 }
  0xec   : > { %s6117_s15 = sshll.u32 %s11307_s23, 2  ;;  %p8657_p2 = scmp.ne.s32.totalorder %s11219_s14, %s8656_s17 }
  0xed   : > { %p8663_p13 = scmp.lt.u32.totalorder %s8656_s17, %s11219_s14 }
  0xee   : > { %p8659_p11 = pnand %p8657_p2, %p8959_p8 }
  0xf0   : > { %p8660_p7 = pneg %p8659_p11 }
  0xf2   : > { %p8665_p4 = pnand %p8663_p13, %p8660_p7 }
  0xf4   : > { %8668 = shalt.err (!%p8665_p4)
}
  0xf5   : > { %s8669_s8 = scalar_lea.vmem %s520_s4, 32  ;;  %p8677_p5 = scmp.lt.s32.totalorder %s520_s4, %s520_s4 }
  0xf6   : > { %p8670_p10 = scmp.ne.s32.totalorder %s520_s4, %s8669_s8  ;;  %p8678_p9 = scmp.lt.s32.totalorder %s8669_s8, %s8669_s8 }
  0xf8   : > { %p8672_p12 = pnand %p8670_p10, %p8959_p8  ;;  %p8679_p3 = por %p8678_p9, %p8677_p5 }
  0xfa   : > { %p8673_p0 = pneg %p8672_p12 }
  0xfc   : > { %p8680_p1 = pnand %p8679_p3, %p8673_p0 }
  0xfe   : > { %8683 = shalt.err (!%p8680_p1)
}
  0xff   : > { %8185 = dma.hbm_to_vmem [thread:$0]  (!%p11306_p6), %s11219_s14, 32, %s520_s4, [#allocation21]  }
 0x100   : > { %s6118_s7 = sshll.u32 %s8798_s26, 6  ;;  %s555_s23 = scalar_lea.vmem [#allocation13], %s6117_s15 }
 0x101   : > { %s9184_s30 = scalar_lea.hbm %s11210_s5, %s6118_s7  ;;  %s562_s21 = sshll.u32 %s555_s23, 4  ;;  %s563_s21 = int_to_ptr.vmem [resolvable:$true] %s562_s21 }
 0x102   : > { %s8684_s19 = scalar_lea.hbm %s9184_s30, 64  ;;  %p11308_p2 = scmp.ne.s32.totalorder %s11304_s0, 0 }
 0x103   : > { %p8685_p8 = scmp.ne.s32.totalorder %s9184_s30, %s8684_s19  ;;  %s8689_s6 = scalar_lea.hbm %s11210_s5, 1216 }
 0x104   : > { %p11309_p11 = pneg %p11308_p2  ;;  %p8690_p6 = scmp.lt.u32.totalorder %s9184_s30, %s11210_s5 }
 0x105   : > { %p8691_p4 = scmp.lt.u32.totalorder %s8689_s6, %s8684_s19  ;;  %p8693_p12 = scmp.lt.u32.totalorder %s8684_s19, %s9184_s30 }
 0x106   : > { %p8687_p7 = pnand %p8685_p8, %p11309_p11 }
 0x107   : > { %p8692_p10 = por %p8691_p4, %p8690_p6 }
 0x108   : > { %p8688_p13 = pneg %p8687_p7 }
 0x109   : > { %p8694_p0 = por %p8693_p12, %p8692_p10 }
 0x10b   : > { %p8695_p5 = pnand %p8694_p0, %p8688_p13 }
 0x10d   : > { %8698 = shalt.err (!%p8695_p5)
}
 0x10e   : > { %s8699_s15 = scalar_lea.vmem %s563_s21, 64  ;;  %p11310_p3 = pmov %p11309_p11 }
 0x10f   : > { %p8700_p9 = scmp.ne.s32.totalorder %s563_s21, %s8699_s15  ;;  %s8813_s10 = smov [#allocation13]  }
 0x110   : > { %s8704_s12 = sshll.u32 %s8813_s10, 4  ;;  %s8705_s12 = int_to_ptr.vmem [resolvable:$false] %s8704_s12 }
 0x111   : > { %p8702_p1 = pnand %p8700_p9, %p11310_p3  ;;  %s8706_s16 = scalar_lea.vmem %s8705_s12, 128 }
 0x112   : > { %p8707_p11 = scmp.lt.s32.totalorder %s563_s21, %s8705_s12  ;;  %p8708_p7 = scmp.lt.s32.totalorder %s8706_s16, %s8699_s15 }
 0x113   : > { %p8703_p8 = pneg %p8702_p1 }
 0x114   : > { %p8709_p4 = por %p8708_p7, %p8707_p11 }
 0x116   : > { %p8710_p6 = pnand %p8709_p4, %p8703_p8 }
 0x118   : > { %8713 = shalt.err (!%p8710_p6)
}
 0x119   : > { %8192 = dma.hbm_to_vmem [thread:$0]  (!%p11308_p2), %s9184_s30, 64, %s563_s21, %s9060_s20  }
 0x11a   : > { %p11311_p13 = scmp.ne.s32.totalorder %s11293_s29, 0 }
 0x11c   : > { %571 = sbr.rel (%p11311_p13) target bundleno = 2749 (0xabd), region = 80 }
 0x123   : > { %p11312_p10 = scmp.eq.s32.totalorder %s8929_s28, 0 }
 0x125   : > { %8757 = dma.done.wait (%p11312_p10), [#allocation6], 256   ;;  %p11313_p12 = pmov %p11312_p10 }
 0x126   : > { %p11314_p0 = pmov %p11312_p10 }
 0x127   : > { %8759 = vsyncadd (%p11313_p12), [#allocation6], 4294967040 }
 0x128   : > { %8761 = dma.done.wait (%p11314_p0), [#allocation9], 2080   ;;  %p11315_p5 = pmov %p11314_p0 }
 0x129   : > { %s11316_s0 = sld [smem:[#allocation32_spill]]  ;;  %s585_s8 = sand.u32 1, %s8929_s28  }
 0x12a   : > { %8763 = vsyncadd (%p11315_p5), [#allocation9], 4294965216  ;;  %s587_s20 = sand.u32 1, %s8790_s24   ;;  %s586_s29 = scalar_lea.sflag [#allocation12], %s585_s8 }
 0x12b   : > { %s8120_s18 = smul.u32 1152, %s587_s20 }
 0x12d   : > { %s9218_s27 = scalar_lea.vmem [#allocation11], %s8120_s18 }
 0x12f   : > { %p11317_p2 = scmp.ne.s32.totalorder %s11316_s0, 0 }
 0x131   : > { %8765 = dma.done.wait (%p11317_p2), %s586_s29, 18496  }
 0x132   : > { %8767 = vsyncadd (%p11317_p2), %s586_s29, 4294948800  ;;  %s6123_s7 = sshll.u32 %s587_s20, 2  ;;  %p11318_p9 = pmov %p11314_p0 }
 0x133   : > { %s9224_s22 = scalar_lea.vmem [#allocation13], %s6123_s7 }
 0x134   : > { %8769 = dma.done.wait (%p11318_p9), [#allocation15], 32   ;;  %p11319_p3 = pmov %p11314_p0 }
 0x135   : > { %p11320_p1 = pmov %p11314_p0 }
 0x136   : > { %8771 = vsyncadd (%p11319_p3), [#allocation15], 4294967264 }
 0x137   : > { %8773 = dma.done.wait (%p11320_p1), [#allocation18], 32   ;;  %p11321_p8 = pmov %p11314_p0 }
 0x138   : > { %p11322_p11 = pmov %p11314_p0 }
 0x139   : > { %8775 = vsyncadd (%p11321_p8), [#allocation18], 4294967264 }
 0x13a   : > { %8777 = dma.done.wait (%p11322_p11), [#allocation21], 32   ;;  %p11323_p7 = pmov %p11314_p0 }
 0x13b   : > { %v9238_v1 = vld [vmem:[#allocation10] sm:$0xff]  ;;  %v9240_v2 = vld [vmem:[#allocation10 + $0x8] sm:$0xff]  ;;  %v9242_v3 = vld [vmem:[#allocation10 + $0x10] sm:$0xff]  ;;  %p11340_p4 = scmp.ne.s32.totalorder %s8929_s28, 0 }
 0x13c   : > { %8779 = vsyncadd (%p11323_p7), [#allocation21], 4294967264  ;;  %11324 = vst [vmem:[#allocation33_spill] sm:$0xff] %v9238_v1  ;;  %v9244_v4 = vld [vmem:[#allocation10 + $0x18] sm:$0xff]  ;;  %v9246_v5 = vld [vmem:[#allocation10 + $0x20] sm:$0xff]  ;;  %s11341_s23 = sld [smem:[#allocation57_spill]] (!%p11340_p4) }
 0x13d   : > { %11325 = vst [vmem:[#allocation34_spill] sm:$0xff] %v9240_v2  ;;  %11326 = vst [vmem:[#allocation35_spill] sm:$0xff] %v9242_v3  ;;  %v9248_v6 = vld [vmem:[#allocation10 + $0x28] sm:$0xff]  ;;  %v9250_v7 = vld [vmem:[#allocation10 + $0x30] sm:$0xff]  ;;  %vm746_vm0 = vcmask (!%p11340_p4), 130048   ;;  %v8814_v22 = vmov (!%p11340_p4), 0.0  }
 0x13e   : > { %11327 = vst [vmem:[#allocation36_spill] sm:$0xff] %v9244_v4  ;;  %11328 = vst [vmem:[#allocation37_spill] sm:$0xff] %v9246_v5  ;;  %v9252_v8 = vld [vmem:[#allocation10 + $0x38] sm:$0xff]  ;;  %v9254_v9 = vld [vmem:[#allocation10 + $0x40] sm:$0xff]  ;;  %687 = sbr.rel (%p11340_p4) target bundleno = 564 (0x234), region = 124 }
 0x13f   : > { %11329 = vst [vmem:[#allocation38_spill] sm:$0xff] %v9248_v6  ;;  %11330 = vst [vmem:[#allocation39_spill] sm:$0xff] %v9250_v7  ;;  %v9256_v10 = vld [vmem:[#allocation10 + $0x48] sm:$0xff]  ;;  %v9258_v11 = vld [vmem:[#allocation10 + $0x50] sm:$0xff] }
 0x140   : > { %11331 = vst [vmem:[#allocation40_spill] sm:$0xff] %v9252_v8  ;;  %11332 = vst [vmem:[#allocation41_spill] sm:$0xff] %v9254_v9  ;;  %v9260_v12 = vld [vmem:[#allocation10 + $0x58] sm:$0xff]  ;;  %v9262_v13 = vld [vmem:[#allocation10 + $0x60] sm:$0xff] }
 0x141   : > { %11333 = vst [vmem:[#allocation42_spill] sm:$0xff] %v9256_v10  ;;  %11334 = vst [vmem:[#allocation43_spill] sm:$0xff] %v9258_v11  ;;  %v9264_v14 = vld [vmem:[#allocation10 + $0x68] sm:$0xff]  ;;  %v9266_v15 = vld [vmem:[#allocation10 + $0x70] sm:$0xff] }
 0x142   : > { %11335 = vst [vmem:[#allocation44_spill] sm:$0xff] %v9260_v12  ;;  %11336 = vst [vmem:[#allocation45_spill] sm:$0xff] %v9262_v13  ;;  %v9268_v16 = vld [vmem:[#allocation10 + $0x78] sm:$0xff]  ;;  %v744_v17 = vld [vmem:[#allocation5] sm:$0xff] (!%p11340_p4)  ;;  %s11342_s21 = smov (!%p11340_p4), %s11341_s23 }
 0x143   : > { %11337 = vst [vmem:[#allocation46_spill] sm:$0xff] %v9264_v14  ;;  %11338 = vst [vmem:[#allocation47_spill] sm:$0xff] %v9266_v15  ;;  %v745_v18 = vld [vmem:[#allocation5 + $0x8] sm:$0xff] (!%p11340_p4)  ;;  %v728_v19 = vld [vmem:[%s11341_s23] sm:$0xff] (!%p11340_p4) }
 0x144   : > { %11339 = vst [vmem:[#allocation48_spill] sm:$0xff] %v9268_v16  ;;  %v7776_v20 = vpack.c.bf16 (!%p11340_p4), %v745_v18, %v744_v17  ;;  %7050 = vmatprep.mubr.msk.f32.mxu0 (!%p11340_p4), %vm746_vm0, %v728_v19  ;;  %v736_v21 = vld [vmem:[%s11342_s21 + $0x40] sm:$0xff] (!%p11340_p4)  ;;  %688 = vst [vmem:[#allocation2] sm:$0xff] (!%p11340_p4), %v8814_v22  ;;  %v729_v23 = vld [vmem:[%s11342_s21 + $0x8] sm:$0xff] (!%p11340_p4) }
 0x145   : > { %689 = vst [vmem:[#allocation2 + $0x8] sm:$0xff] %v8814_v22  ;;  %706 = vst [vmem:[#allocation2 + $0x90] sm:$0xff] %v8814_v22  ;;  %7062 = vmatprep.mubr.msk.f32.mxu1 %vm746_vm0, %v736_v21  ;;  %v737_v24 = vld [vmem:[%s11342_s21 + $0x48] sm:$0xff]  ;;  %v730_v25 = vld [vmem:[%s11342_s21 + $0x10] sm:$0xff] }
 0x146   : > { %707 = vst [vmem:[#allocation2 + $0x98] sm:$0xff] %v8814_v22  ;;  %708 = vst [vmem:[#allocation3] sm:$0xff] %v8814_v22  ;;  %7777 = vmatprep.subr.bf16.mxu0 %v7776_v20  ;;  %7860 = vmatprep.subr.bf16.mxu1 %v7776_v20  ;;  %v738_v26 = vld [vmem:[%s11342_s21 + $0x50] sm:$0xff]  ;;  %v731_v27 = vld [vmem:[%s11342_s21 + $0x18] sm:$0xff] }
 0x147   : > { %709 = vst [vmem:[#allocation3 + $0x8] sm:$0xff] %v8814_v22  ;;  %710 = vst [vmem:[#allocation3 + $0x10] sm:$0xff] %v8814_v22  ;;  %7779 = vmatpush3.bf16.msra.mxu0 %v7776_v20  ;;  %7861 = vmatpush3.bf16.msra.mxu1 %v7776_v20  ;;  %v739_v28 = vld [vmem:[%s11342_s21 + $0x58] sm:$0xff]  ;;  %v732_v29 = vld [vmem:[%s11342_s21 + $0x20] sm:$0xff] }
 0x148   : > { %711 = vst [vmem:[#allocation3 + $0x18] sm:$0xff] %v8814_v22  ;;  %712 = vst [vmem:[#allocation3 + $0x20] sm:$0xff] %v8814_v22  ;;  %v740_v30 = vld [vmem:[%s11342_s21 + $0x60] sm:$0xff]  ;;  %v733_v31 = vld [vmem:[%s11342_s21 + $0x28] sm:$0xff] }
 0x149   : > { %713 = vst [vmem:[#allocation3 + $0x28] sm:$0xff] %v8814_v22  ;;  %714 = vst [vmem:[#allocation3 + $0x30] sm:$0xff] %v8814_v22  ;;  %v741_v32 = vld [vmem:[%s11342_s21 + $0x68] sm:$0xff]  ;;  %v734_v33 = vld [vmem:[%s11342_s21 + $0x30] sm:$0xff] }
 0x14a   : > { %715 = vst [vmem:[#allocation3 + $0x38] sm:$0xff] %v8814_v22  ;;  %716 = vst [vmem:[#allocation3 + $0x40] sm:$0xff] %v8814_v22  ;;  %7051 = vmatmul.mubr.msk.f32.vlgmr.msra.gmra.mrb[0].mxu0 %vm746_vm0, %v729_v23  ;;  %7063 = vmatmul.mubr.msk.f32.vlgmr.msra.gmra.mrb[0].mxu1 %vm746_vm0, %v737_v24  ;;  %v742_v34 = vld [vmem:[%s11342_s21 + $0x70] sm:$0xff]  ;;  %v735_v35 = vld [vmem:[%s11342_s21 + $0x38] sm:$0xff] }
 0x14b   : > { %717 = vst [vmem:[#allocation3 + $0x48] sm:$0xff] %v8814_v22  ;;  %718 = vst [vmem:[#allocation3 + $0x50] sm:$0xff] %v8814_v22  ;;  %7053 = vmatprep.mubr.msk.f32.mxu0 %vm746_vm0, %v730_v25  ;;  %7065 = vmatprep.mubr.msk.f32.mxu1 %vm746_vm0, %v738_v26  ;;  %v743_v36 = vld [vmem:[%s11342_s21 + $0x78] sm:$0xff]  ;;  %v9336_v37 = vld [vmem:[#allocation8] ss:$0 sm:$0xff] }
 0x14c   : > { %719 = vst [vmem:[#allocation3 + $0x58] sm:$0xff] %v8814_v22  ;;  %720 = vst [vmem:[#allocation3 + $0x60] sm:$0xff] %v8814_v22  ;;  %v9338_v39 = vld [vmem:[#allocation8 + $0x1] ss:$0 sm:$0xff] }
 0x14d   : > { %721 = vst [vmem:[#allocation3 + $0x68] sm:$0xff] %v8814_v22  ;;  %722 = vst [vmem:[#allocation3 + $0x70] sm:$0xff] %v8814_v22 }
 0x14e   : > { %723 = vst [vmem:[#allocation3 + $0x78] sm:$0xff] %v8814_v22  ;;  %724 = vst [vmem:[#allocation3 + $0x80] sm:$0xff] %v8814_v22  ;;  %7054 = vmatmul.mubr.msk.f32.gmra.mrb[2].mxu0 %vm746_vm0, %v731_v27  ;;  %7066 = vmatmul.mubr.msk.f32.gmra.mrb[2].mxu1 %vm746_vm0, %v739_v28 }
 0x14f   : > { %725 = vst [vmem:[#allocation3 + $0x88] sm:$0xff] %v8814_v22  ;;  %726 = vst [vmem:[#allocation3 + $0x90] sm:$0xff] %v8814_v22  ;;  %7056 = vmatprep.mubr.msk.f32.mxu0 %vm746_vm0, %v732_v29  ;;  %7068 = vmatprep.mubr.msk.f32.mxu1 %vm746_vm0, %v740_v30 }
 0x150   : > { %727 = vst [vmem:[#allocation3 + $0x98] sm:$0xff] %v8814_v22 }
 0x152   : > { %7057 = vmatmul.mubr.msk.f32.gmra.mrb[4].mxu0 %vm746_vm0, %v733_v31  ;;  %7069 = vmatmul.mubr.msk.f32.gmra.mrb[4].mxu1 %vm746_vm0, %v741_v32 }
 0x153   : > { %7059 = vmatprep.mubr.msk.f32.mxu0 %vm746_vm0, %v734_v33  ;;  %7071 = vmatprep.mubr.msk.f32.mxu1 %vm746_vm0, %v742_v34 }
 0x156   : > { %7060 = vmatmul.mubr.msk.f32.gmra.mrb[6].mxu0 %vm746_vm0, %v735_v35  ;;  %7072 = vmatmul.mubr.msk.f32.gmra.mrb[6].mxu1 %vm746_vm0, %v743_v36 }
 0x21d   : > { %v7052_v38 = vpop.f32.mrb[0].mxu0  ;;  %v7064_v40 = vpop.f32.mrb[0].mxu1 }
 0x21e   : > { %v946_v41 = vmul.f32 %v7052_v38, %v9336_v37  ;;  %v954_v42 = vmul.f32 %v7064_v40, %v9336_v37  ;;  %v861_v43 = vpop.f32.mrb[1].mxu0  ;;  %v901_v44 = vpop.f32.mrb[1].mxu1 }
 0x21f   : > { %v945_v45 = vmul.f32 %v9336_v37, %v861_v43  ;;  %v953_v46 = vmul.f32 %v9336_v37, %v901_v44 }
 0x220   : > { %v967_v47 = vadd.f32 %v9338_v39, %v946_v41  ;;  %v975_v48 = vadd.f32 %v9338_v39, %v954_v42 }
 0x221   : > { %v966_v49 = vadd.f32 %v9338_v39, %v945_v45  ;;  %v974_v50 = vadd.f32 %v9338_v39, %v953_v46  ;;  %v7055_v51 = vpop.f32.mrb[2].mxu0  ;;  %v7067_v52 = vpop.f32.mrb[2].mxu1 }
 0x222   : > { %v983_v53 = vmax.f32 %v967_v47, 0.0  ;;  %v991_v54 = vmax.f32 %v975_v48, 0.0  ;;  %v948_v55 = vmul.f32 %v7055_v51, %v9336_v37  ;;  %v956_v56 = vmul.f32 %v7067_v52, %v9336_v37  ;;  %v871_v57 = vpop.f32.mrb[3].mxu0  ;;  %v911_v58 = vpop.f32.mrb[3].mxu1 }
 0x223   : > { %v982_v59 = vmax.f32 %v966_v49, 0.0  ;;  %v990_v60 = vmax.f32 %v974_v50, 0.0  ;;  %v947_v61 = vmul.f32 %v9336_v37, %v871_v57  ;;  %v955_v62 = vmul.f32 %v9336_v37, %v911_v58 }
 0x224   : > { %v999_v63 = vmul.f32 %v983_v53, %v9240_v2  ;;  %v1007_v0 = vmul.f32 %v991_v54, %v9256_v10  ;;  %v969_v17 = vadd.f32 %v9338_v39, %v948_v55  ;;  %v977_v18 = vadd.f32 %v9338_v39, %v956_v56 }
 0x225   : > { %v998_v19 = vmul.f32 %v982_v59, %v9238_v1  ;;  %v1006_v20 = vmul.f32 %v990_v60, %v9254_v9  ;;  %v968_v21 = vadd.f32 %v9338_v39, %v947_v61  ;;  %v976_v22 = vadd.f32 %v9338_v39, %v955_v62  ;;  %v7058_v23 = vpop.f32.mrb[4].mxu0  ;;  %v7070_v24 = vpop.f32.mrb[4].mxu1 }
 0x226   : > { %1015 = vst [vmem:[#allocation2 + $0x18] sm:$0xff] %v999_v63  ;;  %1023 = vst [vmem:[#allocation2 + $0x58] sm:$0xff] %v1007_v0  ;;  %v985_v25 = vmax.f32 %v969_v17, 0.0  ;;  %v993_v26 = vmax.f32 %v977_v18, 0.0  ;;  %v950_v27 = vmul.f32 %v7058_v23, %v9336_v37  ;;  %v958_v28 = vmul.f32 %v7070_v24, %v9336_v37  ;;  %v881_v29 = vpop.f32.mrb[5].mxu0  ;;  %v921_v30 = vpop.f32.mrb[5].mxu1 }
 0x227   : > { %1014 = vst [vmem:[#allocation2 + $0x10] sm:$0xff] %v998_v19  ;;  %1022 = vst [vmem:[#allocation2 + $0x50] sm:$0xff] %v1006_v20  ;;  %v984_v31 = vmax.f32 %v968_v21, 0.0  ;;  %v992_v32 = vmax.f32 %v976_v22, 0.0  ;;  %v949_v33 = vmul.f32 %v9336_v37, %v881_v29  ;;  %v957_v34 = vmul.f32 %v9336_v37, %v921_v30 }
 0x228   : > { %v1001_v35 = vmul.f32 %v985_v25, %v9244_v4  ;;  %v1009_v36 = vmul.f32 %v993_v26, %v9260_v12  ;;  %v971_v38 = vadd.f32 %v9338_v39, %v950_v27  ;;  %v979_v40 = vadd.f32 %v9338_v39, %v958_v28 }
 0x229   : > { %v1000_v41 = vmul.f32 %v984_v31, %v9242_v3  ;;  %v1008_v42 = vmul.f32 %v992_v32, %v9258_v11  ;;  %v970_v43 = vadd.f32 %v9338_v39, %v949_v33  ;;  %v978_v44 = vadd.f32 %v9338_v39, %v957_v34  ;;  %v7061_v45 = vpop.f32.mrb[6].mxu0  ;;  %v7073_v46 = vpop.f32.mrb[6].mxu1 }
 0x22a   : > { %1017 = vst [vmem:[#allocation2 + $0x28] sm:$0xff] %v1001_v35  ;;  %1025 = vst [vmem:[#allocation2 + $0x68] sm:$0xff] %v1009_v36  ;;  %v987_v47 = vmax.f32 %v971_v38, 0.0  ;;  %v995_v48 = vmax.f32 %v979_v40, 0.0  ;;  %v952_v49 = vmul.f32 %v7061_v45, %v9336_v37  ;;  %v960_v50 = vmul.f32 %v7073_v46, %v9336_v37  ;;  %v891_v51 = vpop.f32.mrb[7].mxu0  ;;  %v931_v52 = vpop.f32.mrb[7].mxu1 }
 0x22b   : > { %1016 = vst [vmem:[#allocation2 + $0x20] sm:$0xff] %v1000_v41  ;;  %1024 = vst [vmem:[#allocation2 + $0x60] sm:$0xff] %v1008_v42  ;;  %v986_v53 = vmax.f32 %v970_v43, 0.0  ;;  %v994_v54 = vmax.f32 %v978_v44, 0.0  ;;  %v951_v55 = vmul.f32 %v9336_v37, %v891_v51  ;;  %v959_v56 = vmul.f32 %v9336_v37, %v931_v52 }
 0x22c   : > { %v1003_v57 = vmul.f32 %v987_v47, %v9248_v6  ;;  %v1011_v58 = vmul.f32 %v995_v48, %v9264_v14  ;;  %v973_v59 = vadd.f32 %v9338_v39, %v952_v49  ;;  %v981_v60 = vadd.f32 %v9338_v39, %v960_v50 }
 0x22d   : > { %v1002_v61 = vmul.f32 %v986_v53, %v9246_v5  ;;  %v1010_v62 = vmul.f32 %v994_v54, %v9262_v13  ;;  %v972_v63 = vadd.f32 %v9338_v39, %v951_v55  ;;  %v980_v0 = vadd.f32 %v9338_v39, %v959_v56 }
 0x22e   : > { %1019 = vst [vmem:[#allocation2 + $0x38] sm:$0xff] %v1003_v57  ;;  %1027 = vst [vmem:[#allocation2 + $0x78] sm:$0xff] %v1011_v58  ;;  %v989_v17 = vmax.f32 %v973_v59, 0.0  ;;  %v997_v37 = vmax.f32 %v981_v60, 0.0 }
 0x22f   : > { %1018 = vst [vmem:[#allocation2 + $0x30] sm:$0xff] %v1002_v61  ;;  %1026 = vst [vmem:[#allocation2 + $0x70] sm:$0xff] %v1010_v62  ;;  %v988_v18 = vmax.f32 %v972_v63, 0.0  ;;  %v996_v19 = vmax.f32 %v980_v0, 0.0 }
 0x230   : > { %v1005_v20 = vmul.f32 %v989_v17, %v9252_v8  ;;  %v1013_v21 = vmul.f32 %v997_v37, %v9268_v16 }
 0x231   : > { %v1004_v22 = vmul.f32 %v988_v18, %v9250_v7  ;;  %v1012_v23 = vmul.f32 %v996_v19, %v9266_v15 }
 0x232   : > { %1021 = vst [vmem:[#allocation2 + $0x48] sm:$0xff] %v1005_v20  ;;  %1029 = vst [vmem:[#allocation2 + $0x88] sm:$0xff] %v1013_v21 }
 0x233   : > { %1020 = vst [vmem:[#allocation2 + $0x40] sm:$0xff] %v1004_v22  ;;  %1028 = vst [vmem:[#allocation2 + $0x80] sm:$0xff] %v1012_v23 }
 0x234 PF: > { %v8262_v39 = vld [vmem:[%s9218_s27 + $0x40] sm:$0xff]   ;;  %v8263_v24 = vld [vmem:[%s9218_s27 + $0x48] sm:$0xff]   ;;  %v8264_v25 = vld [vmem:[%s9218_s27 + $0x50] sm:$0xff]   ;;  %p6568_p6 = scmp.ne.s32.totalorder %s8929_s28, 18 }
 0x235   : > { %7074 = vmatprep.subr.bf16.mxu0 %v8262_v39  ;;  %v8265_v26 = vld [vmem:[%s9218_s27 + $0x58] sm:$0xff]   ;;  %v8266_v30 = vld [vmem:[%s9218_s27 + $0x60] sm:$0xff]   ;;  %v8267_v31 = vld [vmem:[%s9218_s27 + $0x68] sm:$0xff]   ;;  %s11412_s8 = sld [smem:[#allocation60_spill]] (!%p6568_p6)  ;;  %s11413_s11 = sld [smem:[#allocation64_spill]] (!%p6568_p6)  ;;  %vm5216_vm1 = vcmask (!%p6568_p6), 261120  }
 0x236   : > { %7075 = vmatpush3.bf16.msra.mxu0 %v8262_v39  ;;  %v9392_v27 = vld [vmem:[#allocation2 + $0x10] sm:$0xff]  ;;  %v8268_v32 = vld [vmem:[%s9218_s27 + $0x70] sm:$0xff]   ;;  %v9399_v34 = vld [vmem:[#allocation2 + $0x18] sm:$0xff]  ;;  %vm5751_vm2 = vcmask (!%p6568_p6), 7168   ;;  %vm5768_vm3 = vcmask (!%p6568_p6), 15360   ;;  %vm5785_vm4 = vcmask (!%p6568_p6), 23552  }
 0x237   : > { %7076 = vmatprep.subr.bf16.mxu0 %v8263_v24  ;;  %v8269_v33 = vld [vmem:[%s9218_s27 + $0x78] sm:$0xff]   ;;  %v9401_v35 = vld [vmem:[#allocation2 + $0x20] sm:$0xff]  ;;  %v8270_v36 = vld [vmem:[%s9218_s27] sm:$0xff]   ;;  %vm5802_vm5 = vcmask (!%p6568_p6), 31744   ;;  %vm5819_vm6 = vcmask (!%p6568_p6), 39936   ;;  %vm5836_vm7 = vcmask (!%p6568_p6), 48128  }
 0x238   : > { %v9404_v38 = vld [vmem:[#allocation2 + $0x28] sm:$0xff]  ;;  %v9406_v40 = vld [vmem:[#allocation2 + $0x30] sm:$0xff]  ;;  %v9410_v41 = vpack.c.bf16 %v9401_v35, %v9399_v34  ;;  %v8271_v43 = vld [vmem:[%s9218_s27 + $0x8] sm:$0xff]   ;;  %vm8817_vm8 = vmmov (!%p6568_p6), 0   ;;  %s11414_s4 = sld [smem:[#allocation62_spill]] (!%p6568_p6)  ;;  %vm5930_vm9 = vcmask (!%p6568_p6), 50176  }
 0x239   : > { %v9414_v42 = vpack.c.bf16 %v9406_v40, %v9404_v38  ;;  %v9418_v44 = vld [vmem:[#allocation2 + $0x38] sm:$0xff]  ;;  %v8272_v46 = vld [vmem:[%s9218_s27 + $0x10] sm:$0xff]   ;;  %v9426_v48 = vld [vmem:[#allocation2 + $0x50] sm:$0xff]  ;;  %vm5169_vm10 = vcmask (!%p6568_p6), 254976   ;;  %vm5182_vm11 = vcmask (!%p6568_p6), 1024   ;;  %s11415_s2 = sld [smem:[#allocation66_spill]] (!%p6568_p6) }
 0x23a   : > { %7077 = vmatpush3.bf16.msra.mxu0 %v8263_v24  ;;  %v9421_v45 = vld [vmem:[#allocation2 + $0x40] sm:$0xff]  ;;  %v9424_v47 = vld [vmem:[#allocation2 + $0x48] sm:$0xff]  ;;  %v9438_v52 = vld [vmem:[#allocation2 + $0x58] sm:$0xff] }
 0x23b   : > { %7078 = vmatprep.subr.bf16.mxu0 %v8264_v25  ;;  %v1086_v28 = vld [vmem:[#allocation2 + $0x8] sm:$0xff]  ;;  %v9430_v49 = vpack.c.bf16 %v9421_v45, %v9418_v44  ;;  %v9434_v50 = vpack.c.bf16 %v9426_v48, %v9424_v47  ;;  %v9440_v53 = vld [vmem:[#allocation2 + $0x60] sm:$0xff]  ;;  %v8274_v54 = vld [vmem:[%s9218_s27 + $0x20] sm:$0xff]  }
 0x23c   : > { %v1087_v29 = vpack.c.bf16 %v9392_v27, %v1086_v28  ;;  %v8273_v51 = vld [vmem:[%s9218_s27 + $0x18] sm:$0xff]   ;;  %v9450_v57 = vpack.c.bf16 %v9440_v53, %v9438_v52  ;;  %v8275_v59 = vld [vmem:[%s9218_s27 + $0x28] sm:$0xff]   ;;  %v8276_v62 = vld [vmem:[%s9218_s27 + $0x30] sm:$0xff]  }
 0x23d   : > { %v9444_v55 = vld [vmem:[#allocation2 + $0x68] sm:$0xff]  ;;  %v9446_v56 = vld [vmem:[#allocation2 + $0x70] sm:$0xff]  ;;  %v9457_v60 = vld [vmem:[#allocation2 + $0x78] sm:$0xff] }
 0x23e   : > { %7079 = vmatpush3.bf16.msra.mxu0 %v8264_v25  ;;  %7090 = vmatprep.mubr.bf16.mxu0 %v1087_v29  ;;  %11343 = vst [vmem:[#allocation49_spill] sm:$0xff] %v9450_v57  ;;  %v9454_v58 = vpack.c.bf16 %v9446_v56, %v9444_v55  ;;  %v9459_v61 = vld [vmem:[#allocation2 + $0x80] sm:$0xff]  ;;  %v9464_v0 = vld [vmem:[#allocation2 + $0xf] sm:$0xff]  ;;  %v9472_v19 = vld [vmem:[#allocation2 + $0x17] sm:$0xff] }
 0x23f   : > { %7080 = vmatprep.subr.bf16.mxu0 %v8265_v26  ;;  %v1046_v63 = vld [vmem:[#allocation2 + $0x7] sm:$0xff]  ;;  %v9468_v17 = vpack.c.bf16 %v9459_v61, %v9457_v60  ;;  %v9474_v20 = vld [vmem:[#allocation2 + $0x1f] sm:$0xff]  ;;  %v8278_v21 = vld [vmem:[%s9218_s27 + $0x80] sm:$0xff]  }
 0x240   : > { %11344 = vst [vmem:[#allocation50_spill] sm:$0xff] %v9454_v58  ;;  %v1062_v37 = vpack.c.bf16 %v9464_v0, %v1046_v63  ;;  %v8277_v18 = vld [vmem:[%s9218_s27 + $0x38] sm:$0xff]   ;;  %v9484_v39 = vpack.c.bf16 %v9474_v20, %v9472_v19  ;;  %v8279_v25 = vld [vmem:[%s9218_s27 + $0x88] sm:$0xff]   ;;  %v8280_v29 = vld [vmem:[%s9218_s27 + $0x90] sm:$0xff]  }
 0x241   : > { %11345 = vst [vmem:[#allocation51_spill] sm:$0xff] %v9468_v17  ;;  %v9478_v22 = vld [vmem:[#allocation2 + $0x27] sm:$0xff]  ;;  %v9480_v23 = vld [vmem:[#allocation2 + $0x2f] sm:$0xff]  ;;  %v9493_v28 = vld [vmem:[#allocation2 + $0x3f] sm:$0xff] }
 0x242   : > { %7081 = vmatpush3.bf16.msra.mxu0 %v8265_v26  ;;  %v9488_v24 = vpack.c.bf16 %v9480_v23, %v9478_v22  ;;  %v9491_v26 = vld [vmem:[#allocation2 + $0x37] sm:$0xff]  ;;  %v8285_v13 = vld [vmem:[%s9218_s27 + $0xb8] sm:$0xff]   ;;  %v9548_v10 = vld [vmem:[#allocation2 + $0x21] sm:$0xff] }
 0x243   : > { %7082 = vmatprep.subr.bf16.mxu0 %v8266_v30  ;;  %v9546_v15 = vld [vmem:[#allocation2 + $0x19] sm:$0xff]  ;;  %v9552_v12 = vld [vmem:[#allocation2 + $0x29] sm:$0xff]  ;;  %v9554_v9 = vld [vmem:[#allocation2 + $0x31] sm:$0xff] }
 0x244   : > { %v8287_v11 = vld [vmem:[%s9218_s27 + $0xc8] sm:$0xff]   ;;  %v8289_v2 = vld [vmem:[%s9218_s27 + $0xd8] sm:$0xff]   ;;  %v8290_v1 = vld [vmem:[%s9218_s27 + $0xe0] sm:$0xff]  }
 0x245   : > { %v9565_v6 = vld [vmem:[#allocation2 + $0x39] sm:$0xff]  ;;  %v9567_v8 = vld [vmem:[#allocation2 + $0x41] sm:$0xff]  ;;  %v9591_v3 = vld [vmem:[#allocation2 + $0x69] sm:$0xff] }
 0x246   : > { %7083 = vmatpush3.bf16.msra.mxu0 %v8266_v30  ;;  %v9497_v30 = vld [vmem:[#allocation2 + $0x47] sm:$0xff]  ;;  %v9578_v5 = vpack.c.bf16 %v9567_v8, %v9565_v6  ;;  %v9585_v4 = vld [vmem:[#allocation2 + $0x59] sm:$0xff] }
 0x247   : > { %7084 = vmatprep.subr.bf16.mxu0 %v8267_v31 }
 0x248   : > { %11348 = vst [vmem:[#allocation54_spill] sm:$0xff] %v9578_v5 }
 0x24a   : > { %7085 = vmatpush3.bf16.msra.mxu0 %v8267_v31  ;;  %v9500_v31 = vld [vmem:[#allocation2 + $0x4f] sm:$0xff] }
 0x24b   : > { %7086 = vmatprep.subr.bf16.mxu0 %v8268_v32 }
 0x24e   : > { %7087 = vmatpush3.bf16.msra.mxu0 %v8268_v32  ;;  %v9504_v32 = vpack.c.bf16 %v9493_v28, %v9491_v26 }
 0x24f   : > { %7088 = vmatprep.subr.bf16.mxu0 %v8269_v33 }
 0x252   : > { %7089 = vmatpush3.bf16.msra.mxu0 %v8269_v33  ;;  %v9508_v33 = vpack.c.bf16 %v9500_v31, %v9497_v30 }
 0x253   : > { %7106 = vmatprep.subr.bf16.mxu0 %v8270_v36 }
 0x255   : > { %7091 = vmatmul.mubr.bf16.vlgmr.msra.gmra.mrb[0].mxu0 %v9410_v41 }
 0x256   : > { %7107 = vmatpush3.bf16.msra.mxu0 %v8270_v36  ;;  %7094 = vmatprep.mubr.bf16.mxu0 %v9414_v42  ;;  %v8281_v36 = vld [vmem:[%s9218_s27 + $0x98] sm:$0xff]  }
 0x257   : > { %7108 = vmatprep.subr.bf16.mxu0 %v8271_v43 }
 0x25a   : > { %7109 = vmatpush3.bf16.msra.mxu0 %v8271_v43  ;;  %v9511_v43 = vld [vmem:[#allocation2 + $0x57] sm:$0xff] }
 0x25b   : > { %7110 = vmatprep.subr.bf16.mxu0 %v8272_v46 }
 0x25d   : > { %7095 = vmatmul.mubr.bf16.gmra.mrb[4].mxu0 %v9430_v49 }
 0x25e   : > { %7111 = vmatpush3.bf16.msra.mxu0 %v8272_v46  ;;  %7098 = vmatprep.mubr.bf16.mxu0 %v9434_v50  ;;  %v9513_v46 = vld [vmem:[#allocation2 + $0x5f] sm:$0xff] }
 0x25f   : > { %7112 = vmatprep.subr.bf16.mxu0 %v8273_v51 }
 0x262   : > { %7113 = vmatpush3.bf16.msra.mxu0 %v8273_v51  ;;  %v8282_v51 = vld [vmem:[%s9218_s27 + $0xa0] sm:$0xff]  }
 0x263   : > { %7114 = vmatprep.subr.bf16.mxu0 %v8274_v54 }
 0x265   : > { %7099 = vmatmul.mubr.bf16.gmra.mrb[8].mxu0 %v9450_v57  ;;  %v8293_v57 = vld [vmem:[%s9218_s27 + $0xf8] sm:$0xff]  }
 0x266   : > { %7115 = vmatpush3.bf16.msra.mxu0 %v8274_v54  ;;  %7102 = vmatprep.mubr.bf16.mxu0 %v9454_v58  ;;  %v9517_v54 = vld [vmem:[#allocation2 + $0x67] sm:$0xff]  ;;  %v1620_v58 = vpack.c.bf16 %v9472_v19, %v9464_v0  ;;  %v8295_v0 = vld [vmem:[%s9218_s27 + $0x108] sm:$0xff]  }
 0x267   : > { %7116 = vmatprep.subr.bf16.mxu0 %v8275_v59  ;;  %v8296_v19 = vld [vmem:[%s9218_s27 + $0x110] sm:$0xff]  }
 0x26a   : > { %7117 = vmatpush3.bf16.msra.mxu0 %v8275_v59  ;;  %v9520_v59 = vld [vmem:[#allocation2 + $0x6f] sm:$0xff] }
 0x26b   : > { %7118 = vmatprep.subr.bf16.mxu0 %v8276_v62  ;;  %v9528_v63 = vpack.c.bf16 %v9520_v59, %v9517_v54 }
 0x26d   : > { %7103 = vmatmul.mubr.bf16.gmra.mrb[12].mxu0 %v9468_v17  ;;  %v9605_v17 = vld [vmem:[#allocation2 + $0x79] sm:$0xff] }
 0x26e   : > { %7119 = vmatpush3.bf16.msra.mxu0 %v8276_v62  ;;  %7122 = vmatprep.mubr.bf16.mxu0 %v1062_v37  ;;  %v9524_v62 = vpack.c.bf16 %v9513_v46, %v9511_v43  ;;  %v8283_v37 = vld [vmem:[%s9218_s27 + $0xa8] sm:$0xff]  }
 0x26f   : > { %7120 = vmatprep.subr.bf16.mxu0 %v8277_v18 }
 0x272   : > { %7121 = vmatpush3.bf16.msra.mxu0 %v8277_v18  ;;  %v9531_v18 = vld [vmem:[#allocation2 + $0x77] sm:$0xff] }
 0x273   : > { %7138 = vmatprep.subr.bf16.mxu0 %v8278_v21 }
 0x275   : > { %7123 = vmatmul.mubr.bf16.vlgmr.msra.gmra.mrb[0].mxu0 %v9484_v39 }
 0x276   : > { %7139 = vmatpush3.bf16.msra.mxu0 %v8278_v21  ;;  %7126 = vmatprep.mubr.bf16.mxu0 %v9488_v24  ;;  %v9533_v21 = vld [vmem:[#allocation2 + $0x7f] sm:$0xff] }
 0x277   : > { %7140 = vmatprep.subr.bf16.mxu0 %v8279_v25  ;;  %v9542_v14 = vpack.c.bf16 %v9533_v21, %v9531_v18 }
 0x27a   : > { %7141 = vmatpush3.bf16.msra.mxu0 %v8279_v25  ;;  %v8284_v25 = vld [vmem:[%s9218_s27 + $0xb0] sm:$0xff]  }
 0x27b   : > { %7142 = vmatprep.subr.bf16.mxu0 %v8280_v29 }
 0x27d   : > { %7127 = vmatmul.mubr.bf16.gmra.mrb[4].mxu0 %v9504_v32 }
 0x27e   : > { %7143 = vmatpush3.bf16.msra.mxu0 %v8280_v29  ;;  %7130 = vmatprep.mubr.bf16.mxu0 %v9508_v33  ;;  %v1402_v29 = vld [vmem:[#allocation2 + $0x9] sm:$0xff] }
 0x27f   : > { %7144 = vmatprep.subr.bf16.mxu0 %v8281_v36 }
 0x282   : > { %7145 = vmatpush3.bf16.msra.mxu0 %v8281_v36  ;;  %v9538_v36 = vld [vmem:[#allocation2 + $0x11] sm:$0xff] }
 0x283   : > { %7146 = vmatprep.subr.bf16.mxu0 %v8282_v51  ;;  %v1418_v16 = vpack.c.bf16 %v9538_v36, %v1402_v29  ;;  %v9562_v29 = vpack.c.bf16 %v9554_v9, %v9552_v12 }
 0x285   : > { %7131 = vmatmul.mubr.bf16.gmra.mrb[8].mxu0 %v9524_v62  ;;  %11347 = vst [vmem:[#allocation53_spill] sm:$0xff] %v9562_v29 }
 0x286   : > { %7147 = vmatpush3.bf16.msra.mxu0 %v8282_v51  ;;  %7134 = vmatprep.mubr.bf16.mxu0 %v9528_v63  ;;  %v8286_v51 = vld [vmem:[%s9218_s27 + $0xc0] sm:$0xff]  }
 0x287   : > { %7148 = vmatprep.subr.bf16.mxu0 %v8283_v37 }
 0x28a   : > { %7149 = vmatpush3.bf16.msra.mxu0 %v8283_v37  ;;  %v9558_v37 = vpack.c.bf16 %v9548_v10, %v9546_v15 }
 0x28b   : > { %7150 = vmatprep.subr.bf16.mxu0 %v8284_v25 }
 0x28c   : > { %11346 = vst [vmem:[#allocation52_spill] sm:$0xff] %v9558_v37 }
 0x28d   : > { %7135 = vmatmul.mubr.bf16.gmra.mrb[12].mxu0 %v9542_v14 }
 0x28e   : > { %7151 = vmatpush3.bf16.msra.mxu0 %v8284_v25  ;;  %7154 = vmatprep.mubr.bf16.mxu0 %v1418_v16  ;;  %v8288_v16 = vld [vmem:[%s9218_s27 + $0xd0] sm:$0xff]  }
 0x28f   : > { %7152 = vmatprep.subr.bf16.mxu0 %v8285_v13  ;;  %v9571_v25 = vld [vmem:[#allocation2 + $0x49] sm:$0xff] }
 0x292   : > { %7153 = vmatpush3.bf16.msra.mxu0 %v8285_v13  ;;  %v9574_v13 = vld [vmem:[#allocation2 + $0x51] sm:$0xff] }
 0x293   : > { %7170 = vmatprep.subr.bf16.mxu0 %v8286_v51  ;;  %v9582_v7 = vpack.c.bf16 %v9574_v13, %v9571_v25 }
 0x295   : > { %7155 = vmatmul.mubr.bf16.vlgmr.msra.gmra.mrb[0].mxu0 %v9558_v37  ;;  %11349 = vst [vmem:[#allocation55_spill] sm:$0xff] %v9582_v7 }
 0x296   : > { %7171 = vmatpush3.bf16.msra.mxu0 %v8286_v51  ;;  %7158 = vmatprep.mubr.bf16.mxu0 %v9562_v29  ;;  %v9587_v51 = vld [vmem:[#allocation2 + $0x61] sm:$0xff] }
 0x297   : > { %7172 = vmatprep.subr.bf16.mxu0 %v8287_v11  ;;  %v9598_v29 = vpack.c.bf16 %v9587_v51, %v9585_v4 }
 0x29a   : > { %7173 = vmatpush3.bf16.msra.mxu0 %v8287_v11  ;;  %v9594_v11 = vld [vmem:[#allocation2 + $0x71] sm:$0xff] }
 0x29b   : > { %7174 = vmatprep.subr.bf16.mxu0 %v8288_v16  ;;  %v9602_v37 = vpack.c.bf16 %v9594_v11, %v9591_v3 }
 0x29d   : > { %7159 = vmatmul.mubr.bf16.gmra.mrb[4].mxu0 %v9578_v5  ;;  %11350 = vst [vmem:[#allocation56_spill] sm:$0xff] %v9602_v37  ;;  %v8291_v5 = vld [vmem:[%s9218_s27 + $0xe8] sm:$0xff]  }
 0x29e   : > { %7175 = vmatpush3.bf16.msra.mxu0 %v8288_v16  ;;  %7162 = vmatprep.mubr.bf16.mxu0 %v9582_v7  ;;  %v9607_v16 = vld [vmem:[#allocation2 + $0x81] sm:$0xff] }
 0x29f   : > { %7176 = vmatprep.subr.bf16.mxu0 %v8289_v2  ;;  %v8292_v7 = vld [vmem:[%s9218_s27 + $0xf0] sm:$0xff]  }
 0x2a2   : > { %7177 = vmatpush3.bf16.msra.mxu0 %v8289_v2  ;;  %v9614_v2 = vpack.c.bf16 %v9607_v16, %v9605_v17 }
 0x2a3   : > { %7178 = vmatprep.subr.bf16.mxu0 %v8290_v1 }
 0x2a5   : > { %7163 = vmatmul.mubr.bf16.gmra.mrb[8].mxu0 %v9598_v29 }
 0x2a6   : > { %7179 = vmatpush3.bf16.msra.mxu0 %v8290_v1  ;;  %7166 = vmatprep.mubr.bf16.mxu0 %v9602_v37  ;;  %v8294_v1 = vld [vmem:[%s9218_s27 + $0x100] sm:$0xff]   ;;  %v1621_v37 = vpack.c.bf16 %v9478_v22, %v9474_v20  ;;  %v1625_v22 = vpack.c.bf16 %v9517_v54, %v9513_v46  ;;  %v8301_v46 = vld [vmem:[%s9218_s27 + $0x138] sm:$0xff]  }
 0x2a7   : > { %7180 = vmatprep.subr.bf16.mxu0 %v8291_v5  ;;  %v8298_v20 = vld [vmem:[%s9218_s27 + $0x120] sm:$0xff]  }
 0x2a8   : > { %v8302_v54 = vld [vmem:[%s9218_s27 + $0x140] sm:$0xff]  }
 0x2aa   : > { %7181 = vmatpush3.bf16.msra.mxu0 %v8291_v5  ;;  %v1622_v5 = vpack.c.bf16 %v9491_v26, %v9480_v23  ;;  %v1626_v23 = vpack.c.bf16 %v9531_v18, %v9520_v59  ;;  %v8299_v26 = vld [vmem:[%s9218_s27 + $0x128] sm:$0xff]   ;;  %v1807_v59 = vpack.c.bf16 %v9404_v38, %v9401_v35  ;;  %v1808_v18 = vpack.c.bf16 %v9418_v44, %v9406_v40  ;;  %v8305_v38 = vld [vmem:[%s9218_s27 + $0x158] sm:$0xff]   ;;  %v8306_v40 = vld [vmem:[%s9218_s27 + $0x160] sm:$0xff]  }
 0x2ab   : > { %7182 = vmatprep.subr.bf16.mxu0 %v8292_v7  ;;  %v1810_v35 = vpack.c.bf16 %v9438_v52, %v9426_v48  ;;  %v1811_v44 = vpack.c.bf16 %v9444_v55, %v9440_v53  ;;  %v9664_v48 = vld [vmem:[#allocation2 + $0x88] sm:$0xff]  ;;  %v2008_v53 = vpack.c.bf16 %v9546_v15, %v9538_v36  ;;  %v2010_v15 = vpack.c.bf16 %v9565_v6, %v9554_v9  ;;  %v8311_v36 = vld [vmem:[%s9218_s27 + $0x188] sm:$0xff]   ;;  %v8314_v9 = vld [vmem:[%s9218_s27 + $0x1a0] sm:$0xff]  }
 0x2ac   : > { %v8308_v52 = vld [vmem:[%s9218_s27 + $0x170] sm:$0xff]   ;;  %v8309_v55 = vld [vmem:[%s9218_s27 + $0x178] sm:$0xff]  }
 0x2ad   : > { %7167 = vmatmul.mubr.bf16.gmra.mrb[12].mxu0 %v9614_v2  ;;  %v8313_v6 = vld [vmem:[%s9218_s27 + $0x198] sm:$0xff]  }
 0x2ae   : > { %7183 = vmatpush3.bf16.msra.mxu0 %v8292_v7  ;;  %7186 = vmatprep.mubr.bf16.mxu0 %v1620_v58  ;;  %v1623_v7 = vpack.c.bf16 %v9497_v30, %v9493_v28  ;;  %v1624_v58 = vpack.c.bf16 %v9511_v43, %v9500_v31  ;;  %v9638_v28 = vld [vmem:[#allocation2 + $0x87] sm:$0xff]  ;;  %v1806_v43 = vpack.c.bf16 %v9399_v34, %v9392_v27 }
 0x2af   : > { %7184 = vmatprep.subr.bf16.mxu0 %v8293_v57  ;;  %v8300_v30 = vld [vmem:[%s9218_s27 + $0x130] sm:$0xff]   ;;  %v1627_v31 = vpack.c.bf16 %v9638_v28, %v9533_v21  ;;  %v8303_v21 = vld [vmem:[%s9218_s27 + $0x148] sm:$0xff]   ;;  %v1809_v34 = vpack.c.bf16 %v9424_v47, %v9421_v45  ;;  %v1812_v45 = vpack.c.bf16 %v9457_v60, %v9446_v56  ;;  %v8334_v56 = vld [vmem:[%s9218_s27 + $0x280] sm:$0xff]  }
 0x2b0   : > { %v8304_v27 = vld [vmem:[%s9218_s27 + $0x150] sm:$0xff]   ;;  %v8307_v47 = vld [vmem:[%s9218_s27 + $0x168] sm:$0xff]   ;;  %7362 = vmatprep.subr.bf16.mxu1 %v8334_v56 }
 0x2b1   : > { %v8335_v60 = vld [vmem:[%s9218_s27 + $0x288] sm:$0xff]   ;;  %7363 = vmatpush3.bf16.msra.mxu1 %v8334_v56 }
 0x2b2   : > { %7185 = vmatpush3.bf16.msra.mxu0 %v8293_v57  ;;  %v8297_v57 = vld [vmem:[%s9218_s27 + $0x118] sm:$0xff]   ;;  %7364 = vmatprep.subr.bf16.mxu1 %v8335_v60 }
 0x2b3   : > { %7202 = vmatprep.subr.bf16.mxu0 %v8294_v1 }
 0x2b5   : > { %7187 = vmatmul.mubr.bf16.vlgmr.msra.gmra.mrb[0].mxu0 %v1621_v37  ;;  %v1813_v37 = vpack.c.bf16 %v9664_v48, %v9459_v61  ;;  %v2009_v61 = vpack.c.bf16 %v9552_v12, %v9548_v10  ;;  %7365 = vmatpush3.bf16.msra.mxu1 %v8335_v60  ;;  %v2011_v10 = vpack.c.bf16 %v9571_v25, %v9567_v8  ;;  %v8315_v25 = vld [vmem:[%s9218_s27 + $0x1a8] sm:$0xff]  }
 0x2b6   : > { %7203 = vmatpush3.bf16.msra.mxu0 %v8294_v1  ;;  %7190 = vmatprep.mubr.bf16.mxu0 %v1622_v5  ;;  %v8310_v1 = vld [vmem:[%s9218_s27 + $0x180] sm:$0xff]   ;;  %v8336_v5 = vld [vmem:[%s9218_s27 + $0x290] sm:$0xff]   ;;  %v2012_v12 = vpack.c.bf16 %v9585_v4, %v9574_v13  ;;  %v2014_v8 = vpack.c.bf16 %v9605_v17, %v9594_v11 }
 0x2b7   : > { %7204 = vmatprep.subr.bf16.mxu0 %v8295_v0  ;;  %7366 = vmatprep.subr.bf16.mxu1 %v8336_v5  ;;  %v9693_v4 = vld [vmem:[#allocation2 + $0x89] sm:$0xff]  ;;  %v8318_v17 = vld [vmem:[%s9218_s27 + $0x1c0] sm:$0xff]  }
 0x2b8   : > { %v8316_v13 = vld [vmem:[%s9218_s27 + $0x1b0] sm:$0xff]  }
 0x2b9   : > { %7367 = vmatpush3.bf16.msra.mxu1 %v8336_v5  ;;  %v8320_v11 = vld [vmem:[%s9218_s27 + $0x1d0] sm:$0xff]  }
 0x2ba   : > { %7205 = vmatpush3.bf16.msra.mxu0 %v8295_v0  ;;  %v8312_v0 = vld [vmem:[%s9218_s27 + $0x190] sm:$0xff]  }
 0x2bb   : > { %7206 = vmatprep.subr.bf16.mxu0 %v8296_v19 }
 0x2bd   : > { %7191 = vmatmul.mubr.bf16.gmra.mrb[4].mxu0 %v1623_v7  ;;  %v2015_v7 = vpack.c.bf16 %v9693_v4, %v9607_v16  ;;  %v8321_v16 = vld [vmem:[%s9218_s27 + $0x1d8] sm:$0xff]  }
 0x2be   : > { %7207 = vmatpush3.bf16.msra.mxu0 %v8296_v19  ;;  %7194 = vmatprep.mubr.bf16.mxu0 %v1624_v58  ;;  %v2013_v19 = vpack.c.bf16 %v9591_v3, %v9587_v51  ;;  %v8317_v3 = vld [vmem:[%s9218_s27 + $0x1b8] sm:$0xff]   ;;  %v8319_v51 = vld [vmem:[%s9218_s27 + $0x1c8] sm:$0xff]   ;;  %v8324_v58 = vld [vmem:[%s9218_s27 + $0x1f0] sm:$0xff]  }
 0x2bf   : > { %7208 = vmatprep.subr.bf16.mxu0 %v8297_v57 }
 0x2c2   : > { %7209 = vmatpush3.bf16.msra.mxu0 %v8297_v57  ;;  %v8328_v57 = vld [vmem:[%s9218_s27 + $0x210] sm:$0xff]  }
 0x2c3   : > { %7210 = vmatprep.subr.bf16.mxu0 %v8298_v20 }
 0x2c5   : > { %7195 = vmatmul.mubr.bf16.gmra.mrb[8].mxu0 %v1625_v22  ;;  %v8330_v22 = vld [vmem:[%s9218_s27 + $0x220] sm:$0xff]  }
 0x2c6   : > { %7211 = vmatpush3.bf16.msra.mxu0 %v8298_v20  ;;  %7198 = vmatprep.mubr.bf16.mxu0 %v1626_v23  ;;  %v8329_v20 = vld [vmem:[%s9218_s27 + $0x218] sm:$0xff]  }
 0x2c7   : > { %7212 = vmatprep.subr.bf16.mxu0 %v8299_v26  ;;  %v11352_v23 = vld [vmem:[#allocation50_spill] sm:$0xff] }
 0x2ca   : > { %7213 = vmatpush3.bf16.msra.mxu0 %v8299_v26  ;;  %v2411_v26 = vld [vmem:[#allocation2 + $0x90] sm:$0xff] }
 0x2cb   : > { %7214 = vmatprep.subr.bf16.mxu0 %v8300_v30 }
 0x2cd   : > { %7199 = vmatmul.mubr.bf16.gmra.mrb[12].mxu0 %v1627_v31  ;;  %v11354_v31 = vld [vmem:[#allocation52_spill] sm:$0xff] }
 0x2ce   : > { %7215 = vmatpush3.bf16.msra.mxu0 %v8300_v30  ;;  %7218 = vmatprep.mubr.bf16.mxu0 %v1806_v43  ;;  %v2419_v30 = vpack.c.bf16 %v2411_v26, %v9664_v48  ;;  %v11355_v43 = vld [vmem:[#allocation53_spill] sm:$0xff] }
 0x2cf   : > { %7216 = vmatprep.subr.bf16.mxu0 %v8301_v46 }
 0x2d2   : > { %7217 = vmatpush3.bf16.msra.mxu0 %v8301_v46  ;;  %v11356_v46 = vld [vmem:[#allocation54_spill] sm:$0xff] }
 0x2d3   : > { %7234 = vmatprep.subr.bf16.mxu0 %v8302_v54 }
 0x2d5   : > { %7219 = vmatmul.mubr.bf16.vlgmr.msra.gmra.mrb[0].mxu0 %v1807_v59  ;;  %v11358_v59 = vld [vmem:[#allocation56_spill] sm:$0xff] }
 0x2d6   : > { %7235 = vmatpush3.bf16.msra.mxu0 %v8302_v54  ;;  %7222 = vmatprep.mubr.bf16.mxu0 %v1808_v18  ;;  %v11357_v54 = vld [vmem:[#allocation55_spill] sm:$0xff] }
 0x2d7   : > { %7236 = vmatprep.subr.bf16.mxu0 %v8303_v21  ;;  %v2613_v18 = vld [vmem:[#allocation2 + $0x91] sm:$0xff] }
 0x2da   : > { %7237 = vmatpush3.bf16.msra.mxu0 %v8303_v21  ;;  %v2621_v21 = vpack.c.bf16 %v2613_v18, %v9693_v4  ;;  %v11361_v4 = vld [vmem:[#allocation36_spill] sm:$0xff] }
 0x2db   : > { %7238 = vmatprep.subr.bf16.mxu0 %v8304_v27 }
 0x2dd   : > { %7223 = vmatmul.mubr.bf16.gmra.mrb[4].mxu0 %v1809_v34  ;;  %v8338_v34 = vld [vmem:[%s9218_s27 + $0x2a0] sm:$0xff]  }
 0x2de   : > { %7239 = vmatpush3.bf16.msra.mxu0 %v8304_v27  ;;  %7226 = vmatprep.mubr.bf16.mxu0 %v1810_v35  ;;  %v8337_v27 = vld [vmem:[%s9218_s27 + $0x298] sm:$0xff]   ;;  %v8339_v35 = vld [vmem:[%s9218_s27 + $0x2a8] sm:$0xff]  }
 0x2df   : > { %7240 = vmatprep.subr.bf16.mxu0 %v8305_v38  ;;  %7368 = vmatprep.subr.bf16.mxu1 %v8337_v27 }
 0x2e0   : > { %7369 = vmatpush3.bf16.msra.mxu1 %v8337_v27  ;;  %v11366_v27 = vld [vmem:[#allocation38_spill] sm:$0xff] }
 0x2e1   : > { %7370 = vmatprep.subr.bf16.mxu1 %v8338_v34 }
 0x2e2   : > { %7241 = vmatpush3.bf16.msra.mxu0 %v8305_v38  ;;  %v8342_v38 = vld [vmem:[%s9218_s27 + $0x240] sm:$0xff]  }
 0x2e3   : > { %7242 = vmatprep.subr.bf16.mxu0 %v8306_v40 }
 0x2e4   : > { %7371 = vmatpush3.bf16.msra.mxu1 %v8338_v34 }
 0x2e5   : > { %7227 = vmatmul.mubr.bf16.gmra.mrb[8].mxu0 %v1811_v44  ;;  %7372 = vmatprep.subr.bf16.mxu1 %v8339_v35 }
 0x2e6   : > { %7243 = vmatpush3.bf16.msra.mxu0 %v8306_v40  ;;  %7230 = vmatprep.mubr.bf16.mxu0 %v1812_v45  ;;  %v9746_v40 = vld [vmem:[%s9224_s22] ss:$0 sm:$0xff]  ;;  %v9749_v45 = vld [vmem:[%s9224_s22 + $0x1] ss:$0 sm:$0xff] }
 0x2e7   : > { %7244 = vmatprep.subr.bf16.mxu0 %v8307_v47 }
 0x2e8   : > { %7373 = vmatpush3.bf16.msra.mxu1 %v8339_v35 }
 0x2ea   : > { %7245 = vmatpush3.bf16.msra.mxu0 %v8307_v47 }
 0x2eb   : > { %7246 = vmatprep.subr.bf16.mxu0 %v8308_v52 }
 0x2ed   : > { %7231 = vmatmul.mubr.bf16.gmra.mrb[12].mxu0 %v1813_v37 }
 0x2ee   : > { %7247 = vmatpush3.bf16.msra.mxu0 %v8308_v52  ;;  %7250 = vmatprep.mubr.bf16.mxu0 %v2008_v53 }
 0x2ef   : > { %7248 = vmatprep.subr.bf16.mxu0 %v8309_v55 }
 0x2f2   : > { %7249 = vmatpush3.bf16.msra.mxu0 %v8309_v55 }
 0x2f3   : > { %7266 = vmatprep.subr.bf16.mxu0 %v8310_v1 }
 0x2f5   : > { %7251 = vmatmul.mubr.bf16.vlgmr.msra.gmra.mrb[0].mxu0 %v2009_v61 }
 0x2f6   : > { %7267 = vmatpush3.bf16.msra.mxu0 %v8310_v1  ;;  %7254 = vmatprep.mubr.bf16.mxu0 %v2010_v15 }
 0x2f7   : > { %7268 = vmatprep.subr.bf16.mxu0 %v8311_v36 }
 0x2fa   : > { %7269 = vmatpush3.bf16.msra.mxu0 %v8311_v36 }
 0x2fb   : > { %7270 = vmatprep.subr.bf16.mxu0 %v8312_v0 }
 0x2fd   : > { %7255 = vmatmul.mubr.bf16.gmra.mrb[4].mxu0 %v2011_v10 }
 0x2fe   : > { %7271 = vmatpush3.bf16.msra.mxu0 %v8312_v0  ;;  %7258 = vmatprep.mubr.bf16.mxu0 %v2012_v12  ;;  %v11359_v0 = vld [vmem:[#allocation35_spill] sm:$0xff] }
 0x2ff   : > { %7272 = vmatprep.subr.bf16.mxu0 %v8313_v6 }
 0x302   : > { %7273 = vmatpush3.bf16.msra.mxu0 %v8313_v6  ;;  %v2931_v6 = vld [vmem:[#allocation3 + $0x8] sm:$0xff] }
 0x303   : > { %7274 = vmatprep.subr.bf16.mxu0 %v8314_v9 }
 0x305   : > { %7259 = vmatmul.mubr.bf16.gmra.mrb[8].mxu0 %v2013_v19 }
 0x306   : > { %7275 = vmatpush3.bf16.msra.mxu0 %v8314_v9  ;;  %7262 = vmatprep.mubr.bf16.mxu0 %v2014_v8  ;;  %v11360_v9 = vld [vmem:[#allocation33_spill] sm:$0xff] }
 0x307   : > { %7276 = vmatprep.subr.bf16.mxu0 %v8315_v25 }
 0x30a   : > { %7277 = vmatpush3.bf16.msra.mxu0 %v8315_v25 }
 0x30b   : > { %7278 = vmatprep.subr.bf16.mxu0 %v8316_v13 }
 0x30d   : > { %7263 = vmatmul.mubr.bf16.gmra.mrb[12].mxu0 %v2015_v7 }
 0x30e   : > { %7279 = vmatpush3.bf16.msra.mxu0 %v8316_v13  ;;  %7282 = vmatprep.mubr.bf16.mxu0 %v9484_v39  ;;  %v8322_v39 = vld [vmem:[%s9218_s27 + $0x1e0] sm:$0xff]  }
 0x30f   : > { %7280 = vmatprep.subr.bf16.mxu0 %v8317_v3 }
 0x312   : > { %7281 = vmatpush3.bf16.msra.mxu0 %v8317_v3 }
 0x313   : > { %7298 = vmatprep.subr.bf16.mxu0 %v8318_v17 }
 0x315   : > { %7283 = vmatmul.mubr.bf16.vlgmr.msra.gmra.mrb[0].mxu0 %v9488_v24  ;;  %v8323_v24 = vld [vmem:[%s9218_s27 + $0x1e8] sm:$0xff]  }
 0x316   : > { %7299 = vmatpush3.bf16.msra.mxu0 %v8318_v17  ;;  %7286 = vmatprep.mubr.bf16.mxu0 %v9504_v32  ;;  %v2209_v32 = vld [vmem:[#allocation2 + $0x8f] sm:$0xff] }
 0x317   : > { %7300 = vmatprep.subr.bf16.mxu0 %v8319_v51  ;;  %v11362_v17 = vld [vmem:[#allocation34_spill] sm:$0xff] }
 0x31a   : > { %7301 = vmatpush3.bf16.msra.mxu0 %v8319_v51 }
 0x31b   : > { %7302 = vmatprep.subr.bf16.mxu0 %v8320_v11 }
 0x31d   : > { %7287 = vmatmul.mubr.bf16.gmra.mrb[4].mxu0 %v9508_v33  ;;  %v2217_v33 = vpack.c.bf16 %v2209_v32, %v9638_v28  ;;  %v8332_v28 = vld [vmem:[%s9218_s27 + $0x230] sm:$0xff]  }
 0x31e   : > { %7303 = vmatpush3.bf16.msra.mxu0 %v8320_v11  ;;  %7290 = vmatprep.mubr.bf16.mxu0 %v9524_v62  ;;  %v8325_v62 = vld [vmem:[%s9218_s27 + $0x1f8] sm:$0xff]  }
 0x31f   : > { %7304 = vmatprep.subr.bf16.mxu0 %v8321_v16 }
 0x322   : > { %7305 = vmatpush3.bf16.msra.mxu0 %v8321_v16 }
 0x323   : > { %7306 = vmatprep.subr.bf16.mxu0 %v8322_v39 }
 0x325   : > { %7291 = vmatmul.mubr.bf16.gmra.mrb[8].mxu0 %v9528_v63  ;;  %v8326_v63 = vld [vmem:[%s9218_s27 + $0x200] sm:$0xff]  }
 0x326   : > { %7307 = vmatpush3.bf16.msra.mxu0 %v8322_v39  ;;  %7294 = vmatprep.mubr.bf16.mxu0 %v9542_v14  ;;  %v8327_v14 = vld [vmem:[%s9218_s27 + $0x208] sm:$0xff]  }
 0x327   : > { %7308 = vmatprep.subr.bf16.mxu0 %v8323_v24 }
 0x32a   : > { %7309 = vmatpush3.bf16.msra.mxu0 %v8323_v24 }
 0x32b   : > { %7310 = vmatprep.subr.bf16.mxu0 %v8324_v58 }
 0x32d   : > { %7295 = vmatmul.mubr.bf16.gmra.mrb[12].mxu0 %v2217_v33 }
 0x32e   : > { %7311 = vmatpush3.bf16.msra.mxu0 %v8324_v58  ;;  %7314 = vmatprep.mubr.bf16.mxu0 %v9410_v41  ;;  %v11351_v41 = vld [vmem:[#allocation49_spill] sm:$0xff] }
 0x32f   : > { %7312 = vmatprep.subr.bf16.mxu0 %v8325_v62 }
 0x332   : > { %7313 = vmatpush3.bf16.msra.mxu0 %v8325_v62 }
 0x333   : > { %7330 = vmatprep.subr.bf16.mxu0 %v8326_v63 }
 0x335   : > { %7315 = vmatmul.mubr.bf16.vlgmr.msra.gmra.mrb[0].mxu0 %v9414_v42  ;;  %v8331_v42 = vld [vmem:[%s9218_s27 + $0x228] sm:$0xff]  }
 0x336   : > { %7331 = vmatpush3.bf16.msra.mxu0 %v8326_v63  ;;  %7318 = vmatprep.mubr.bf16.mxu0 %v9430_v49  ;;  %v11353_v49 = vld [vmem:[#allocation51_spill] sm:$0xff] }
 0x337   : > { %7332 = vmatprep.subr.bf16.mxu0 %v8327_v14 }
 0x33a   : > { %7333 = vmatpush3.bf16.msra.mxu0 %v8327_v14 }
 0x33b   : > { %7334 = vmatprep.subr.bf16.mxu0 %v8328_v57 }
 0x33d   : > { %7319 = vmatmul.mubr.bf16.gmra.mrb[4].mxu0 %v9434_v50  ;;  %v8333_v50 = vld [vmem:[%s9218_s27 + $0x238] sm:$0xff]  }
 0x33e   : > { %7335 = vmatpush3.bf16.msra.mxu0 %v8328_v57  ;;  %7322 = vmatprep.mubr.bf16.mxu0 %v11351_v41  ;;  %v8343_v57 = vld [vmem:[%s9218_s27 + $0x248] sm:$0xff]  }
 0x33f   : > { %7336 = vmatprep.subr.bf16.mxu0 %v8329_v20 }
 0x342   : > { %7337 = vmatpush3.bf16.msra.mxu0 %v8329_v20 }
 0x343   : > { %7338 = vmatprep.subr.bf16.mxu0 %v8330_v22 }
 0x345   : > { %7323 = vmatmul.mubr.bf16.gmra.mrb[8].mxu0 %v11352_v23 }
 0x346   : > { %7339 = vmatpush3.bf16.msra.mxu0 %v8330_v22  ;;  %7326 = vmatprep.mubr.bf16.mxu0 %v11353_v49  ;;  %v11363_v49 = vld [vmem:[#allocation39_spill] sm:$0xff] }
 0x347   : > { %7340 = vmatprep.subr.bf16.mxu0 %v8331_v42 }
 0x34a   : > { %7341 = vmatpush3.bf16.msra.mxu0 %v8331_v42 }
 0x34b   : > { %7342 = vmatprep.subr.bf16.mxu0 %v8332_v28 }
 0x34d   : > { %7327 = vmatmul.mubr.bf16.gmra.mrb[12].mxu0 %v2419_v30  ;;  %v11364_v30 = vld [vmem:[#allocation37_spill] sm:$0xff] }
 0x34e   : > { %7343 = vmatpush3.bf16.msra.mxu0 %v8332_v28  ;;  %7346 = vmatprep.mubr.bf16.mxu0 %v11354_v31 }
 0x34f   : > { %7344 = vmatprep.subr.bf16.mxu0 %v8333_v50 }
 0x352   : > { %7345 = vmatpush3.bf16.msra.mxu0 %v8333_v50 }
 0x355   : > { %7347 = vmatmul.mubr.bf16.vlgmr.msra.gmra.mrb[0].mxu0 %v11355_v43 }
 0x356   : > { %7350 = vmatprep.mubr.bf16.mxu0 %v11356_v46  ;;  %v8344_v46 = vld [vmem:[%s9218_s27 + $0x250] sm:$0xff]  }
 0x35d   : > { %7351 = vmatmul.mubr.bf16.gmra.mrb[4].mxu0 %v11357_v54  ;;  %v11365_v54 = vld [vmem:[#allocation40_spill] sm:$0xff] }
 0x35e   : > { %7354 = vmatprep.mubr.bf16.mxu0 %v9598_v29  ;;  %v8340_v29 = vld [vmem:[%s9218_s27 + $0x2b0] sm:$0xff]  }
 0x35f   : > { %7374 = vmatprep.subr.bf16.mxu1 %v8340_v29 }
 0x360   : > { %7375 = vmatpush3.bf16.msra.mxu1 %v8340_v29 }
 0x365   : > { %7355 = vmatmul.mubr.bf16.gmra.mrb[8].mxu0 %v11358_v59 }
 0x366   : > { %7358 = vmatprep.mubr.bf16.mxu0 %v9614_v2  ;;  %v8341_v2 = vld [vmem:[%s9218_s27 + $0x2b8] sm:$0xff]  }
 0x367   : > { %7376 = vmatprep.subr.bf16.mxu1 %v8341_v2 }
 0x368   : > { %7377 = vmatpush3.bf16.msra.mxu1 %v8341_v2 }
 0x369   : > { %7394 = vmatprep.subr.bf16.mxu1 %v8342_v38 }
 0x36d   : > { %7359 = vmatmul.mubr.bf16.gmra.mrb[12].mxu0 %v2621_v21 }
 0x428   : > { %v7348_v44 = vpop.f32.mrb[0].mxu0 }
 0x429   : > { %v2807_v47 = vmul.f32 %v7348_v44, %v9746_v40  ;;  %v2721_v48 = vpop.f32.mrb[1].mxu0 }
 0x42a   : > { %v2805_v52 = vmul.f32 %v9746_v40, %v2721_v48  ;;  %v7349_v37 = vpop.f32.mrb[2].mxu0 }
 0x42b   : > { %v2828_v53 = vadd.f32 %v9749_v45, %v2807_v47  ;;  %v2808_v55 = vmul.f32 %v7349_v37, %v9746_v40  ;;  %v2724_v56 = vpop.f32.mrb[3].mxu0 }
 0x42c   : > { %v2826_v60 = vadd.f32 %v9749_v45, %v2805_v52  ;;  %v2806_v1 = vmul.f32 %v9746_v40, %v2724_v56 }
 0x42d   : > { %v2844_v61 = vmax.f32 %v2828_v53, 0.0  ;;  %v2829_v5 = vadd.f32 %v9749_v45, %v2808_v55  ;;  %v8345_v55 = vld [vmem:[%s9218_s27 + $0x258] sm:$0xff]  }
 0x42e   : > { %v2842_v15 = vmax.f32 %v2826_v60, 0.0  ;;  %v2827_v36 = vadd.f32 %v9749_v45, %v2806_v1 }
 0x42f   : > { %v9760_v10 = vmul.f32 %v2844_v61, %v11359_v0  ;;  %v2845_v12 = vmax.f32 %v2829_v5, 0.0  ;;  %v8365_v0 = vld [vmem:[%s9218_s27 + $0x338] sm:$0xff]  }
 0x430   : > { %v9763_v19 = vmul.f32 %v2842_v15, %v11360_v9  ;;  %v2843_v8 = vmax.f32 %v2827_v36, 0.0  ;;  %v7352_v25 = vpop.f32.mrb[4].mxu0  ;;  %v11367_v36 = vld [vmem:[#allocation43_spill] sm:$0xff] }
 0x431   : > { %2876 = vst [vmem:[#allocation3 + $0x20] sm:$0xff] %v9760_v10  ;;  %v9767_v13 = vmul.f32 %v2845_v12, %v11361_v4  ;;  %v2811_v7 = vmul.f32 %v7352_v25, %v9746_v40  ;;  %v2737_v3 = vpop.f32.mrb[5].mxu0  ;;  %v11368_v25 = vld [vmem:[#allocation41_spill] sm:$0xff] }
 0x432   : > { %2874 = vst [vmem:[#allocation3 + $0x10] sm:$0xff] %v9763_v19  ;;  %v9772_v51 = vmul.f32 %v2843_v8, %v11362_v17  ;;  %v2809_v11 = vmul.f32 %v9746_v40, %v2737_v3  ;;  %v7353_v16 = vpop.f32.mrb[6].mxu0  ;;  %v2947_v39 = vpack.c.bf16 %v9763_v19, %v2931_v6  ;;  %v8353_v8 = vld [vmem:[%s9218_s27 + $0x2d8] sm:$0xff]   ;;  %v8363_v17 = vld [vmem:[%s9218_s27 + $0x328] sm:$0xff]  }
 0x433   : > { %2877 = vst [vmem:[#allocation3 + $0x28] sm:$0xff] %v9767_v13  ;;  %v2832_v24 = vadd.f32 %v9749_v45, %v2811_v7  ;;  %v2812_v32 = vmul.f32 %v7353_v16, %v9746_v40  ;;  %v2740_v58 = vpop.f32.mrb[7].mxu0  ;;  %v8346_v16 = vld [vmem:[%s9218_s27 + $0x260] sm:$0xff]  }
 0x434   : > { %2875 = vst [vmem:[#allocation3 + $0x18] sm:$0xff] %v9772_v51  ;;  %v2830_v62 = vadd.f32 %v9749_v45, %v2809_v11  ;;  %v2810_v63 = vmul.f32 %v9746_v40, %v2740_v58  ;;  %7378 = vmatprep.mubr.bf16.mxu1 %v2947_v39  ;;  %v2948_v14 = vpack.c.bf16 %v9760_v10, %v9772_v51 }
 0x435   : > { %v2848_v41 = vmax.f32 %v2832_v24, 0.0  ;;  %v2833_v22 = vadd.f32 %v9749_v45, %v2812_v32  ;;  %v11369_v24 = vld [vmem:[#allocation44_spill] sm:$0xff] }
 0x436   : > { %v2846_v42 = vmax.f32 %v2830_v62, 0.0  ;;  %v2831_v23 = vadd.f32 %v9749_v45, %v2810_v63  ;;  %7379 = vmatmul.mubr.bf16.vlgmr.msra.gmra.mrb[0].mxu1 %v2948_v14  ;;  %v11370_v14 = vld [vmem:[#allocation42_spill] sm:$0xff] }
 0x437   : > { %v9792_v26 = vmul.f32 %v2848_v41, %v11363_v49  ;;  %v2849_v28 = vmax.f32 %v2833_v22, 0.0  ;;  %7395 = vmatpush3.bf16.msra.mxu1 %v8342_v38 }
 0x438   : > { %v9795_v50 = vmul.f32 %v2846_v42, %v11364_v30  ;;  %v2847_v31 = vmax.f32 %v2831_v23, 0.0  ;;  %v7356_v43 = vpop.f32.mrb[8].mxu0  ;;  %7396 = vmatprep.subr.bf16.mxu1 %v8343_v57  ;;  %v8359_v30 = vld [vmem:[%s9218_s27 + $0x308] sm:$0xff]  }
 0x439   : > { %2880 = vst [vmem:[#allocation3 + $0x40] sm:$0xff] %v9792_v26  ;;  %v9800_v59 = vmul.f32 %v2849_v28, %v11365_v54  ;;  %v2815_v18 = vmul.f32 %v7356_v43, %v9746_v40  ;;  %v2753_v21 = vpop.f32.mrb[9].mxu0 }
 0x43a   : > { %2878 = vst [vmem:[#allocation3 + $0x30] sm:$0xff] %v9795_v50  ;;  %v9805_v34 = vmul.f32 %v2847_v31, %v11366_v27  ;;  %v2813_v35 = vmul.f32 %v9746_v40, %v2753_v21  ;;  %v7357_v29 = vpop.f32.mrb[10].mxu0  ;;  %v2949_v2 = vpack.c.bf16 %v9795_v50, %v9767_v13  ;;  %v9852_v23 = vld [vmem:[#allocation3 + $0x21] sm:$0xff]  ;;  %v8357_v27 = vld [vmem:[%s9218_s27 + $0x2f8] sm:$0xff]  }
 0x43b   : > { %2881 = vst [vmem:[#allocation3 + $0x48] sm:$0xff] %v9800_v59  ;;  %v2836_v38 = vadd.f32 %v9749_v45, %v2815_v18  ;;  %v2816_v44 = vmul.f32 %v7357_v29, %v9746_v40  ;;  %v2756_v47 = vpop.f32.mrb[11].mxu0  ;;  %7397 = vmatpush3.bf16.msra.mxu1 %v8343_v57  ;;  %v9822_v1 = vld [vmem:[#allocation3 + $0x11] sm:$0xff]  ;;  %v9824_v61 = vld [vmem:[#allocation3 + $0x19] sm:$0xff] }
 0x43c   : > { %2879 = vst [vmem:[#allocation3 + $0x38] sm:$0xff] %v9805_v34  ;;  %v2834_v52 = vadd.f32 %v9749_v45, %v2813_v35  ;;  %v2814_v37 = vmul.f32 %v9746_v40, %v2756_v47  ;;  %7382 = vmatprep.mubr.bf16.mxu1 %v2949_v2  ;;  %v2950_v53 = vpack.c.bf16 %v9792_v26, %v9805_v34  ;;  %v8347_v2 = vld [vmem:[%s9218_s27 + $0x268] sm:$0xff]  }
 0x43d   : > { %7398 = vmatprep.subr.bf16.mxu1 %v8344_v46  ;;  %v2852_v56 = vmax.f32 %v2836_v38, 0.0  ;;  %v2837_v60 = vadd.f32 %v9749_v45, %v2816_v44  ;;  %v8351_v18 = vld [vmem:[%s9218_s27 + $0x2c8] sm:$0xff]  }
 0x43e   : > { %v2850_v5 = vmax.f32 %v2834_v52, 0.0  ;;  %v2835_v15 = vadd.f32 %v9749_v45, %v2814_v37  ;;  %7383 = vmatmul.mubr.bf16.gmra.mrb[4].mxu1 %v2950_v53 }
 0x43f   : > { %v9828_v12 = vmul.f32 %v2852_v56, %v11367_v36  ;;  %v2853_v6 = vmax.f32 %v2837_v60, 0.0  ;;  %7399 = vmatpush3.bf16.msra.mxu1 %v8344_v46  ;;  %v3262_v36 = vld [vmem:[#allocation3 + $0x9] sm:$0xff] }
 0x440   : > { %v9833_v7 = vmul.f32 %v2850_v5, %v11368_v25  ;;  %v2851_v3 = vmax.f32 %v2835_v15, 0.0  ;;  %v7360_v11 = vpop.f32.mrb[12].mxu0  ;;  %7400 = vmatprep.subr.bf16.mxu1 %v8345_v55  ;;  %v11372_v5 = vld [vmem:[#allocation45_spill] sm:$0xff]  ;;  %v3278_v54 = vpack.c.bf16 %v9822_v1, %v3262_v36 }
 0x441   : > { %2884 = vst [vmem:[#allocation3 + $0x60] sm:$0xff] %v9828_v12  ;;  %v9840_v32 = vmul.f32 %v2853_v6, %v11369_v24  ;;  %v2819_v58 = vmul.f32 %v7360_v11, %v9746_v40  ;;  %v2769_v62 = vpop.f32.mrb[13].mxu0  ;;  %v9843_v63 = vld [vmem:[#allocation3 + $0x29] sm:$0xff] }
 0x442   : > { %2882 = vst [vmem:[#allocation3 + $0x50] sm:$0xff] %v9833_v7  ;;  %v9847_v57 = vmul.f32 %v2851_v3, %v11370_v14  ;;  %v2817_v41 = vmul.f32 %v9746_v40, %v2769_v62  ;;  %v7361_v22 = vpop.f32.mrb[14].mxu0  ;;  %v2951_v42 = vpack.c.bf16 %v9833_v7, %v9800_v59  ;;  %v8348_v3 = vld [vmem:[%s9218_s27 + $0x270] sm:$0xff]   ;;  %v8361_v36 = vld [vmem:[%s9218_s27 + $0x318] sm:$0xff]  }
 0x443   : > { %2885 = vst [vmem:[#allocation3 + $0x68] sm:$0xff] %v9840_v32  ;;  %v2840_v28 = vadd.f32 %v9749_v45, %v2819_v58  ;;  %v2820_v31 = vmul.f32 %v7361_v22, %v9746_v40  ;;  %v2772_v43 = vpop.f32.mrb[15].mxu0  ;;  %7401 = vmatpush3.bf16.msra.mxu1 %v8345_v55  ;;  %v9868_v47 = vld [vmem:[#allocation3 + $0x31] sm:$0xff]  ;;  %v9870_v52 = vld [vmem:[#allocation3 + $0x39] sm:$0xff]  ;;  %v9888_v62 = vld [vmem:[#allocation3 + $0x41] sm:$0xff] }
 0x444   : > { %2883 = vst [vmem:[#allocation3 + $0x58] sm:$0xff] %v9847_v57  ;;  %v2838_v21 = vadd.f32 %v9749_v45, %v2817_v41  ;;  %v2818_v35 = vmul.f32 %v9746_v40, %v2772_v43  ;;  %7386 = vmatprep.mubr.bf16.mxu1 %v2951_v42  ;;  %v2952_v29 = vpack.c.bf16 %v9828_v12, %v9847_v57  ;;  %v11371_v55 = vld [vmem:[#allocation47_spill] sm:$0xff]  ;;  %v11374_v41 = vld [vmem:[#allocation46_spill] sm:$0xff]  ;;  %v9953_v46 = vld [vmem:[#allocation3 + $0x3f] sm:$0xff] }
 0x445   : > { %7402 = vmatprep.subr.bf16.mxu1 %v8346_v16  ;;  %v2856_v38 = vmax.f32 %v2840_v28, 0.0  ;;  %v2841_v44 = vadd.f32 %v9749_v45, %v2820_v31  ;;  %v2890_v28 = vld [vmem:[#allocation3 + $0x7] sm:$0xff]  ;;  %v9898_v31 = vld [vmem:[#allocation3 + $0xf] sm:$0xff]  ;;  %v10010_v49 = vpack.c.bf16 %v9868_v47, %v9843_v63 }
 0x446   : > { %v2854_v37 = vmax.f32 %v2838_v21, 0.0  ;;  %v2839_v53 = vadd.f32 %v9749_v45, %v2818_v35  ;;  %7387 = vmatmul.mubr.bf16.gmra.mrb[8].mxu1 %v2952_v29  ;;  %v11373_v45 = vld [vmem:[#allocation48_spill] sm:$0xff] }
 0x447   : > { %v9874_v40 = vmul.f32 %v2856_v38, %v11371_v55  ;;  %v2857_v56 = vmax.f32 %v2841_v44, 0.0  ;;  %7403 = vmatpush3.bf16.msra.mxu1 %v8346_v16  ;;  %v8349_v38 = vld [vmem:[%s9218_s27 + $0x278] sm:$0xff]   ;;  %v8355_v55 = vld [vmem:[%s9218_s27 + $0x2e8] sm:$0xff]  }
 0x448   : > { %v9879_v15 = vmul.f32 %v2854_v37, %v11372_v5  ;;  %v2855_v6 = vmax.f32 %v2839_v53, 0.0  ;;  %7404 = vmatprep.subr.bf16.mxu1 %v8347_v2  ;;  %v2906_v37 = vpack.c.bf16 %v9898_v31, %v2890_v28  ;;  %v9927_v28 = vld [vmem:[#allocation3 + $0x2f] sm:$0xff] }
 0x449   : > { %2888 = vst [vmem:[#allocation3 + $0x80] sm:$0xff] %v9874_v40  ;;  %v9886_v58 = vmul.f32 %v2857_v56, %v11373_v45  ;;  %v9890_v16 = vld [vmem:[#allocation3 + $0x49] sm:$0xff]  ;;  %v9918_v56 = vld [vmem:[#allocation3 + $0x17] sm:$0xff] }
 0x44a   : > { %2886 = vst [vmem:[#allocation3 + $0x70] sm:$0xff] %v9879_v15  ;;  %v9894_v22 = vmul.f32 %v2855_v6, %v11374_v41  ;;  %v2953_v42 = vpack.c.bf16 %v9879_v15, %v9840_v32  ;;  %v8350_v6 = vld [vmem:[%s9218_s27 + $0x2c0] sm:$0xff]   ;;  %v9923_v43 = vld [vmem:[#allocation3 + $0x61] sm:$0xff] }
 0x44b   : > { %2889 = vst [vmem:[#allocation3 + $0x88] sm:$0xff] %v9886_v58  ;;  %7405 = vmatpush3.bf16.msra.mxu1 %v8347_v2  ;;  %v9903_v21 = vld [vmem:[#allocation3 + $0x51] sm:$0xff]  ;;  %v9911_v44 = vld [vmem:[#allocation3 + $0x59] sm:$0xff]  ;;  %v9981_v5 = vld [vmem:[#allocation3 + $0x67] sm:$0xff] }
 0x44c   : > { %2887 = vst [vmem:[#allocation3 + $0x78] sm:$0xff] %v9894_v22  ;;  %7390 = vmatprep.mubr.bf16.mxu1 %v2953_v42  ;;  %v2954_v29 = vpack.c.bf16 %v9874_v40, %v9894_v22  ;;  %7406 = vmatprep.subr.bf16.mxu1 %v8348_v3  ;;  %v9921_v42 = vld [vmem:[#allocation3 + $0x1f] sm:$0xff]  ;;  %v9951_v2 = vld [vmem:[#allocation3 + $0x37] sm:$0xff]  ;;  %v9955_v60 = vld [vmem:[#allocation3 + $0x4f] sm:$0xff] }
 0x44d   : > { %v9959_v48 = vpack.c.bf16 %v9953_v46, %v9951_v2  ;;  %v9971_v33 = vld [vmem:[#allocation3 + $0x57] sm:$0xff]  ;;  %v9973_v20 = vld [vmem:[#allocation3 + $0x5f] sm:$0xff] }
 0x44e   : > { %7391 = vmatmul.mubr.bf16.gmra.mrb[12].mxu1 %v2954_v29  ;;  %v8352_v29 = vld [vmem:[%s9218_s27 + $0x2d0] sm:$0xff]   ;;  %v9979_v45 = vpack.c.bf16 %v9973_v20, %v9971_v33 }
 0x44f   : > { %7407 = vmatpush3.bf16.msra.mxu1 %v8348_v3  ;;  %7410 = vmatprep.mubr.bf16.mxu1 %v2906_v37  ;;  %v9935_v3 = vpack.c.bf16 %v9921_v42, %v9918_v56  ;;  %v9937_v37 = vld [vmem:[#allocation3 + $0x27] sm:$0xff] }
 0x450   : > { %7408 = vmatprep.subr.bf16.mxu1 %v8349_v38  ;;  %v9944_v35 = vpack.c.bf16 %v9927_v28, %v9937_v37 }
 0x451   : > { %v9925_v11 = vld [vmem:[#allocation3 + $0x69] sm:$0xff] }
 0x452   : > { %v9975_v41 = vld [vmem:[#allocation3 + $0x6f] sm:$0xff] }
 0x453   : > { %7409 = vmatpush3.bf16.msra.mxu1 %v8349_v38  ;;  %v9931_v53 = vld [vmem:[#allocation3 + $0x71] sm:$0xff]  ;;  %v9940_v39 = vld [vmem:[#allocation3 + $0x79] sm:$0xff]  ;;  %v9961_v38 = vld [vmem:[#allocation3 + $0x47] sm:$0xff] }
 0x454   : > { %7426 = vmatprep.subr.bf16.mxu1 %v8350_v6  ;;  %v9991_v14 = vld [vmem:[#allocation3 + $0x77] sm:$0xff]  ;;  %v9993_v24 = vld [vmem:[#allocation3 + $0x7f] sm:$0xff]  ;;  %v10034_v4 = vpack.c.bf16 %v9931_v53, %v9925_v11 }
 0x455   : > { %v9997_v25 = vpack.c.bf16 %v9993_v24, %v9991_v14 }
 0x456   : > { %7411 = vmatmul.mubr.bf16.vlgmr.msra.gmra.mrb[0].mxu1 %v9935_v3  ;;  %11377 = vst [vmem:[#allocation51_spill] sm:$0xff] %v10034_v4 }
 0x457   : > { %7414 = vmatprep.mubr.bf16.mxu1 %v9944_v35  ;;  %7427 = vmatpush3.bf16.msra.mxu1 %v8350_v6  ;;  %v9966_v6 = vpack.c.bf16 %v9955_v60, %v9961_v38 }
 0x458   : > { %7428 = vmatprep.subr.bf16.mxu1 %v8351_v18 }
 0x45b   : > { %7429 = vmatpush3.bf16.msra.mxu1 %v8351_v18  ;;  %v8354_v18 = vld [vmem:[%s9218_s27 + $0x2e0] sm:$0xff]  }
 0x45c   : > { %7430 = vmatprep.subr.bf16.mxu1 %v8352_v29 }
 0x45e   : > { %7415 = vmatmul.mubr.bf16.gmra.mrb[4].mxu1 %v9959_v48 }
 0x45f   : > { %7418 = vmatprep.mubr.bf16.mxu1 %v9966_v6  ;;  %7431 = vmatpush3.bf16.msra.mxu1 %v8352_v29  ;;  %v9986_v29 = vpack.c.bf16 %v9975_v41, %v9981_v5 }
 0x460   : > { %7432 = vmatprep.subr.bf16.mxu1 %v8353_v8 }
 0x463   : > { %7433 = vmatpush3.bf16.msra.mxu1 %v8353_v8  ;;  %v8356_v8 = vld [vmem:[%s9218_s27 + $0x2f0] sm:$0xff]  }
 0x464   : > { %7434 = vmatprep.subr.bf16.mxu1 %v8354_v18 }
 0x466   : > { %7419 = vmatmul.mubr.bf16.gmra.mrb[8].mxu1 %v9979_v45 }
 0x467   : > { %7422 = vmatprep.mubr.bf16.mxu1 %v9986_v29  ;;  %7435 = vmatpush3.bf16.msra.mxu1 %v8354_v18  ;;  %v8358_v18 = vld [vmem:[%s9218_s27 + $0x300] sm:$0xff]  }
 0x468   : > { %7436 = vmatprep.subr.bf16.mxu1 %v8355_v55 }
 0x46b   : > { %7437 = vmatpush3.bf16.msra.mxu1 %v8355_v55  ;;  %v10005_v55 = vpack.c.bf16 %v9852_v23, %v9824_v61 }
 0x46c   : > { %7438 = vmatprep.subr.bf16.mxu1 %v8356_v8 }
 0x46e   : > { %7423 = vmatmul.mubr.bf16.gmra.mrb[12].mxu1 %v9997_v25 }
 0x46f   : > { %7439 = vmatpush3.bf16.msra.mxu1 %v8356_v8  ;;  %7442 = vmatprep.mubr.bf16.mxu1 %v3278_v54  ;;  %v8360_v54 = vld [vmem:[%s9218_s27 + $0x310] sm:$0xff]   ;;  %v10022_v8 = vpack.c.bf16 %v9903_v21, %v9890_v16 }
 0x470   : > { %7440 = vmatprep.subr.bf16.mxu1 %v8357_v27 }
 0x471   : > { %11375 = vst [vmem:[#allocation49_spill] sm:$0xff] %v10022_v8 }
 0x473   : > { %7441 = vmatpush3.bf16.msra.mxu1 %v8357_v27  ;;  %v10017_v27 = vpack.c.bf16 %v9888_v62, %v9870_v52 }
 0x474   : > { %7458 = vmatprep.subr.bf16.mxu1 %v8358_v18 }
 0x476   : > { %7443 = vmatmul.mubr.bf16.vlgmr.msra.gmra.mrb[0].mxu1 %v10005_v55 }
 0x477   : > { %7446 = vmatprep.mubr.bf16.mxu1 %v10010_v49  ;;  %7459 = vmatpush3.bf16.msra.mxu1 %v8358_v18  ;;  %v8362_v18 = vld [vmem:[%s9218_s27 + $0x320] sm:$0xff]  }
 0x478   : > { %7460 = vmatprep.subr.bf16.mxu1 %v8359_v30 }
 0x47b   : > { %7461 = vmatpush3.bf16.msra.mxu1 %v8359_v30  ;;  %v10029_v30 = vpack.c.bf16 %v9923_v43, %v9911_v44 }
 0x47c   : > { %7462 = vmatprep.subr.bf16.mxu1 %v8360_v54 }
 0x47d   : > { %11376 = vst [vmem:[#allocation50_spill] sm:$0xff] %v10029_v30 }
 0x47e   : > { %7447 = vmatmul.mubr.bf16.gmra.mrb[4].mxu1 %v10017_v27 }
 0x47f   : > { %7450 = vmatprep.mubr.bf16.mxu1 %v10022_v8  ;;  %7463 = vmatpush3.bf16.msra.mxu1 %v8360_v54  ;;  %v8364_v54 = vld [vmem:[%s9218_s27 + $0x330] sm:$0xff]   ;;  %v3480_v8 = vpack.c.bf16 %v9918_v56, %v9898_v31  ;;  %v3483_v56 = vpack.c.bf16 %v9961_v38, %v9953_v46  ;;  %v3486_v46 = vpack.c.bf16 %v9991_v14, %v9975_v41  ;;  %v8375_v41 = vld [vmem:[%s9218_s27 + $0x388] sm:$0xff]  }
 0x480   : > { %7464 = vmatprep.subr.bf16.mxu1 %v8361_v36  ;;  %v8368_v31 = vld [vmem:[%s9218_s27 + $0x350] sm:$0xff]   ;;  %v11378_v14 = vpack.c.bf16 %v9772_v51, %v9763_v19  ;;  %v11379_v38 = vpack.c.bf16 %v9767_v13, %v9760_v10  ;;  %v8377_v19 = vld [vmem:[%s9218_s27 + $0x398] sm:$0xff]   ;;  %v11381_v51 = vpack.c.bf16 %v9800_v59, %v9792_v26  ;;  %v11382_v10 = vpack.c.bf16 %v9847_v57, %v9833_v7  ;;  %v8378_v13 = vld [vmem:[%s9218_s27 + $0x3a0] sm:$0xff]  }
 0x481   : > { %v11384_v26 = vpack.c.bf16 %v9894_v22, %v9879_v15  ;;  %v8380_v59 = vld [vmem:[%s9218_s27 + $0x3b0] sm:$0xff]   ;;  %v8381_v7 = vld [vmem:[%s9218_s27 + $0x3b8] sm:$0xff]   ;;  %v11385_v57 = vpack.c.bf16 %v9886_v58, %v9874_v40  ;;  %v8383_v15 = vld [vmem:[%s9218_s27 + $0x3c8] sm:$0xff]   ;;  %v11387_v22 = vpack.c.bf16 %v9843_v63, %v9852_v23  ;;  %v11388_v40 = vpack.c.bf16 %v9870_v52, %v9868_v47 }
 0x482   : > { %v8384_v58 = vld [vmem:[%s9218_s27 + $0x3d0] sm:$0xff]   ;;  %v11390_v63 = vpack.c.bf16 %v9911_v44, %v9903_v21  ;;  %v8386_v23 = vld [vmem:[%s9218_s27 + $0x3e0] sm:$0xff]   ;;  %v8387_v47 = vld [vmem:[%s9218_s27 + $0x3e8] sm:$0xff]   ;;  %v11391_v52 = vpack.c.bf16 %v9925_v11, %v9923_v43 }
 0x483   : > { %7465 = vmatpush3.bf16.msra.mxu1 %v8361_v36  ;;  %v10039_v36 = vld [vmem:[#allocation3 + $0x81] sm:$0xff]  ;;  %v10133_v21 = vld [vmem:[#allocation3 + $0x89] sm:$0xff] }
 0x484   : > { %7466 = vmatprep.subr.bf16.mxu1 %v8362_v18  ;;  %v10043_v9 = vpack.c.bf16 %v10039_v36, %v9940_v39  ;;  %v3891_v44 = vpack.c.bf16 %v10133_v21, %v10039_v36  ;;  %v8391_v11 = vld [vmem:[%s9218_s27 + $0x408] sm:$0xff]   ;;  %v8392_v43 = vld [vmem:[%s9218_s27 + $0x410] sm:$0xff]  }
 0x485   : > { %v4272_v36 = vld [vmem:[#allocation3 + $0x18] sm:$0xff] }
 0x486   : > { %7451 = vmatmul.mubr.bf16.gmra.mrb[8].mxu1 %v10029_v30  ;;  %v3482_v30 = vpack.c.bf16 %v9951_v2, %v9927_v28  ;;  %v8370_v2 = vld [vmem:[%s9218_s27 + $0x360] sm:$0xff]   ;;  %v3485_v28 = vpack.c.bf16 %v9981_v5, %v9973_v20  ;;  %v8373_v20 = vld [vmem:[%s9218_s27 + $0x378] sm:$0xff]  }
 0x487   : > { %7454 = vmatprep.mubr.bf16.mxu1 %v10034_v4  ;;  %7467 = vmatpush3.bf16.msra.mxu1 %v8362_v18  ;;  %v8366_v18 = vld [vmem:[%s9218_s27 + $0x340] sm:$0xff]   ;;  %v8367_v4 = vld [vmem:[%s9218_s27 + $0x348] sm:$0xff]  }
 0x488   : > { %7468 = vmatprep.subr.bf16.mxu1 %v8363_v17  ;;  %v8374_v5 = vld [vmem:[%s9218_s27 + $0x380] sm:$0xff]  }
 0x48b   : > { %7469 = vmatpush3.bf16.msra.mxu1 %v8363_v17  ;;  %v3481_v17 = vpack.c.bf16 %v9937_v37, %v9921_v42  ;;  %v3484_v42 = vpack.c.bf16 %v9971_v33, %v9955_v60  ;;  %v8372_v33 = vld [vmem:[%s9218_s27 + $0x370] sm:$0xff]  }
 0x48c   : > { %7470 = vmatprep.subr.bf16.mxu1 %v8364_v54  ;;  %v10068_v60 = vld [vmem:[#allocation3 + $0x87] sm:$0xff] }
 0x48d   : > { %v3487_v37 = vpack.c.bf16 %v10068_v60, %v9993_v24  ;;  %v11380_v24 = vpack.c.bf16 %v9805_v34, %v9795_v50  ;;  %v8379_v50 = vld [vmem:[%s9218_s27 + $0x3a8] sm:$0xff]   ;;  %v11383_v34 = vpack.c.bf16 %v9840_v32, %v9828_v12  ;;  %v11386_v12 = vpack.c.bf16 %v9824_v61, %v9822_v1  ;;  %v8382_v32 = vld [vmem:[%s9218_s27 + $0x3c0] sm:$0xff]   ;;  %v8385_v1 = vld [vmem:[%s9218_s27 + $0x3d8] sm:$0xff]  }
 0x48e   : > { %7455 = vmatmul.mubr.bf16.gmra.mrb[12].mxu1 %v10043_v9  ;;  %v11389_v61 = vpack.c.bf16 %v9890_v16, %v9888_v62  ;;  %v11392_v62 = vpack.c.bf16 %v9940_v39, %v9931_v53  ;;  %v8388_v16 = vld [vmem:[%s9218_s27 + $0x3f0] sm:$0xff]   ;;  %v8390_v39 = vld [vmem:[%s9218_s27 + $0x400] sm:$0xff]   ;;  %v8393_v53 = vld [vmem:[%s9218_s27 + $0x418] sm:$0xff]  }
 0x48f   : > { %7471 = vmatpush3.bf16.msra.mxu1 %v8364_v54  ;;  %7474 = vmatprep.mubr.bf16.mxu1 %v3480_v8  ;;  %v8376_v8 = vld [vmem:[%s9218_s27 + $0x390] sm:$0xff]   ;;  %v4085_v54 = vld [vmem:[#allocation3 + $0x8f] sm:$0xff] }
 0x490   : > { %7472 = vmatprep.subr.bf16.mxu1 %v8365_v0 }
 0x493   : > { %7473 = vmatpush3.bf16.msra.mxu1 %v8365_v0  ;;  %v8369_v0 = vld [vmem:[%s9218_s27 + $0x358] sm:$0xff]  }
 0x494   : > { %7490 = vmatprep.subr.bf16.mxu1 %v8366_v18 }
 0x496   : > { %7475 = vmatmul.mubr.bf16.vlgmr.msra.gmra.mrb[0].mxu1 %v3481_v17 }
 0x497   : > { %7478 = vmatprep.mubr.bf16.mxu1 %v3482_v30  ;;  %7491 = vmatpush3.bf16.msra.mxu1 %v8366_v18  ;;  %v8389_v30 = vld [vmem:[%s9218_s27 + $0x3f8] sm:$0xff]  }
 0x498   : > { %7492 = vmatprep.subr.bf16.mxu1 %v8367_v4  ;;  %v8397_v18 = vld [vmem:[%s9218_s27 + $0x438] sm:$0xff]  }
 0x49b   : > { %7493 = vmatpush3.bf16.msra.mxu1 %v8367_v4  ;;  %v8371_v4 = vld [vmem:[%s9218_s27 + $0x368] sm:$0xff]  }
 0x49c   : > { %7494 = vmatprep.subr.bf16.mxu1 %v8368_v31 }
 0x49e   : > { %7479 = vmatmul.mubr.bf16.gmra.mrb[4].mxu1 %v3483_v56  ;;  %v4274_v56 = vld [vmem:[#allocation3 + $0x28] sm:$0xff] }
 0x49f   : > { %7482 = vmatprep.mubr.bf16.mxu1 %v3484_v42  ;;  %7495 = vmatpush3.bf16.msra.mxu1 %v8368_v31  ;;  %v4276_v31 = vld [vmem:[#allocation3 + $0x38] sm:$0xff]  ;;  %v4277_v42 = vld [vmem:[#allocation3 + $0x40] sm:$0xff] }
 0x4a0   : > { %7496 = vmatprep.subr.bf16.mxu1 %v8369_v0 }
 0x4a3   : > { %7497 = vmatpush3.bf16.msra.mxu1 %v8369_v0 }
 0x4a4   : > { %7498 = vmatprep.subr.bf16.mxu1 %v8370_v2 }
 0x4a6   : > { %7483 = vmatmul.mubr.bf16.gmra.mrb[8].mxu1 %v3485_v28  ;;  %v4290_v28 = vpack.c.bf16 %v4277_v42, %v4276_v31  ;;  %v11398_v42 = vld [vmem:[#allocation36_spill] sm:$0xff] }
 0x4a7   : > { %7486 = vmatprep.mubr.bf16.mxu1 %v3486_v46  ;;  %7499 = vmatpush3.bf16.msra.mxu1 %v8370_v2  ;;  %v8399_v2 = vld [vmem:[%s9218_s27 + $0x448] sm:$0xff]   ;;  %v4279_v46 = vld [vmem:[#allocation3 + $0x50] sm:$0xff] }
 0x4a8   : > { %7500 = vmatprep.subr.bf16.mxu1 %v8371_v4 }
 0x4ab   : > { %7501 = vmatpush3.bf16.msra.mxu1 %v8371_v4  ;;  %v8400_v4 = vld [vmem:[%s9218_s27 + $0x450] sm:$0xff]  }
 0x4ac   : > { %7502 = vmatprep.subr.bf16.mxu1 %v8372_v33 }
 0x4ae   : > { %7487 = vmatmul.mubr.bf16.gmra.mrb[12].mxu1 %v3487_v37 }
 0x4af   : > { %7503 = vmatpush3.bf16.msra.mxu1 %v8372_v33  ;;  %7506 = vmatprep.mubr.bf16.mxu1 %v11378_v14  ;;  %v4280_v33 = vld [vmem:[#allocation3 + $0x58] sm:$0xff]  ;;  %v8401_v14 = vld [vmem:[%s9218_s27 + $0x458] sm:$0xff]  }
 0x4b0   : > { %7504 = vmatprep.subr.bf16.mxu1 %v8373_v20 }
 0x4b3   : > { %7505 = vmatpush3.bf16.msra.mxu1 %v8373_v20  ;;  %v4281_v20 = vld [vmem:[#allocation3 + $0x60] sm:$0xff] }
 0x4b4   : > { %7522 = vmatprep.subr.bf16.mxu1 %v8374_v5 }
 0x4b6   : > { %7507 = vmatmul.mubr.bf16.vlgmr.msra.gmra.mrb[0].mxu1 %v11379_v38  ;;  %v4283_v38 = vld [vmem:[#allocation3 + $0x70] sm:$0xff] }
 0x4b7   : > { %7510 = vmatprep.mubr.bf16.mxu1 %v11380_v24  ;;  %7523 = vmatpush3.bf16.msra.mxu1 %v8374_v5  ;;  %v4292_v5 = vpack.c.bf16 %v4281_v20, %v4280_v33  ;;  %v4284_v24 = vld [vmem:[#allocation3 + $0x78] sm:$0xff]  ;;  %v11399_v33 = vld [vmem:[#allocation34_spill] sm:$0xff] }
 0x4b8   : > { %7524 = vmatprep.subr.bf16.mxu1 %v8375_v41 }
 0x4bb   : > { %7525 = vmatpush3.bf16.msra.mxu1 %v8375_v41  ;;  %v8402_v41 = vld [vmem:[%s9218_s27 + $0x460] sm:$0xff]  }
 0x4bc   : > { %7526 = vmatprep.subr.bf16.mxu1 %v8376_v8 }
 0x4be   : > { %7511 = vmatmul.mubr.bf16.gmra.mrb[4].mxu1 %v11381_v51  ;;  %v4285_v51 = vld [vmem:[#allocation3 + $0x80] sm:$0xff] }
 0x4bf   : > { %7514 = vmatprep.mubr.bf16.mxu1 %v11382_v10  ;;  %7527 = vmatpush3.bf16.msra.mxu1 %v8376_v8  ;;  %v4282_v8 = vld [vmem:[#allocation3 + $0x68] sm:$0xff]  ;;  %v8403_v10 = vld [vmem:[%s9218_s27 + $0x468] sm:$0xff]  }
 0x4c0   : > { %7528 = vmatprep.subr.bf16.mxu1 %v8377_v19 }
 0x4c3   : > { %7529 = vmatpush3.bf16.msra.mxu1 %v8377_v19  ;;  %v4293_v19 = vpack.c.bf16 %v4283_v38, %v4282_v8  ;;  %v8411_v38 = vld [vmem:[#allocation2 + $0x30] sm:$0xff] }
 0x4c4   : > { %7530 = vmatprep.subr.bf16.mxu1 %v8378_v13 }
 0x4c6   : > { %7515 = vmatmul.mubr.bf16.gmra.mrb[8].mxu1 %v11383_v34  ;;  %v4286_v34 = vld [vmem:[#allocation3 + $0x88] sm:$0xff] }
 0x4c7   : > { %7518 = vmatprep.mubr.bf16.mxu1 %v11384_v26  ;;  %7531 = vmatpush3.bf16.msra.mxu1 %v8378_v13  ;;  %v4294_v13 = vpack.c.bf16 %v4285_v51, %v4284_v24  ;;  %v4287_v26 = vld [vmem:[#allocation3 + $0x90] sm:$0xff]  ;;  %v8412_v51 = vld [vmem:[#allocation2 + $0x48] sm:$0xff] }
 0x4c8   : > { %7532 = vmatprep.subr.bf16.mxu1 %v8379_v50 }
 0x4cb   : > { %7533 = vmatpush3.bf16.msra.mxu1 %v8379_v50  ;;  %v8404_v50 = vld [vmem:[%s9218_s27 + $0x470] sm:$0xff]  }
 0x4cc   : > { %7534 = vmatprep.subr.bf16.mxu1 %v8380_v59 }
 0x4ce   : > { %7519 = vmatmul.mubr.bf16.gmra.mrb[12].mxu1 %v11385_v57  ;;  %v11393_v57 = vld [vmem:[#allocation49_spill] sm:$0xff] }
 0x4cf   : > { %7535 = vmatpush3.bf16.msra.mxu1 %v8380_v59  ;;  %7538 = vmatprep.mubr.bf16.mxu1 %v11386_v12  ;;  %v4295_v59 = vpack.c.bf16 %v4287_v26, %v4286_v34  ;;  %v11394_v12 = vld [vmem:[#allocation50_spill] sm:$0xff] }
 0x4d0   : > { %7536 = vmatprep.subr.bf16.mxu1 %v8381_v7 }
 0x4d3   : > { %7537 = vmatpush3.bf16.msra.mxu1 %v8381_v7  ;;  %v8405_v7 = vld [vmem:[%s9218_s27 + $0x478] sm:$0xff]  }
 0x4d4   : > { %7554 = vmatprep.subr.bf16.mxu1 %v8382_v32 }
 0x4d6   : > { %7539 = vmatmul.mubr.bf16.vlgmr.msra.gmra.mrb[0].mxu1 %v11387_v22 }
 0x4d7   : > { %7542 = vmatprep.mubr.bf16.mxu1 %v11388_v40  ;;  %7555 = vmatpush3.bf16.msra.mxu1 %v8382_v32  ;;  %v11395_v32 = vld [vmem:[#allocation51_spill] sm:$0xff] }
 0x4d8   : > { %7556 = vmatprep.subr.bf16.mxu1 %v8383_v15  ;;  %v10171_v40 = vld [vmem:[%s9224_s22 + $0x2] ss:$0 sm:$0xff] }
 0x4db   : > { %7557 = vmatpush3.bf16.msra.mxu1 %v8383_v15  ;;  %v4489_v15 = vld [vmem:[#allocation3 + $0x91] sm:$0xff] }
 0x4dc   : > { %7558 = vmatprep.subr.bf16.mxu1 %v8384_v58  ;;  %v4497_v22 = vpack.c.bf16 %v4489_v15, %v10133_v21  ;;  %v11401_v15 = vld [vmem:[#allocation37_spill] sm:$0xff] }
 0x4de   : > { %7543 = vmatmul.mubr.bf16.gmra.mrb[4].mxu1 %v11389_v61 }
 0x4df   : > { %7546 = vmatprep.mubr.bf16.mxu1 %v11390_v63  ;;  %7559 = vmatpush3.bf16.msra.mxu1 %v8384_v58  ;;  %v10174_v58 = vld [vmem:[%s9224_s22 + $0x3] ss:$0 sm:$0xff] }
 0x4e0   : > { %7560 = vmatprep.subr.bf16.mxu1 %v8385_v1 }
 0x4e3   : > { %7561 = vmatpush3.bf16.msra.mxu1 %v8385_v1 }
 0x4e4   : > { %7562 = vmatprep.subr.bf16.mxu1 %v8386_v23 }
 0x4e6   : > { %7547 = vmatmul.mubr.bf16.gmra.mrb[8].mxu1 %v11391_v52 }
 0x4e7   : > { %7550 = vmatprep.mubr.bf16.mxu1 %v11392_v62  ;;  %7563 = vmatpush3.bf16.msra.mxu1 %v8386_v23  ;;  %v8406_v62 = vld [vmem:[#allocation2 + $0x20] sm:$0xff] }
 0x4e8   : > { %7564 = vmatprep.subr.bf16.mxu1 %v8387_v47 }
 0x4eb   : > { %7565 = vmatpush3.bf16.msra.mxu1 %v8387_v47 }
 0x4ec   : > { %7566 = vmatprep.subr.bf16.mxu1 %v8388_v16 }
 0x4ee   : > { %7551 = vmatmul.mubr.bf16.gmra.mrb[12].mxu1 %v3891_v44  ;;  %v8407_v44 = vld [vmem:[#allocation2 + $0x10] sm:$0xff] }
 0x4ef   : > { %7567 = vmatpush3.bf16.msra.mxu1 %v8388_v16  ;;  %7570 = vmatprep.mubr.bf16.mxu1 %v9935_v3  ;;  %v8394_v3 = vld [vmem:[%s9218_s27 + $0x420] sm:$0xff]  }
 0x4f0   : > { %7568 = vmatprep.subr.bf16.mxu1 %v8389_v30 }
 0x4f3   : > { %7569 = vmatpush3.bf16.msra.mxu1 %v8389_v30 }
 0x4f4   : > { %7586 = vmatprep.subr.bf16.mxu1 %v8390_v39 }
 0x4f6   : > { %7571 = vmatmul.mubr.bf16.vlgmr.msra.gmra.mrb[0].mxu1 %v9944_v35  ;;  %v8395_v35 = vld [vmem:[%s9218_s27 + $0x428] sm:$0xff]  }
 0x4f7   : > { %7574 = vmatprep.mubr.bf16.mxu1 %v9959_v48  ;;  %7587 = vmatpush3.bf16.msra.mxu1 %v8390_v39  ;;  %v8396_v48 = vld [vmem:[%s9218_s27 + $0x430] sm:$0xff]  }
 0x4f8   : > { %7588 = vmatprep.subr.bf16.mxu1 %v8391_v11 }
 0x4fb   : > { %7589 = vmatpush3.bf16.msra.mxu1 %v8391_v11 }
 0x4fc   : > { %7590 = vmatprep.subr.bf16.mxu1 %v8392_v43 }
 0x4fe   : > { %7575 = vmatmul.mubr.bf16.gmra.mrb[4].mxu1 %v9966_v6  ;;  %v4273_v6 = vld [vmem:[#allocation3 + $0x20] sm:$0xff] }
 0x4ff   : > { %7578 = vmatprep.mubr.bf16.mxu1 %v9979_v45  ;;  %7591 = vmatpush3.bf16.msra.mxu1 %v8392_v43  ;;  %v4093_v45 = vpack.c.bf16 %v4085_v54, %v10068_v60  ;;  %v4288_v17 = vpack.c.bf16 %v4273_v6, %v4272_v36  ;;  %v4278_v60 = vld [vmem:[#allocation3 + $0x48] sm:$0xff]  ;;  %v11396_v36 = vld [vmem:[#allocation35_spill] sm:$0xff] }
 0x500   : > { %7592 = vmatprep.subr.bf16.mxu1 %v8393_v53  ;;  %v4291_v37 = vpack.c.bf16 %v4279_v46, %v4278_v60  ;;  %v8408_v43 = vld [vmem:[#allocation2 + $0x28] sm:$0xff] }
 0x503   : > { %7593 = vmatpush3.bf16.msra.mxu1 %v8393_v53 }
 0x504   : > { %7594 = vmatprep.subr.bf16.mxu1 %v8394_v3 }
 0x506   : > { %7579 = vmatmul.mubr.bf16.gmra.mrb[8].mxu1 %v9986_v29  ;;  %v4275_v29 = vld [vmem:[#allocation3 + $0x30] sm:$0xff] }
 0x507   : > { %7582 = vmatprep.mubr.bf16.mxu1 %v9997_v25  ;;  %7595 = vmatpush3.bf16.msra.mxu1 %v8394_v3  ;;  %v8398_v25 = vld [vmem:[%s9218_s27 + $0x440] sm:$0xff]   ;;  %v4289_v0 = vpack.c.bf16 %v4275_v29, %v4274_v56 }
 0x508   : > { %7596 = vmatprep.subr.bf16.mxu1 %v8395_v35 }
 0x50b   : > { %7597 = vmatpush3.bf16.msra.mxu1 %v8395_v35  ;;  %v8409_v35 = vld [vmem:[#allocation2 + $0x18] sm:$0xff] }
 0x50c   : > { %7598 = vmatprep.subr.bf16.mxu1 %v8396_v48 }
 0x50e   : > { %7583 = vmatmul.mubr.bf16.gmra.mrb[12].mxu1 %v4093_v45 }
 0x50f   : > { %7599 = vmatpush3.bf16.msra.mxu1 %v8396_v48  ;;  %7602 = vmatprep.mubr.bf16.mxu1 %v4288_v17 }
 0x510   : > { %7600 = vmatprep.subr.bf16.mxu1 %v8397_v18 }
 0x513   : > { %7601 = vmatpush3.bf16.msra.mxu1 %v8397_v18 }
 0x514   : > { %7618 = vmatprep.subr.bf16.mxu1 %v8398_v25 }
 0x516   : > { %7603 = vmatmul.mubr.bf16.vlgmr.msra.gmra.mrb[0].mxu1 %v4289_v0 }
 0x517   : > { %7606 = vmatprep.mubr.bf16.mxu1 %v4290_v28  ;;  %7619 = vmatpush3.bf16.msra.mxu1 %v8398_v25  ;;  %v11397_v25 = vld [vmem:[#allocation33_spill] sm:$0xff] }
 0x518   : > { %7620 = vmatprep.subr.bf16.mxu1 %v8399_v2 }
 0x51b   : > { %7621 = vmatpush3.bf16.msra.mxu1 %v8399_v2 }
 0x51c   : > { %7622 = vmatprep.subr.bf16.mxu1 %v8400_v4 }
 0x51e   : > { %7607 = vmatmul.mubr.bf16.gmra.mrb[4].mxu1 %v4291_v37 }
 0x51f   : > { %7610 = vmatprep.mubr.bf16.mxu1 %v4292_v5  ;;  %7623 = vmatpush3.bf16.msra.mxu1 %v8400_v4 }
 0x520   : > { %7624 = vmatprep.subr.bf16.mxu1 %v8401_v14 }
 0x523   : > { %7625 = vmatpush3.bf16.msra.mxu1 %v8401_v14  ;;  %v8410_v14 = vld [vmem:[#allocation2 + $0x40] sm:$0xff] }
 0x524   : > { %7626 = vmatprep.subr.bf16.mxu1 %v8402_v41 }
 0x526   : > { %7611 = vmatmul.mubr.bf16.gmra.mrb[8].mxu1 %v4293_v19 }
 0x527   : > { %7614 = vmatprep.mubr.bf16.mxu1 %v4294_v13  ;;  %7627 = vmatpush3.bf16.msra.mxu1 %v8402_v41 }
 0x528   : > { %7628 = vmatprep.subr.bf16.mxu1 %v8403_v10 }
 0x52b   : > { %7629 = vmatpush3.bf16.msra.mxu1 %v8403_v10 }
 0x52c   : > { %7630 = vmatprep.subr.bf16.mxu1 %v8404_v50 }
 0x52e   : > { %7615 = vmatmul.mubr.bf16.gmra.mrb[12].mxu1 %v4295_v59  ;;  %v11400_v59 = vld [vmem:[#allocation39_spill] sm:$0xff] }
 0x52f   : > { %7631 = vmatpush3.bf16.msra.mxu1 %v8404_v50  ;;  %7634 = vmatprep.mubr.bf16.mxu1 %v10005_v55  ;;  %v8413_v50 = vld [vmem:[#allocation2 + $0x38] sm:$0xff] }
 0x530   : > { %7632 = vmatprep.subr.bf16.mxu1 %v8405_v7 }
 0x533   : > { %7633 = vmatpush3.bf16.msra.mxu1 %v8405_v7 }
 0x536   : > { %7635 = vmatmul.mubr.bf16.vlgmr.msra.gmra.mrb[0].mxu1 %v10010_v49 }
 0x537   : > { %7638 = vmatprep.mubr.bf16.mxu1 %v10017_v27 }
 0x53e   : > { %7639 = vmatmul.mubr.bf16.gmra.mrb[4].mxu1 %v11393_v57 }
 0x53f   : > { %7642 = vmatprep.mubr.bf16.mxu1 %v11394_v12 }
 0x546   : > { %7643 = vmatmul.mubr.bf16.gmra.mrb[8].mxu1 %v11395_v32 }
 0x547   : > { %7646 = vmatprep.mubr.bf16.mxu1 %v10043_v9 }
 0x54e   : > { %7647 = vmatmul.mubr.bf16.gmra.mrb[12].mxu1 %v4497_v22 }
 0x609   : > { %v7636_v55 = vpop.f32.mrb[0].mxu1 }
 0x60a   : > { %v4683_v49 = vmul.f32 %v7636_v55, %v10171_v40  ;;  %v4597_v27 = vpop.f32.mrb[1].mxu1 }
 0x60b   : > { %v4681_v1 = vmul.f32 %v10171_v40, %v4597_v27  ;;  %v7637_v61 = vpop.f32.mrb[2].mxu1 }
 0x60c   : > { %v4704_v63 = vadd.f32 %v10174_v58, %v4683_v49  ;;  %v4684_v23 = vmul.f32 %v7637_v61, %v10171_v40  ;;  %v4600_v9 = vpop.f32.mrb[3].mxu1 }
 0x60d   : > { %v4702_v47 = vadd.f32 %v10174_v58, %v4681_v1  ;;  %v4682_v52 = vmul.f32 %v10171_v40, %v4600_v9  ;;  %v11402_v1 = vld [vmem:[#allocation40_spill] sm:$0xff] }
 0x60e   : > { %v4720_v16 = vadd.f32 %v8406_v62, %v4704_v63  ;;  %v4705_v21 = vadd.f32 %v10174_v58, %v4684_v23 }
 0x60f   : > { %v4718_v30 = vadd.f32 %v8407_v44, %v4702_v47  ;;  %v4703_v39 = vadd.f32 %v10174_v58, %v4682_v52  ;;  %v11403_v47 = vld [vmem:[#allocation38_spill] sm:$0xff] }
 0x610   : > { %v4736_v11 = vmax.f32 %v4720_v16, 0.0  ;;  %v4721_v53 = vadd.f32 %v8408_v43, %v4705_v21  ;;  %v8414_v21 = vld [vmem:[#allocation2 + $0x60] sm:$0xff] }
 0x611   : > { %v4734_v3 = vmax.f32 %v4718_v30, 0.0  ;;  %v4719_v48 = vadd.f32 %v8409_v35, %v4703_v39  ;;  %v7640_v54 = vpop.f32.mrb[4].mxu1  ;;  %v8415_v39 = vld [vmem:[#allocation2 + $0x50] sm:$0xff] }
 0x612   : > { %v10185_v45 = vmul.f32 %v4736_v11, %v11396_v36  ;;  %v4737_v6 = vmax.f32 %v4721_v53, 0.0  ;;  %v4687_v18 = vmul.f32 %v7640_v54, %v10171_v40  ;;  %v4613_v17 = vpop.f32.mrb[5].mxu1  ;;  %v8417_v54 = vld [vmem:[#allocation2 + $0x58] sm:$0xff] }
 0x613   : > { %v10189_v29 = vmul.f32 %v4734_v3, %v11397_v25  ;;  %v4735_v31 = vmax.f32 %v4719_v48, 0.0  ;;  %v4685_v56 = vmul.f32 %v10171_v40, %v4613_v17  ;;  %v7641_v0 = vpop.f32.mrb[6].mxu1  ;;  %v8416_v3 = vld [vmem:[#allocation2 + $0x68] sm:$0xff] }
 0x614   : > { %4768 = vst [vmem:[#allocation2 + $0x20] sm:$0xff] %v10185_v45  ;;  %v10194_v2 = vmul.f32 %v4737_v6, %v11398_v42  ;;  %v4708_v28 = vadd.f32 %v10174_v58, %v4687_v18  ;;  %v4688_v4 = vmul.f32 %v7641_v0, %v10171_v40  ;;  %v4616_v46 = vpop.f32.mrb[7].mxu1  ;;  %v11404_v18 = vld [vmem:[#allocation43_spill] sm:$0xff]  ;;  %v11405_v0 = vld [vmem:[#allocation41_spill] sm:$0xff] }
 0x615   : > { %4766 = vst [vmem:[#allocation2 + $0x10] sm:$0xff] %v10189_v29  ;;  %v10200_v60 = vmul.f32 %v4735_v31, %v11399_v33  ;;  %v4706_v37 = vadd.f32 %v10174_v58, %v4685_v56  ;;  %v4686_v20 = vmul.f32 %v10171_v40, %v4616_v46  ;;  %v11406_v33 = vld [vmem:[#allocation44_spill] sm:$0xff]  ;;  %7682 = vmatprep.mubr.f32.mxu0 (!%p6568_p6), %v10189_v29  ;;  %v4792_v29 = vld [vmem:[%s11412_s8 + $0x30] sm:$0xff] (!%p6568_p6) }
 0x616   : > { %4769 = vst [vmem:[#allocation2 + $0x28] sm:$0xff] %v10194_v2  ;;  %v4724_v5 = vadd.f32 %v8410_v14, %v4708_v28  ;;  %v4709_v41 = vadd.f32 %v10174_v58, %v4688_v4 }
 0x617   : > { %4767 = vst [vmem:[#allocation2 + $0x18] sm:$0xff] %v10200_v60  ;;  %v4722_v24 = vadd.f32 %v8411_v38, %v4706_v37  ;;  %v4707_v8 = vadd.f32 %v10174_v58, %v4686_v20 }
 0x618   : > { %v4740_v19 = vmax.f32 %v4724_v5, 0.0  ;;  %v4725_v10 = vadd.f32 %v8412_v51, %v4709_v41  ;;  %v11407_v41 = vld [vmem:[#allocation42_spill] sm:$0xff] }
 0x619   : > { %v4738_v13 = vmax.f32 %v4722_v24, 0.0  ;;  %v4723_v34 = vadd.f32 %v8413_v50, %v4707_v8  ;;  %v7644_v26 = vpop.f32.mrb[8].mxu1 }
 0x61a   : > { %v10209_v7 = vmul.f32 %v4740_v19, %v11400_v59  ;;  %v4741_v57 = vmax.f32 %v4725_v10, 0.0  ;;  %v4691_v12 = vmul.f32 %v7644_v26, %v10171_v40  ;;  %v4629_v32 = vpop.f32.mrb[9].mxu1  ;;  %v8418_v19 = vld [vmem:[#allocation2 + $0x80] sm:$0xff]  ;;  %v8420_v59 = vld [vmem:[#allocation2 + $0x88] sm:$0xff] }
 0x61b   : > { %v10213_v22 = vmul.f32 %v4738_v13, %v11401_v15  ;;  %v4739_v55 = vmax.f32 %v4723_v34, 0.0  ;;  %v4689_v49 = vmul.f32 %v10171_v40, %v4629_v32  ;;  %v7645_v27 = vpop.f32.mrb[10].mxu1  ;;  %v8419_v13 = vld [vmem:[#allocation2 + $0x70] sm:$0xff]  ;;  %v8421_v32 = vld [vmem:[#allocation2 + $0x78] sm:$0xff] }
 0x61c   : > { %4772 = vst [vmem:[#allocation2 + $0x40] sm:$0xff] %v10209_v7  ;;  %v10218_v61 = vmul.f32 %v4741_v57, %v11402_v1  ;;  %v4712_v63 = vadd.f32 %v10174_v58, %v4691_v12  ;;  %v4692_v23 = vmul.f32 %v7645_v27, %v10171_v40  ;;  %v4632_v9 = vpop.f32.mrb[11].mxu1  ;;  %v11409_v27 = vld [vmem:[#allocation45_spill] sm:$0xff] }
 0x61d   : > { %4770 = vst [vmem:[#allocation2 + $0x30] sm:$0xff] %v10213_v22  ;;  %v10224_v52 = vmul.f32 %v4739_v55, %v11403_v47  ;;  %v4710_v62 = vadd.f32 %v10174_v58, %v4689_v49  ;;  %v4690_v16 = vmul.f32 %v10171_v40, %v4632_v9  ;;  %v11408_v55 = vld [vmem:[#allocation47_spill] sm:$0xff]  ;;  %v11411_v47 = vld [vmem:[#allocation46_spill] sm:$0xff] }
 0x61e   : > { %4773 = vst [vmem:[#allocation2 + $0x48] sm:$0xff] %v10218_v61  ;;  %v4728_v44 = vadd.f32 %v8414_v21, %v4712_v63  ;;  %v4713_v30 = vadd.f32 %v10174_v58, %v4692_v23  ;;  %v11410_v23 = vld [vmem:[#allocation48_spill] sm:$0xff]  ;;  %v4788_v21 = vld [vmem:[%s11412_s8 + $0x10] sm:$0xff] (!%p6568_p6) }
 0x61f   : > { %4771 = vst [vmem:[#allocation2 + $0x38] sm:$0xff] %v10224_v52  ;;  %v4726_v11 = vadd.f32 %v8415_v39, %v4710_v62  ;;  %v4711_v43 = vadd.f32 %v10174_v58, %v4690_v16  ;;  %v4786_v62 = vld [vmem:[%s11412_s8] sm:$0xff] (!%p6568_p6)  ;;  %v4787_v16 = vld [vmem:[%s11412_s8 + $0x8] sm:$0xff] (!%p6568_p6) }
 0x620   : > { %v4744_v53 = vmax.f32 %v4728_v44, 0.0  ;;  %v4729_v35 = vadd.f32 %v8416_v3, %v4713_v30  ;;  %v7780_v44 = vpack.c.bf16 (!%p6568_p6), %v4787_v16, %v4786_v62  ;;  %v4789_v30 = vld [vmem:[%s11412_s8 + $0x18] sm:$0xff] (!%p6568_p6) }
 0x621   : > { %v4742_v48 = vmax.f32 %v4726_v11, 0.0  ;;  %v4727_v36 = vadd.f32 %v8417_v54, %v4711_v43  ;;  %v7648_v6 = vpop.f32.mrb[12].mxu1  ;;  %v7784_v39 = vpack.c.bf16 (!%p6568_p6), %v4789_v30, %v4788_v21  ;;  %v4790_v11 = vld [vmem:[%s11412_s8 + $0x20] sm:$0xff] (!%p6568_p6)  ;;  %v4791_v43 = vld [vmem:[%s11412_s8 + $0x28] sm:$0xff] (!%p6568_p6)  ;;  %v4793_v3 = vld [vmem:[%s11412_s8 + $0x38] sm:$0xff] (!%p6568_p6) }
 0x622   : > { %v10233_v17 = vmul.f32 %v4744_v53, %v11404_v18  ;;  %v4745_v25 = vmax.f32 %v4729_v35, 0.0  ;;  %v4695_v31 = vmul.f32 %v7648_v6, %v10171_v40  ;;  %v4645_v56 = vpop.f32.mrb[13].mxu1  ;;  %7781 = vmatprep.subr.bf16.mxu0 (!%p6568_p6), %v7780_v44  ;;  %v7788_v53 = vpack.c.bf16 (!%p6568_p6), %v4791_v43, %v4790_v11  ;;  %v4795_v54 = vld [vmem:[%s11412_s8 + $0x48] sm:$0xff] (!%p6568_p6)  ;;  %v4796_v6 = vld [vmem:[%s11412_s8 + $0x50] sm:$0xff] (!%p6568_p6)  ;;  %v4797_v18 = vld [vmem:[%s11412_s8 + $0x58] sm:$0xff] (!%p6568_p6) }
 0x623   : > { %v10237_v42 = vmul.f32 %v4742_v48, %v11405_v0  ;;  %v4743_v28 = vmax.f32 %v4727_v36, 0.0  ;;  %v4693_v4 = vmul.f32 %v10171_v40, %v4645_v56  ;;  %v7649_v46 = vpop.f32.mrb[14].mxu1  ;;  %7783 = vmatpush3.bf16.msra.mxu0 (!%p6568_p6), %v7780_v44  ;;  %v7792_v35 = vpack.c.bf16 (!%p6568_p6), %v4793_v3, %v4792_v29  ;;  %v4794_v48 = vld [vmem:[%s11412_s8 + $0x40] sm:$0xff] (!%p6568_p6)  ;;  %v4799_v56 = vld [vmem:[%s11412_s8 + $0x68] sm:$0xff] (!%p6568_p6) }
 0x624   : > { %4776 = vst [vmem:[#allocation2 + $0x60] sm:$0xff] %v10233_v17  ;;  %v10242_v37 = vmul.f32 %v4745_v25, %v11406_v33  ;;  %v4716_v20 = vadd.f32 %v10174_v58, %v4695_v31  ;;  %v4696_v14 = vmul.f32 %v7649_v46, %v10171_v40  ;;  %v4648_v5 = vpop.f32.mrb[15].mxu1  ;;  %7785 = vmatprep.subr.bf16.mxu0 (!%p6568_p6), %v7784_v39  ;;  %v4798_v31 = vld [vmem:[%s11412_s8 + $0x60] sm:$0xff] (!%p6568_p6)  ;;  %v6590_v33 = vld [vmem:[%s11413_s11 + $0x108] sm:$0xff] (!%p6568_p6) }
 0x625   : > { %4774 = vst [vmem:[#allocation2 + $0x50] sm:$0xff] %v10237_v42  ;;  %v10248_v38 = vmul.f32 %v4743_v28, %v11407_v41  ;;  %v4714_v24 = vadd.f32 %v10174_v58, %v4693_v4  ;;  %v4694_v8 = vmul.f32 %v10171_v40, %v4648_v5  ;;  %v7796_v36 = vpack.c.bf16 (!%p6568_p6), %v4795_v54, %v4794_v48  ;;  %v4800_v28 = vld [vmem:[%s11412_s8 + $0x70] sm:$0xff] (!%p6568_p6)  ;;  %v4801_v4 = vld [vmem:[%s11412_s8 + $0x78] sm:$0xff] (!%p6568_p6)  ;;  %v6654_v44 = vld [vmem:[%s11413_s11 + $0x308] sm:$0xff] (!%p6568_p6) }
 0x626   : > { %4777 = vst [vmem:[#allocation2 + $0x68] sm:$0xff] %v10242_v37  ;;  %v4732_v51 = vadd.f32 %v8418_v19, %v4716_v20  ;;  %v4717_v10 = vadd.f32 %v10174_v58, %v4696_v14  ;;  %v7800_v25 = vpack.c.bf16 (!%p6568_p6), %v4797_v18, %v4796_v6  ;;  %v7804_v0 = vpack.c.bf16 (!%p6568_p6), %v4799_v56, %v4798_v31  ;;  %v6637_v30 = vld [vmem:[%s11413_s11 + $0x280] sm:$0xff] (!%p6568_p6)  ;;  %v5186_v31 = vld [vmem:[%s11413_s11 + $0x10] sm:$0xff] (!%p6568_p6) }
 0x627   : > { %4775 = vst [vmem:[#allocation2 + $0x58] sm:$0xff] %v10248_v38  ;;  %v4730_v50 = vadd.f32 %v8419_v13, %v4714_v24  ;;  %v4715_v34 = vadd.f32 %v10174_v58, %v4694_v8  ;;  %7787 = vmatpush3.bf16.msra.mxu0 (!%p6568_p6), %v7784_v39  ;;  %v7808_v46 = vpack.c.bf16 (!%p6568_p6), %v4801_v4, %v4800_v28  ;;  %v6573_v54 = vld [vmem:[%s11413_s11 + $0x80] sm:$0xff] (!%p6568_p6) }
 0x628   : > { %v4748_v26 = vmax.f32 %v4732_v51, 0.0  ;;  %v4733_v57 = vadd.f32 %v8420_v59, %v4717_v10  ;;  %7789 = vmatprep.subr.bf16.mxu0 (!%p6568_p6), %v7788_v53  ;;  %v6606_v51 = vld [vmem:[%s11413_s11 + $0x188] sm:$0xff] (!%p6568_p6)  ;;  %v6589_v10 = vld [vmem:[%s11413_s11 + $0x100] sm:$0xff] (!%p6568_p6) }
 0x629   : > { %v4746_v12 = vmax.f32 %v4730_v50, 0.0  ;;  %v4731_v15 = vadd.f32 %v8421_v32, %v4715_v34  ;;  %4785 = sbr.rel (%p6568_p6) target bundleno = 2718 (0xa9e), region = 128  ;;  %v6605_v32 = vld [vmem:[%s11413_s11 + $0x180] sm:$0xff] (!%p6568_p6) }
 0x62a   : > { %v10257_v40 = vmul.f32 %v4748_v26, %v11408_v55  ;;  %v4749_v49 = vmax.f32 %v4733_v57, 0.0 }
 0x62b   : > { %v4762_v1 = vmul.f32 %v4746_v12, %v11409_v27  ;;  %v4747_v63 = vmax.f32 %v4731_v15, 0.0  ;;  %7791 = vmatpush3.bf16.msra.mxu0 (!%p6568_p6), %v7788_v53  ;;  %v6622_v12 = vld [vmem:[%s11413_s11 + $0x208] sm:$0xff] (!%p6568_p6) }
 0x62c   : > { %4780 = vst [vmem:[#allocation2 + $0x80] sm:$0xff] %v10257_v40  ;;  %v4765_v9 = vmul.f32 %v4749_v49, %v11410_v23  ;;  %7793 = vmatprep.subr.bf16.mxu0 (!%p6568_p6), %v7792_v35  ;;  %v6621_v23 = vld [vmem:[%s11413_s11 + $0x200] sm:$0xff] (!%p6568_p6) }
 0x62d   : > { %4778 = vst [vmem:[#allocation2 + $0x70] sm:$0xff] %v4762_v1  ;;  %v4763_v58 = vmul.f32 %v4747_v63, %v11411_v47  ;;  %v6638_v63 = vld [vmem:[%s11413_s11 + $0x288] sm:$0xff] (!%p6568_p6) }
 0x62e   : > { %4781 = vst [vmem:[#allocation2 + $0x88] sm:$0xff] %v4765_v9 }
 0x62f   : > { %4779 = vst [vmem:[#allocation2 + $0x78] sm:$0xff] %v4763_v58  ;;  %7795 = vmatpush3.bf16.msra.mxu0 (!%p6568_p6), %v7792_v35 }
 0x630   : > { %7797 = vmatprep.subr.bf16.mxu0 %v7796_v36 }
 0x633   : > { %7799 = vmatpush3.bf16.msra.mxu0 %v7796_v36  ;;  %v6653_v36 = vld [vmem:[%s11413_s11 + $0x300] sm:$0xff] }
 0x634   : > { %7801 = vmatprep.subr.bf16.mxu0 %v7800_v25 }
 0x637   : > { %7803 = vmatpush3.bf16.msra.mxu0 %v7800_v25  ;;  %v5187_v25 = vld [vmem:[%s11413_s11 + $0x18] sm:$0xff] }
 0x638   : > { %7805 = vmatprep.subr.bf16.mxu0 %v7804_v0 }
 0x63b   : > { %7807 = vmatpush3.bf16.msra.mxu0 %v7804_v0 }
 0x63c   : > { %7809 = vmatprep.subr.bf16.mxu0 %v7808_v46 }
 0x63f   : > { %7811 = vmatpush3.bf16.msra.mxu0 %v7808_v46 }
 0x642   : > { %7683 = vmatmul.mubr.f32.vlgmr.msra.gmra.mrb[0].mxu0 %v10200_v60 }
 0x643   : > { %7685 = vmatprep.mubr.f32.mxu0 %v10185_v45  ;;  %v10325_v45 = vld [vmem:[#allocation14] ss:$0 sm:$0xff] }
 0x646   : > { %7686 = vmatmul.mubr.f32.gmra.mrb[2].mxu0 %v10194_v2 }
 0x647   : > { %7688 = vmatprep.mubr.f32.mxu0 %v10213_v22 }
 0x64a   : > { %7689 = vmatmul.mubr.f32.gmra.mrb[4].mxu0 %v10224_v52  ;;  %v5185_v52 = vld [vmem:[%s11413_s11 + $0x8] sm:$0xff] }
 0x64b   : > { %7691 = vmatprep.mubr.f32.mxu0 %v10209_v7 }
 0x64e   : > { %7692 = vmatmul.mubr.f32.gmra.mrb[6].mxu0 %v10218_v61  ;;  %v6574_v61 = vld [vmem:[%s11413_s11 + $0x88] sm:$0xff] }
 0x64f   : > { %7694 = vmatprep.mubr.f32.mxu0 %v10237_v42 }
 0x652   : > { %7695 = vmatmul.mubr.f32.gmra.mrb[8].mxu0 %v10248_v38 }
 0x653   : > { %7697 = vmatprep.mubr.f32.mxu0 %v10233_v17 }
 0x656   : > { %7698 = vmatmul.mubr.f32.gmra.mrb[10].mxu0 %v10242_v37  ;;  %v5184_v37 = vld [vmem:[%s11413_s11] sm:$0xff] }
 0x657   : > { %7700 = vmatprep.mubr.f32.mxu0 %v4762_v1 }
 0x65a   : > { %7701 = vmatmul.mubr.f32.gmra.mrb[12].mxu0 %v4763_v58 }
 0x65b   : > { %7703 = vmatprep.mubr.f32.mxu0 %v10257_v40 }
 0x65e   : > { %7704 = vmatmul.mubr.f32.gmra.mrb[14].mxu0 %v4765_v9 }
 0x715   : > { %v7684_v2 = vpop.f32.mrb[0].mxu0 }
 0x716   : > { %v4881_v60 = vadd.f32 %v7684_v2, %v10325_v45  ;;  %v4875_v7 = vpop.f32.mrb[1].mxu0 }
 0x717   : > { %v4876_v22 = vadd.f32 %v10325_v45, %v4875_v7 }
 0x718   : > { %v10335_v17 = vmax.f32 %v4881_v60, 0.0 }
 0x719   : > { %v10337_v42 = vmax.f32 %v4876_v22, 0.0  ;;  %v7687_v20 = vpop.f32.mrb[2].mxu0  ;;  %v6576_v22 = vld [vmem:[%s11413_s11 + $0x98] sm:$0xff] }
 0x71a   : > { %v5283_v14 = vmul.f32 %v6574_v61, %v10335_v17  ;;  %v5201_v5 = vmul.f32 %v5185_v52, %v10335_v17  ;;  %v4885_v41 = vpop.f32.mrb[3].mxu0  ;;  %v5364_v8 = vmul.f32 %v6590_v33, %v10335_v17  ;;  %v5445_v59 = vmul.f32 %v6606_v51, %v10335_v17  ;;  %v6575_v61 = vld [vmem:[%s11413_s11 + $0x90] sm:$0xff] }
 0x71b   : > { %v5200_v19 = vmul.f32 %v5184_v37, %v10337_v42  ;;  %v5363_v57 = vmul.f32 %v6589_v10, %v10337_v42  ;;  %v5526_v27 = vmul.f32 %v6622_v12, %v10335_v17  ;;  %v5444_v1 = vmul.f32 %v6605_v32, %v10337_v42  ;;  %v6608_v10 = vld [vmem:[%s11413_s11 + $0x198] sm:$0xff] }
 0x71c   : > { %v5301_v38 = vsel %vm5216_vm1, %v5283_v14, 0.0  ;;  %v5220_v24 = vsel %vm5216_vm1, %v5201_v5, 0.0  ;;  %v5382_v34 = vsel %vm5216_vm1, %v5364_v8, 0.0  ;;  %v5463_v40 = vsel %vm5216_vm1, %v5445_v59, 0.0  ;;  %v6592_v14 = vld [vmem:[%s11413_s11 + $0x118] sm:$0xff]  ;;  %v6591_v5 = vld [vmem:[%s11413_s11 + $0x110] sm:$0xff] }
 0x71d   : > { %5302 = vadd.xlane.f32.xlu1 %v5301_v38  ;;  %5221 = vadd.xlane.f32.xlu0 %v5220_v24  ;;  %v10357_v13 = vpop.f32.mrb[4].mxu0  ;;  %v5217_v26 = vsel %vm5216_vm1, %v5200_v19, 0.0  ;;  %v5379_v49 = vsel %vm5216_vm1, %v5363_v57, 0.0  ;;  %v5544_v58 = vsel %vm5216_vm1, %v5526_v27, 0.0  ;;  %v5460_v62 = vsel %vm5216_vm1, %v5444_v1, 0.0  ;;  %v6624_v32 = vld [vmem:[%s11413_s11 + $0x218] sm:$0xff] }
 0x71e   : > { %v10359_v50 = vpop.f32.mrb[5].mxu0  ;;  %v5607_v16 = vmul.f32 %v6638_v63, %v10335_v17  ;;  %v5525_v21 = vmul.f32 %v6621_v23, %v10337_v42  ;;  %v4891_v11 = vadd.f32 %v7687_v20, %v10325_v45  ;;  %v4886_v43 = vadd.f32 %v10325_v45, %v4885_v41  ;;  %v6640_v23 = vld [vmem:[%s11413_s11 + $0x298] sm:$0xff] }
 0x71f   : > { %v5688_v35 = vmul.f32 %v6654_v44, %v10335_v17  ;;  %v5606_v48 = vmul.f32 %v6637_v30, %v10337_v42  ;;  %v5282_v28 = vmul.f32 %v6573_v54, %v10337_v42  ;;  %v5687_v4 = vmul.f32 %v6653_v36, %v10337_v42 }
 0x720   : > { %v5625_v29 = vsel %vm5216_vm1, %v5607_v16, 0.0  ;;  %v5541_v3 = vsel %vm5216_vm1, %v5525_v21, 0.0  ;;  %v10415_v6 = vmax.f32 %v4891_v11, 0.0  ;;  %v10417_v18 = vmax.f32 %v4886_v43, 0.0  ;;  %v6656_v43 = vld [vmem:[%s11413_s11 + $0x318] sm:$0xff] }
 0x721   : > { %5383 = vadd.xlane.f32.xlu1 %v5382_v34  ;;  %5218 = vadd.xlane.f32.xlu0 %v5217_v26  ;;  %v10371_v15 = vpop.f32.mrb[6].mxu0  ;;  %v5706_v56 = vsel %vm5216_vm1, %v5688_v35, 0.0  ;;  %v5622_v0 = vsel %vm5216_vm1, %v5606_v48, 0.0  ;;  %v5298_v60 = vsel %vm5216_vm1, %v5282_v28, 0.0  ;;  %v5703_v7 = vsel %vm5216_vm1, %v5687_v4, 0.0  ;;  %v6607_v34 = vld [vmem:[%s11413_s11 + $0x190] sm:$0xff] }
 0x722   : > { %v10373_v55 = vpop.f32.mrb[7].mxu0  ;;  %v5203_v46 = vmul.f32 %v5187_v25, %v10415_v6  ;;  %v5202_v2 = vmul.f32 %v5186_v31, %v10417_v18  ;;  %v5285_v37 = vmul.f32 %v6576_v22, %v10415_v6  ;;  %v5284_v20 = vmul.f32 %v6575_v61, %v10417_v18  ;;  %v5188_v35 = vld [vmem:[%s11413_s11 + $0x20] sm:$0xff] }
 0x723   : > { %v5366_v8 = vmul.f32 %v6592_v14, %v10415_v6  ;;  %v5365_v19 = vmul.f32 %v6591_v5, %v10417_v18  ;;  %v5447_v57 = vmul.f32 %v6608_v10, %v10415_v6  ;;  %v5446_v12 = vmul.f32 %v6607_v34, %v10417_v18 }
 0x724   : > { %v5226_v52 = vsel %vm5216_vm1, %v5203_v46, 0.0  ;;  %v5223_v33 = vsel %vm5216_vm1, %v5202_v2, 0.0  ;;  %v5307_v38 = vsel %vm5216_vm1, %v5285_v37, 0.0  ;;  %v5304_v24 = vsel %vm5216_vm1, %v5284_v20, 0.0  ;;  %v6578_v46 = vld [vmem:[%s11413_s11 + $0xa8] sm:$0xff]  ;;  %v6577_v2 = vld [vmem:[%s11413_s11 + $0xa0] sm:$0xff] }
 0x725   : > { %5464 = vadd.xlane.f32.xlu1 %v5463_v40  ;;  %5380 = vadd.xlane.f32.xlu0 %v5379_v49  ;;  %v10385_v9 = vpop.f32.mrb[8].mxu0  ;;  %v5388_v26 = vsel %vm5216_vm1, %v5366_v8, 0.0  ;;  %v5385_v59 = vsel %vm5216_vm1, %v5365_v19, 0.0  ;;  %v6623_v40 = vld [vmem:[%s11413_s11 + $0x210] sm:$0xff]  ;;  %v5469_v49 = vsel %vm5216_vm1, %v5447_v57, 0.0  ;;  %v5466_v27 = vsel %vm5216_vm1, %v5446_v12, 0.0 }
 0x726   : > { %v10387_v47 = vpop.f32.mrb[9].mxu0  ;;  %v5528_v1 = vmul.f32 %v6624_v32, %v10415_v6  ;;  %v5527_v63 = vmul.f32 %v6623_v40, %v10417_v18  ;;  %v4896_v16 = vadd.f32 %v10325_v45, %v10359_v50  ;;  %v5609_v30 = vmul.f32 %v6640_v23, %v10415_v6  ;;  %v6610_v8 = vld [vmem:[%s11413_s11 + $0x1a8] sm:$0xff]  ;;  %v6609_v19 = vld [vmem:[%s11413_s11 + $0x1a0] sm:$0xff] }
 0x727   : > { %v8815_v48 = vmov 0.0|0.0   ;;  %v5690_v25 = vmul.f32 %v6656_v43, %v10415_v6  ;;  %v6626_v57 = vld [vmem:[%s11413_s11 + $0x228] sm:$0xff]  ;;  %v6625_v12 = vld [vmem:[%s11413_s11 + $0x220] sm:$0xff]  ;;  %v4911_v23 = vadd.f32 %v10371_v15, %v10325_v45  ;;  %v5191_v43 = vld [vmem:[%s11413_s11 + $0x38] sm:$0xff] }
 0x728   : > { %v5550_v21 = vsel %vm5216_vm1, %v5528_v1, 0.0  ;;  %v5547_v44 = vsel %vm5216_vm1, %v5527_v63, 0.0  ;;  %v10499_v50 = vmax.f32 %v4896_v16, 0.0  ;;  %7836 = vmatprep.subr.bf16.mxu0 %v8815_v48  ;;  %7812 = vmatprep.subr.bf16.mxu1 %v8815_v48  ;;  %v5631_v54 = vsel %vm5216_vm1, %v5609_v30, 0.0  ;;  %v6642_v1 = vld [vmem:[%s11413_s11 + $0x2a8] sm:$0xff]  ;;  %v6641_v63 = vld [vmem:[%s11413_s11 + $0x2a0] sm:$0xff] }
 0x729   : > { %5545 = vadd.xlane.f32.xlu1 %v5544_v58  ;;  %5461 = vadd.xlane.f32.xlu0 %v5460_v62  ;;  %v10399_v39 = vpop.f32.mrb[10].mxu0  ;;  %v6639_v58 = vld [vmem:[%s11413_s11 + $0x290] sm:$0xff]  ;;  %v4901_v62 = vadd.f32 %v10357_v13, %v10325_v45  ;;  %v5712_v28 = vsel %vm5216_vm1, %v5690_v25, 0.0  ;;  %v6658_v30 = vld [vmem:[%s11413_s11 + $0x328] sm:$0xff]  ;;  %v6657_v15 = vld [vmem:[%s11413_s11 + $0x320] sm:$0xff] }
 0x72a   : > { %v10403_v53 = vpop.f32.mrb[11].mxu0  ;;  %v5608_v11 = vmul.f32 %v6639_v58, %v10417_v18  ;;  %v6655_v13 = vld [vmem:[%s11413_s11 + $0x310] sm:$0xff]  ;;  %v5286_v61 = vmul.f32 %v6577_v2, %v10499_v50  ;;  %v4906_v58 = vadd.f32 %v10325_v45, %v10373_v55 }
 0x72b   : > { %v5689_v31 = vmul.f32 %v6655_v13, %v10417_v18  ;;  %v5190_v13 = vld [vmem:[%s11413_s11 + $0x30] sm:$0xff] }
 0x72c   : > { %v5628_v36 = vsel %vm5216_vm1, %v5608_v11, 0.0  ;;  %v5310_v14 = vsel %vm5216_vm1, %v5286_v61, 0.0  ;;  %v10581_v11 = vmax.f32 %v4911_v23, 0.0  ;;  %v10583_v55 = vmax.f32 %v4906_v58, 0.0  ;;  %v6595_v61 = vld [vmem:[%s11413_s11 + $0x130] sm:$0xff] }
 0x72d   : > { %5626 = vadd.xlane.f32.xlu1 %v5625_v29  ;;  %5542 = vadd.xlane.f32.xlu0 %v5541_v3  ;;  %v10449_v41 = vpop.f32.mrb[12].mxu0  ;;  %v10497_v29 = vmax.f32 %v4901_v62, 0.0  ;;  %v5189_v3 = vld [vmem:[%s11413_s11 + $0x28] sm:$0xff]  ;;  %v5709_v4 = vsel %vm5216_vm1, %v5689_v31, 0.0 }
 0x72e   : > { %v10455_v51 = vpop.f32.mrb[13].mxu0  ;;  %v5207_v25 = vmul.f32 %v5191_v43, %v10581_v11  ;;  %v5206_v31 = vmul.f32 %v5190_v13, %v10583_v55 }
 0x72f   : > { %v5287_v22 = vmul.f32 %v6578_v46, %v10497_v29 }
 0x730   : > { %v5238_v46 = vsel %vm5216_vm1, %v5207_v25, 0.0  ;;  %v5235_v2 = vsel %vm5216_vm1, %v5206_v31, 0.0 }
 0x731   : > { %5707 = vadd.xlane.f32.xlu1 %v5706_v56  ;;  %5623 = vadd.xlane.f32.xlu0 %v5622_v0  ;;  %v5205_v56 = vmul.f32 %v5189_v3, %v10497_v29  ;;  %v5204_v0 = vmul.f32 %v5188_v35, %v10499_v50  ;;  %v10533_v37 = vpop.f32.mrb[14].mxu0  ;;  %v5313_v20 = vsel %vm5216_vm1, %v5287_v22, 0.0  ;;  %v6596_v22 = vld [vmem:[%s11413_s11 + $0x138] sm:$0xff] }
 0x735   : > { %5299 = vadd.xlane.f32.xlu1 %v5298_v60  ;;  %5704 = vadd.xlane.f32.xlu0 %v5703_v7  ;;  %v5232_v60 = vsel %vm5216_vm1, %v5205_v56, 0.0  ;;  %v5229_v7 = vsel %vm5216_vm1, %v5204_v0, 0.0 }
 0x739   : > { %5227 = vadd.xlane.f32.xlu1 %v5226_v52  ;;  %5224 = vadd.xlane.f32.xlu0 %v5223_v33  ;;  %v6594_v52 = vld [vmem:[%s11413_s11 + $0x128] sm:$0xff]  ;;  %v6593_v33 = vld [vmem:[%s11413_s11 + $0x120] sm:$0xff] }
 0x73a   : > { %v5368_v5 = vmul.f32 %v6594_v52, %v10497_v29 }
 0x73c   : > { %v5394_v10 = vsel %vm5216_vm1, %v5368_v5, 0.0  ;;  %v6612_v5 = vld [vmem:[%s11413_s11 + $0x1b8] sm:$0xff] }
 0x73d   : > { %5308 = vadd.xlane.f32.xlu1 %v5307_v38  ;;  %5305 = vadd.xlane.f32.xlu0 %v5304_v24  ;;  %v5367_v38 = vmul.f32 %v6593_v33, %v10499_v50  ;;  %v10539_v24 = vpop.f32.mrb[15].mxu0 }
 0x73f   : > { %v5391_v34 = vsel %vm5216_vm1, %v5367_v38, 0.0  ;;  %v6611_v38 = vld [vmem:[%s11413_s11 + $0x1b0] sm:$0xff] }
 0x741   : > { %5389 = vadd.xlane.f32.xlu1 %v5388_v26  ;;  %5386 = vadd.xlane.f32.xlu0 %v5385_v59  ;;  %v5449_v26 = vmul.f32 %v6610_v8, %v10497_v29  ;;  %v5448_v59 = vmul.f32 %v6609_v19, %v10499_v50 }
 0x743   : > { %v5475_v32 = vsel %vm5216_vm1, %v5449_v26, 0.0  ;;  %v5472_v40 = vsel %vm5216_vm1, %v5448_v59, 0.0  ;;  %v6628_v26 = vld [vmem:[%s11413_s11 + $0x238] sm:$0xff]  ;;  %v6627_v59 = vld [vmem:[%s11413_s11 + $0x230] sm:$0xff] }
 0x745   : > { %5470 = vadd.xlane.f32.xlu1 %v5469_v49  ;;  %5467 = vadd.xlane.f32.xlu0 %v5466_v27  ;;  %v5530_v49 = vmul.f32 %v6626_v57, %v10497_v29  ;;  %v5529_v27 = vmul.f32 %v6625_v12, %v10499_v50 }
 0x747   : > { %v5556_v62 = vsel %vm5216_vm1, %v5530_v49, 0.0  ;;  %v5553_v16 = vsel %vm5216_vm1, %v5529_v27, 0.0  ;;  %v6644_v49 = vld [vmem:[%s11413_s11 + $0x2b8] sm:$0xff]  ;;  %v6643_v27 = vld [vmem:[%s11413_s11 + $0x2b0] sm:$0xff] }
 0x749   : > { %5551 = vadd.xlane.f32.xlu1 %v5550_v21  ;;  %5548 = vadd.xlane.f32.xlu0 %v5547_v44  ;;  %v5611_v21 = vmul.f32 %v6642_v1, %v10497_v29  ;;  %v5610_v44 = vmul.f32 %v6641_v63, %v10499_v50  ;;  %v4921_v1 = vadd.f32 %v10385_v9, %v10325_v45  ;;  %v6659_v9 = vld [vmem:[%s11413_s11 + $0x330] sm:$0xff] }
 0x74a   : > { %v4916_v63 = vadd.f32 %v10325_v45, %v10387_v47 }
 0x74b   : > { %v5637_v3 = vsel %vm5216_vm1, %v5611_v21, 0.0  ;;  %v5634_v35 = vsel %vm5216_vm1, %v5610_v44, 0.0  ;;  %v6660_v21 = vld [vmem:[%s11413_s11 + $0x338] sm:$0xff]  ;;  %v10659_v44 = vmax.f32 %v4921_v1, 0.0  ;;  %v4926_v1 = vadd.f32 %v10325_v45, %v10403_v53 }
 0x74c   : > { %v10661_v47 = vmax.f32 %v4916_v63, 0.0 }
 0x74d   : > { %5632 = vadd.xlane.f32.xlu1 %v5631_v54  ;;  %5629 = vadd.xlane.f32.xlu0 %v5628_v36  ;;  %v5692_v54 = vmul.f32 %v6658_v30, %v10497_v29  ;;  %v5691_v36 = vmul.f32 %v6657_v15, %v10499_v50  ;;  %v5193_v30 = vld [vmem:[%s11413_s11 + $0x48] sm:$0xff]  ;;  %v5192_v15 = vld [vmem:[%s11413_s11 + $0x40] sm:$0xff]  ;;  %v10739_v53 = vmax.f32 %v4926_v1, 0.0 }
 0x74f   : > { %v5718_v56 = vsel %vm5216_vm1, %v5692_v54, 0.0  ;;  %v5715_v0 = vsel %vm5216_vm1, %v5691_v36, 0.0  ;;  %v5209_v54 = vmul.f32 %v5193_v30, %v10659_v44  ;;  %v5208_v36 = vmul.f32 %v5192_v15, %v10661_v47  ;;  %v5194_v30 = vld [vmem:[%s11413_s11 + $0x50] sm:$0xff] }
 0x751   : > { %5713 = vadd.xlane.f32.xlu1 %v5712_v28  ;;  %5710 = vadd.xlane.f32.xlu0 %v5709_v4  ;;  %v6580_v28 = vld [vmem:[%s11413_s11 + $0xb8] sm:$0xff]  ;;  %v6579_v4 = vld [vmem:[%s11413_s11 + $0xb0] sm:$0xff] }
 0x755   : > { %5233 = vadd.xlane.f32.xlu1 %v5232_v60  ;;  %5230 = vadd.xlane.f32.xlu0 %v5229_v7  ;;  %v5289_v60 = vmul.f32 %v6580_v28, %v10581_v11  ;;  %v5288_v7 = vmul.f32 %v6579_v4, %v10583_v55  ;;  %v6581_v28 = vld [vmem:[%s11413_s11 + $0xc0] sm:$0xff]  ;;  %v5244_v4 = vsel %vm5216_vm1, %v5209_v54, 0.0  ;;  %v5210_v54 = vmul.f32 %v5194_v30, %v10739_v53 }
 0x757   : > { %v5319_v52 = vsel %vm5216_vm1, %v5289_v60, 0.0  ;;  %v5316_v33 = vsel %vm5216_vm1, %v5288_v7, 0.0  ;;  %v5290_v60 = vmul.f32 %v6581_v28, %v10661_v47  ;;  %v6598_v7 = vld [vmem:[%s11413_s11 + $0x148] sm:$0xff]  ;;  %v5247_v28 = vsel %vm5216_vm1, %v5210_v54, 0.0 }
 0x759   : > { %5314 = vadd.xlane.f32.xlu1 %v5313_v20  ;;  %5311 = vadd.xlane.f32.xlu0 %v5310_v14  ;;  %v5370_v20 = vmul.f32 %v6596_v22, %v10581_v11  ;;  %v5369_v14 = vmul.f32 %v6595_v61, %v10583_v55  ;;  %v6597_v22 = vld [vmem:[%s11413_s11 + $0x140] sm:$0xff] }
 0x75b   : > { %v5400_v8 = vsel %vm5216_vm1, %v5370_v20, 0.0  ;;  %v5397_v19 = vsel %vm5216_vm1, %v5369_v14, 0.0  ;;  %v5371_v20 = vmul.f32 %v6597_v22, %v10661_v47  ;;  %v6614_v14 = vld [vmem:[%s11413_s11 + $0x1c8] sm:$0xff] }
 0x75d   : > { %5395 = vadd.xlane.f32.xlu1 %v5394_v10  ;;  %5392 = vadd.xlane.f32.xlu0 %v5391_v34  ;;  %v5451_v10 = vmul.f32 %v6612_v5, %v10581_v11  ;;  %v5450_v34 = vmul.f32 %v6611_v38, %v10583_v55  ;;  %v6613_v5 = vld [vmem:[%s11413_s11 + $0x1c0] sm:$0xff] }
 0x75f   : > { %v5481_v57 = vsel %vm5216_vm1, %v5451_v10, 0.0  ;;  %v5478_v12 = vsel %vm5216_vm1, %v5450_v34, 0.0  ;;  %v5452_v10 = vmul.f32 %v6613_v5, %v10661_v47  ;;  %v6630_v34 = vld [vmem:[%s11413_s11 + $0x248] sm:$0xff]  ;;  %v6615_v5 = vld [vmem:[%s11413_s11 + $0x1d0] sm:$0xff] }
 0x761   : > { %5476 = vadd.xlane.f32.xlu1 %v5475_v32  ;;  %5473 = vadd.xlane.f32.xlu0 %v5472_v40  ;;  %v5532_v32 = vmul.f32 %v6628_v26, %v10581_v11  ;;  %v5531_v40 = vmul.f32 %v6627_v59, %v10583_v55  ;;  %v6629_v26 = vld [vmem:[%s11413_s11 + $0x240] sm:$0xff] }
 0x763   : > { %v5562_v23 = vsel %vm5216_vm1, %v5532_v32, 0.0  ;;  %v5559_v58 = vsel %vm5216_vm1, %v5531_v40, 0.0  ;;  %v5533_v32 = vmul.f32 %v6629_v26, %v10661_v47  ;;  %v6646_v40 = vld [vmem:[%s11413_s11 + $0x2c8] sm:$0xff]  ;;  %v5454_v26 = vmul.f32 %v6615_v5, %v10739_v53 }
 0x765   : > { %5557 = vadd.xlane.f32.xlu1 %v5556_v62  ;;  %5554 = vadd.xlane.f32.xlu0 %v5553_v16  ;;  %v5613_v62 = vmul.f32 %v6644_v49, %v10581_v11  ;;  %v5612_v16 = vmul.f32 %v6643_v27, %v10583_v55  ;;  %v6645_v49 = vld [vmem:[%s11413_s11 + $0x2c0] sm:$0xff]  ;;  %v4931_v27 = vadd.f32 %v10399_v39, %v10325_v45 }
 0x766   : > { %v6661_v39 = vld [vmem:[%s11413_s11 + $0x340] sm:$0xff] }
 0x767   : > { %v5643_v43 = vsel %vm5216_vm1, %v5613_v62, 0.0  ;;  %v5640_v13 = vsel %vm5216_vm1, %v5612_v16, 0.0  ;;  %v5614_v62 = vmul.f32 %v6645_v49, %v10661_v47  ;;  %v6662_v16 = vld [vmem:[%s11413_s11 + $0x348] sm:$0xff]  ;;  %v5490_v49 = vsel %vm5216_vm1, %v5454_v26, 0.0 }
 0x769   : > { %5638 = vadd.xlane.f32.xlu1 %v5637_v3  ;;  %5635 = vadd.xlane.f32.xlu0 %v5634_v35  ;;  %v5694_v3 = vmul.f32 %v6660_v21, %v10581_v11  ;;  %v5693_v35 = vmul.f32 %v6659_v9, %v10583_v55  ;;  %v10737_v21 = vmax.f32 %v4931_v27, 0.0  ;;  %v5195_v9 = vld [vmem:[%s11413_s11 + $0x58] sm:$0xff] }
 0x76b   : > { %v5724_v25 = vsel %vm5216_vm1, %v5694_v3, 0.0  ;;  %v5721_v31 = vsel %vm5216_vm1, %v5693_v35, 0.0  ;;  %v5695_v3 = vmul.f32 %v6661_v39, %v10661_v47  ;;  %v5211_v35 = vmul.f32 %v5195_v9, %v10737_v21 }
 0x76c   : > { %v4936_v39 = vadd.f32 %v10325_v45, %v10455_v51 }
 0x76d   : > { %5719 = vadd.xlane.f32.xlu1 %v5718_v56  ;;  %5716 = vadd.xlane.f32.xlu0 %v5715_v0  ;;  %v8816_v56 = vmov 32   ;;  %v6582_v0 = vld [vmem:[%s11413_s11 + $0xc8] sm:$0xff] }
 0x76e   : > { %8423 = vset.pattern.permute.xlu1 %v8816_v56  ;;  %8422 = vset.pattern.permute.xlu0 %v8816_v56  ;;  %v6583_v56 = vld [vmem:[%s11413_s11 + $0xd0] sm:$0xff]  ;;  %v10825_v54 = vmax.f32 %v4936_v39, 0.0 }
 0x771   : > { %5239 = vadd.xlane.f32.xlu1 %v5238_v46  ;;  %5236 = vadd.xlane.f32.xlu0 %v5235_v2  ;;  %v5241_v46 = vsel %vm5216_vm1, %v5208_v36, 0.0  ;;  %v5291_v2 = vmul.f32 %v6582_v0, %v10659_v44  ;;  %v5250_v0 = vsel %vm5216_vm1, %v5211_v35, 0.0 }
 0x773   : > { %v5325_v61 = vsel %vm5216_vm1, %v5291_v2, 0.0  ;;  %v6600_v2 = vld [vmem:[%s11413_s11 + $0x158] sm:$0xff] }
 0x775   : > { %5320 = vadd.xlane.f32.xlu1 %v5319_v52  ;;  %5317 = vadd.xlane.f32.xlu0 %v5316_v33  ;;  %v5322_v52 = vsel %vm5216_vm1, %v5290_v60, 0.0  ;;  %v5372_v33 = vmul.f32 %v6598_v7, %v10659_v44  ;;  %v6599_v60 = vld [vmem:[%s11413_s11 + $0x150] sm:$0xff] }
 0x777   : > { %v5406_v38 = vsel %vm5216_vm1, %v5372_v33, 0.0  ;;  %v5374_v33 = vmul.f32 %v6600_v2, %v10737_v21 }
 0x779   : > { %5401 = vadd.xlane.f32.xlu1 %v5400_v8  ;;  %5398 = vadd.xlane.f32.xlu0 %v5397_v19  ;;  %v5403_v8 = vsel %vm5216_vm1, %v5371_v20, 0.0  ;;  %v5453_v19 = vmul.f32 %v6614_v14, %v10659_v44  ;;  %v5373_v20 = vmul.f32 %v6599_v60, %v10739_v53  ;;  %v6616_v14 = vld [vmem:[%s11413_s11 + $0x1d8] sm:$0xff] }
 0x77b   : > { %v5487_v59 = vsel %vm5216_vm1, %v5453_v19, 0.0  ;;  %v5412_v19 = vsel %vm5216_vm1, %v5374_v33, 0.0  ;;  %v6586_v33 = vld [vmem:[%s11413_s11 + $0xe8] sm:$0xff] }
 0x77d   : > { %5482 = vadd.xlane.f32.xlu1 %v5481_v57  ;;  %5479 = vadd.xlane.f32.xlu0 %v5478_v12  ;;  %v5484_v57 = vsel %vm5216_vm1, %v5452_v10, 0.0  ;;  %v5534_v12 = vmul.f32 %v6630_v34, %v10659_v44  ;;  %v5409_v10 = vsel %vm5216_vm1, %v5373_v20, 0.0  ;;  %v5455_v34 = vmul.f32 %v6616_v14, %v10737_v21  ;;  %v6585_v20 = vld [vmem:[%s11413_s11 + $0xe0] sm:$0xff] }
 0x77f   : > { %v5568_v63 = vsel %vm5216_vm1, %v5534_v12, 0.0 }
 0x781   : > { %5563 = vadd.xlane.f32.xlu1 %v5562_v23  ;;  %5560 = vadd.xlane.f32.xlu0 %v5559_v58  ;;  %v5565_v23 = vsel %vm5216_vm1, %v5533_v32, 0.0  ;;  %v5615_v58 = vmul.f32 %v6646_v40, %v10659_v44  ;;  %v5493_v40 = vsel %vm5216_vm1, %v5455_v34, 0.0 }
 0x783   : > { %v5649_v15 = vsel %vm5216_vm1, %v5615_v58, 0.0 }
 0x785   : > { %5644 = vadd.xlane.f32.xlu1 %v5643_v43  ;;  %5641 = vadd.xlane.f32.xlu0 %v5640_v13  ;;  %v5646_v43 = vsel %vm5216_vm1, %v5614_v62, 0.0  ;;  %v5696_v13 = vmul.f32 %v6662_v16, %v10659_v44  ;;  %v4941_v16 = vadd.f32 %v10449_v41, %v10325_v45  ;;  %v6663_v41 = vld [vmem:[%s11413_s11 + $0x350] sm:$0xff] }
 0x787   : > { %v5730_v36 = vsel %vm5216_vm1, %v5696_v13, 0.0  ;;  %v6664_v13 = vld [vmem:[%s11413_s11 + $0x358] sm:$0xff]  ;;  %v10823_v35 = vmax.f32 %v4941_v16, 0.0 }
 0x789   : > { %5725 = vadd.xlane.f32.xlu1 %v5724_v25  ;;  %5722 = vadd.xlane.f32.xlu0 %v5721_v31  ;;  %v5727_v25 = vsel %vm5216_vm1, %v5695_v3, 0.0  ;;  %v6584_v31 = vld [vmem:[%s11413_s11 + $0xd8] sm:$0xff] }
 0x78d   : > { %5245 = vadd.xlane.f32.xlu1 %v5244_v4  ;;  %5242 = vadd.xlane.f32.xlu0 %v5241_v46  ;;  %v5293_v4 = vmul.f32 %v6584_v31, %v10737_v21  ;;  %v5292_v46 = vmul.f32 %v6583_v56, %v10739_v53 }
 0x791   : > { %5326 = vadd.xlane.f32.xlu1 %v5325_v61  ;;  %5323 = vadd.xlane.f32.xlu0 %v5322_v52  ;;  %v5331_v61 = vsel %vm5216_vm1, %v5293_v4, 0.0  ;;  %v5328_v52 = vsel %vm5216_vm1, %v5292_v46, 0.0 }
 0x795   : > { %5407 = vadd.xlane.f32.xlu1 %v5406_v38  ;;  %5404 = vadd.xlane.f32.xlu0 %v5403_v8 }
 0x799   : > { %5488 = vadd.xlane.f32.xlu1 %v5487_v59  ;;  %5485 = vadd.xlane.f32.xlu0 %v5484_v57  ;;  %v6632_v59 = vld [vmem:[%s11413_s11 + $0x258] sm:$0xff]  ;;  %v6631_v57 = vld [vmem:[%s11413_s11 + $0x250] sm:$0xff] }
 0x79a   : > { %v5536_v27 = vmul.f32 %v6632_v59, %v10737_v21  ;;  %v5535_v1 = vmul.f32 %v6631_v57, %v10739_v53  ;;  %v5295_v59 = vmul.f32 %v6586_v33, %v10823_v35  ;;  %v6649_v33 = vld [vmem:[%s11413_s11 + $0x2e0] sm:$0xff] }
 0x79c   : > { %v5574_v9 = vsel %vm5216_vm1, %v5536_v27, 0.0  ;;  %v5571_v30 = vsel %vm5216_vm1, %v5535_v1, 0.0  ;;  %v6602_v27 = vld [vmem:[%s11413_s11 + $0x168] sm:$0xff] }
 0x79d   : > { %5569 = vadd.xlane.f32.xlu1 %v5568_v63  ;;  %5566 = vadd.xlane.f32.xlu0 %v5565_v23  ;;  %v6648_v63 = vld [vmem:[%s11413_s11 + $0x2d8] sm:$0xff]  ;;  %v6647_v23 = vld [vmem:[%s11413_s11 + $0x2d0] sm:$0xff] }
 0x7a1   : > { %5650 = vadd.xlane.f32.xlu1 %v5649_v15  ;;  %5647 = vadd.xlane.f32.xlu0 %v5646_v43  ;;  %v5617_v15 = vmul.f32 %v6648_v63, %v10737_v21  ;;  %v5616_v43 = vmul.f32 %v6647_v23, %v10739_v53 }
 0x7a3   : > { %v5655_v31 = vsel %vm5216_vm1, %v5617_v15, 0.0  ;;  %v5652_v56 = vsel %vm5216_vm1, %v5616_v43, 0.0  ;;  %v6618_v43 = vld [vmem:[%s11413_s11 + $0x1e8] sm:$0xff] }
 0x7a5   : > { %5731 = vadd.xlane.f32.xlu1 %v5730_v36  ;;  %5728 = vadd.xlane.f32.xlu0 %v5727_v25  ;;  %v5197_v36 = vld [vmem:[%s11413_s11 + $0x68] sm:$0xff]  ;;  %v5196_v25 = vld [vmem:[%s11413_s11 + $0x60] sm:$0xff] }
 0x7a6   : > { %v5213_v2 = vmul.f32 %v5197_v36, %v10823_v35  ;;  %v5212_v60 = vmul.f32 %v5196_v25, %v10825_v54  ;;  %v5457_v25 = vmul.f32 %v6618_v43, %v10823_v35 }
 0x7a9   : > { %5251 = vadd.xlane.f32.xlu1 %v5250_v0  ;;  %5248 = vadd.xlane.f32.xlu0 %v5247_v28  ;;  %v5698_v0 = vmul.f32 %v6664_v13, %v10737_v21  ;;  %v5697_v28 = vmul.f32 %v6663_v41, %v10739_v53  ;;  %v6617_v13 = vld [vmem:[%s11413_s11 + $0x1e0] sm:$0xff] }
 0x7aa   : > { %v10771_v7 = vpop.xlane.xlu1 %5302  ;;  %v10773_v22 = vpop.xlane.xlu0 %5221 }
 0x7ab   : > { %v5753_v34 = vsel %vm5751_vm2, %v10773_v22, %v10771_v7 }
 0x7ad   : > { %5332 = vadd.xlane.f32.xlu1 %v5331_v61  ;;  %5329 = vadd.xlane.f32.xlu0 %v5328_v52  ;;  %v5736_v61 = vsel %vm5216_vm1, %v5698_v0, 0.0  ;;  %v5733_v52 = vsel %vm5216_vm1, %v5697_v28, 0.0  ;;  %v6633_v0 = vld [vmem:[%s11413_s11 + $0x260] sm:$0xff] }
 0x7ae   : > { %v10785_v38 = vpop.xlane.xlu1 %5383  ;;  %v10787_v8 = vpop.xlane.xlu0 %5218 }
 0x7af   : > { %v5770_v57 = vsel %vm5768_vm3, %v5753_v34, %v10785_v38  ;;  %v6601_v38 = vld [vmem:[%s11413_s11 + $0x160] sm:$0xff] }
 0x7b1   : > { %5413 = vadd.xlane.f32.xlu1 %v5412_v19  ;;  %5410 = vadd.xlane.f32.xlu0 %v5409_v10  ;;  %v5256_v19 = vsel %vm5216_vm1, %v5213_v2, 0.0  ;;  %v5253_v10 = vsel %vm5216_vm1, %v5212_v60, 0.0 }
 0x7b2   : > { %v5465_v12 = vpop.xlane.xlu1 %5464  ;;  %v5381_v32 = vpop.xlane.xlu0 %5380 }
 0x7b3   : > { %v5787_v7 = vsel %vm5785_vm4, %v5770_v57, %v5465_v12  ;;  %v5337_v12 = vsel %vm5216_vm1, %v5295_v59, 0.0  ;;  %v5618_v59 = vmul.f32 %v6649_v33, %v10825_v54  ;;  %v6666_v57 = vld [vmem:[%s11413_s11 + $0x368] sm:$0xff]  ;;  %v6603_v33 = vld [vmem:[%s11413_s11 + $0x170] sm:$0xff] }
 0x7b5   : > { %5494 = vadd.xlane.f32.xlu1 %v5493_v40  ;;  %5491 = vadd.xlane.f32.xlu0 %v5490_v49  ;;  %v5294_v49 = vmul.f32 %v6585_v20, %v10825_v54 }
 0x7b6   : > { %v5546_v58 = vpop.xlane.xlu1 %5545  ;;  %v5462_v62 = vpop.xlane.xlu0 %5461 }
 0x7b9   : > { %5575 = vadd.xlane.f32.xlu1 %v5574_v9  ;;  %5572 = vadd.xlane.f32.xlu0 %v5571_v30  ;;  %v5334_v30 = vsel %vm5216_vm1, %v5294_v49, 0.0 }
 0x7ba   : > { %v5627_v3 = vpop.xlane.xlu1 %5626  ;;  %v5543_v51 = vpop.xlane.xlu0 %5542 }
 0x7bd   : > { %5656 = vadd.xlane.f32.xlu1 %v5655_v31  ;;  %5653 = vadd.xlane.f32.xlu0 %v5652_v56  ;;  %v5456_v31 = vmul.f32 %v6617_v13, %v10825_v54  ;;  %v6634_v56 = vld [vmem:[%s11413_s11 + $0x268] sm:$0xff] }
 0x7be   : > { %v5708_v4 = vpop.xlane.xlu1 %5707  ;;  %v5624_v46 = vpop.xlane.xlu0 %5623  ;;  %v5538_v60 = vmul.f32 %v6634_v56, %v10823_v35 }
 0x7bf   : > { %v5496_v2 = vsel %vm5216_vm1, %v5456_v31, 0.0 }
 0x7c1   : > { %5737 = vadd.xlane.f32.xlu1 %v5736_v61  ;;  %5734 = vadd.xlane.f32.xlu0 %v5733_v52  ;;  %v5537_v61 = vmul.f32 %v6633_v0, %v10825_v54  ;;  %v6650_v52 = vld [vmem:[%s11413_s11 + $0x2e8] sm:$0xff] }
 0x7c2   : > { %v5300_v14 = vpop.xlane.xlu1 %5299  ;;  %v5705_v5 = vpop.xlane.xlu0 %5704 }
 0x7c3   : > { %v5752_v26 = vsel %vm5751_vm2, %v10787_v8, %v5300_v14  ;;  %v5804_v8 = vsel %vm5802_vm5, %v5787_v7, %v5546_v58  ;;  %v5375_v58 = vmul.f32 %v6601_v38, %v10825_v54  ;;  %v5577_v34 = vsel %vm5216_vm1, %v5537_v61, 0.0  ;;  %v5198_v7 = vld [vmem:[%s11413_s11 + $0x70] sm:$0xff] }
 0x7c4   : > { %v5769_v40 = vsel %vm5768_vm3, %v5752_v26, %v5381_v32  ;;  %v5821_v23 = vsel %vm5819_vm6, %v5804_v8, %v5627_v3  ;;  %v5619_v26 = vmul.f32 %v6650_v52, %v10823_v35  ;;  %v5658_v38 = vsel %vm5216_vm1, %v5618_v59, 0.0  ;;  %v6604_v52 = vld [vmem:[%s11413_s11 + $0x178] sm:$0xff]  ;;  %v6619_v59 = vld [vmem:[%s11413_s11 + $0x1f0] sm:$0xff] }
 0x7c5   : > { %v5786_v22 = vsel %vm5785_vm4, %v5769_v40, %v5462_v62  ;;  %5257 = vadd.xlane.f32.xlu1 %v5256_v19  ;;  %5254 = vadd.xlane.f32.xlu0 %v5253_v10  ;;  %v5376_v62 = vmul.f32 %v6602_v27, %v10823_v35  ;;  %v5838_v39 = vsel %vm5836_vm7, %v5821_v23, %v5708_v4  ;;  %v5415_v36 = vsel %vm5216_vm1, %v5375_v58, 0.0  ;;  %v5199_v27 = vld [vmem:[%s11413_s11 + $0x78] sm:$0xff] }
 0x7c6   : > { %v5803_v32 = vsel %vm5802_vm5, %v5786_v22, %v5543_v51  ;;  %v5228_v1 = vpop.xlane.xlu1 %5227  ;;  %v5225_v63 = vpop.xlane.xlu0 %5224  ;;  %v4946_v19 = vadd.f32 %v10325_v45, %v10539_v24  ;;  %v5580_v10 = vsel %vm5216_vm1, %v5538_v60, 0.0  ;;  %v5661_v22 = vsel %vm5216_vm1, %v5619_v26, 0.0  ;;  %v6620_v26 = vld [vmem:[%s11413_s11 + $0x1f8] sm:$0xff] }
 0x7c7   : > { %v5820_v16 = vsel %vm5819_vm6, %v5803_v32, %v5624_v46  ;;  %v5418_v51 = vsel %vm5216_vm1, %v5376_v62, 0.0  ;;  %v5499_v46 = vsel %vm5216_vm1, %v5457_v25, 0.0  ;;  %v5700_v8 = vmul.f32 %v6666_v57, %v10823_v35 }
 0x7c8   : > { %v5837_v9 = vsel %vm5836_vm7, %v5820_v16, %v5705_v5  ;;  %v4951_v5 = vadd.f32 %v10533_v37, %v10325_v45  ;;  %v6665_v37 = vld [vmem:[%s11413_s11 + $0x360] sm:$0xff]  ;;  %v10920_v49 = vmax.f32 %v4946_v19, 0.0 }
 0x7c9   : > { %v7837_v15 = vpack.c.bf16 %v5838_v39, %v5837_v9  ;;  %5338 = vadd.xlane.f32.xlu1 %v5337_v12  ;;  %5335 = vadd.xlane.f32.xlu0 %v5334_v30  ;;  %v5699_v32 = vmul.f32 %v6665_v37, %v10825_v54  ;;  %v5742_v13 = vsel %vm5216_vm1, %v5700_v8, 0.0 }
 0x7ca   : > { %v5309_v41 = vpop.xlane.xlu1 %5308  ;;  %v5306_v3 = vpop.xlane.xlu0 %5305  ;;  %v10918_v24 = vmax.f32 %v4951_v5, 0.0  ;;  %v5214_v9 = vmul.f32 %v5198_v7, %v10920_v49  ;;  %v5458_v7 = vmul.f32 %v6619_v59, %v10920_v49 }
 0x7cb   : > { %7838 = vmatpush3.bf16.msra.mxu0 %v7837_v15  ;;  %v5755_v23 = vsel %vm5751_vm2, %v5228_v1, %v5309_v41  ;;  %v5754_v16 = vsel %vm5751_vm2, %v5225_v63, %v5306_v3  ;;  %v5739_v1 = vsel %vm5216_vm1, %v5699_v32, 0.0  ;;  %v6588_v3 = vld [vmem:[%s11413_s11 + $0xf8] sm:$0xff] }
 0x7cc   : > { %7839 = vmatprep.subr.bf16.mxu0 %v8815_v48  ;;  %v5215_v39 = vmul.f32 %v5199_v27, %v10918_v24  ;;  %v5297_v60 = vmul.f32 %v6588_v3, %v10918_v24  ;;  %v5459_v27 = vmul.f32 %v6620_v26, %v10918_v24 }
 0x7cd   : > { %5419 = vadd.xlane.f32.xlu1 %v5418_v51  ;;  %5416 = vadd.xlane.f32.xlu0 %v5415_v36  ;;  %v6587_v51 = vld [vmem:[%s11413_s11 + $0xf0] sm:$0xff] }
 0x7ce   : > { %v5390_v28 = vpop.xlane.xlu1 %5389  ;;  %v5387_v4 = vpop.xlane.xlu0 %5386  ;;  %v5262_v0 = vsel %vm5216_vm1, %v5215_v39, 0.0  ;;  %v5296_v61 = vmul.f32 %v6587_v51, %v10920_v49  ;;  %v5343_v5 = vsel %vm5216_vm1, %v5297_v60, 0.0  ;;  %v6652_v39 = vld [vmem:[%s11413_s11 + $0x2f8] sm:$0xff] }
 0x7cf   : > { %v5772_v30 = vsel %vm5768_vm3, %v5755_v23, %v5390_v28  ;;  %v5771_v58 = vsel %vm5768_vm3, %v5754_v16, %v5387_v4  ;;  %v5259_v28 = vsel %vm5216_vm1, %v5214_v9, 0.0  ;;  %v5505_v23 = vsel %vm5216_vm1, %v5459_v27, 0.0  ;;  %v6651_v9 = vld [vmem:[%s11413_s11 + $0x2f0] sm:$0xff] }
 0x7d0   : > { %v5340_v19 = vsel %vm5216_vm1, %v5296_v61, 0.0  ;;  %v5502_v16 = vsel %vm5216_vm1, %v5458_v7, 0.0 }
 0x7d1   : > { %5500 = vadd.xlane.f32.xlu1 %v5499_v46  ;;  %5497 = vadd.xlane.f32.xlu0 %v5496_v2 }
 0x7d2   : > { %v5471_v20 = vpop.xlane.xlu1 %5470  ;;  %v5468_v14 = vpop.xlane.xlu0 %5467 }
 0x7d3   : > { %v5789_v15 = vsel %vm5785_vm4, %v5772_v30, %v5471_v20  ;;  %v5788_v43 = vsel %vm5785_vm4, %v5771_v58, %v5468_v14 }
 0x7d5   : > { %5581 = vadd.xlane.f32.xlu1 %v5580_v10  ;;  %5578 = vadd.xlane.f32.xlu0 %v5577_v34  ;;  %v5378_v10 = vmul.f32 %v6604_v52, %v10918_v24  ;;  %v5377_v34 = vmul.f32 %v6603_v33, %v10920_v49 }
 0x7d6   : > { %v5552_v40 = vpop.xlane.xlu1 %5551  ;;  %v5549_v45 = vpop.xlane.xlu0 %5548 }
 0x7d7   : > { %v5806_v63 = vsel %vm5802_vm5, %v5789_v15, %v5552_v40  ;;  %v5805_v41 = vsel %vm5802_vm5, %v5788_v43, %v5549_v45  ;;  %v5424_v40 = vsel %vm5216_vm1, %v5378_v10, 0.0  ;;  %v5421_v45 = vsel %vm5216_vm1, %v5377_v34, 0.0 }
 0x7d9   : > { %5662 = vadd.xlane.f32.xlu1 %v5661_v22  ;;  %5659 = vadd.xlane.f32.xlu0 %v5658_v38  ;;  %v6636_v22 = vld [vmem:[%s11413_s11 + $0x278] sm:$0xff]  ;;  %v6635_v38 = vld [vmem:[%s11413_s11 + $0x270] sm:$0xff] }
 0x7da   : > { %v5633_v12 = vpop.xlane.xlu1 %5632  ;;  %v5630_v62 = vpop.xlane.xlu0 %5629 }
 0x7db   : > { %v5823_v36 = vsel %vm5819_vm6, %v5806_v63, %v5633_v12  ;;  %v5822_v25 = vsel %vm5819_vm6, %v5805_v41, %v5630_v62  ;;  %v5540_v12 = vmul.f32 %v6636_v22, %v10918_v24  ;;  %v5539_v62 = vmul.f32 %v6635_v38, %v10920_v49  ;;  %v6668_v63 = vld [vmem:[%s11413_s11 + $0x378] sm:$0xff]  ;;  %v6667_v41 = vld [vmem:[%s11413_s11 + $0x370] sm:$0xff] }
 0x7dd   : > { %5743 = vadd.xlane.f32.xlu1 %v5742_v13  ;;  %5740 = vadd.xlane.f32.xlu0 %v5739_v1  ;;  %v5586_v15 = vsel %vm5216_vm1, %v5540_v12, 0.0  ;;  %v5583_v43 = vsel %vm5216_vm1, %v5539_v62, 0.0  ;;  %v5621_v13 = vmul.f32 %v6652_v39, %v10918_v24  ;;  %v5620_v1 = vmul.f32 %v6651_v9, %v10920_v49 }
 0x7de   : > { %v5714_v31 = vpop.xlane.xlu1 %5713  ;;  %v5711_v56 = vpop.xlane.xlu0 %5710 }
 0x7df   : > { %v5840_v4 = vsel %vm5836_vm7, %v5823_v36, %v5714_v31  ;;  %v5839_v46 = vsel %vm5836_vm7, %v5822_v25, %v5711_v56  ;;  %v5667_v36 = vsel %vm5216_vm1, %v5621_v13, 0.0  ;;  %v5664_v25 = vsel %vm5216_vm1, %v5620_v1, 0.0 }
 0x7e0   : > { %v7840_v2 = vpack.c.bf16 %v5840_v4, %v5839_v46  ;;  %v5702_v31 = vmul.f32 %v6668_v63, %v10918_v24  ;;  %v5701_v56 = vmul.f32 %v6667_v41, %v10920_v49 }
 0x7e1   : > { %5263 = vadd.xlane.f32.xlu1 %v5262_v0  ;;  %5260 = vadd.xlane.f32.xlu0 %v5259_v28 }
 0x7e2   : > { %v5234_v20 = vpop.xlane.xlu1 %5233  ;;  %7841 = vmatpush3.bf16.msra.mxu0 %v7840_v2  ;;  %v5231_v14 = vpop.xlane.xlu0 %5230  ;;  %v5748_v33 = vsel %vm5216_vm1, %v5702_v31, 0.0 }
 0x7e3   : > { %7842 = vmatprep.subr.bf16.mxu0 %v8815_v48 }
 0x7e5   : > { %5344 = vadd.xlane.f32.xlu1 %v5343_v5  ;;  %5341 = vadd.xlane.f32.xlu0 %v5340_v19  ;;  %v5745_v5 = vsel %vm5216_vm1, %v5701_v56, 0.0 }
 0x7e6   : > { %v5315_v57 = vpop.xlane.xlu1 %5314  ;;  %v5312_v37 = vpop.xlane.xlu0 %5311 }
 0x7e7   : > { %v5757_v0 = vsel %vm5751_vm2, %v5234_v20, %v5315_v57  ;;  %v5756_v28 = vsel %vm5751_vm2, %v5231_v14, %v5312_v37 }
 0x7e9   : > { %5425 = vadd.xlane.f32.xlu1 %v5424_v40  ;;  %5422 = vadd.xlane.f32.xlu0 %v5421_v45 }
 0x7ea   : > { %v5396_v8 = vpop.xlane.xlu1 %5395  ;;  %v5393_v32 = vpop.xlane.xlu0 %5392 }
 0x7eb   : > { %v5774_v2 = vsel %vm5768_vm3, %v5757_v0, %v5396_v8  ;;  %v5773_v60 = vsel %vm5768_vm3, %v5756_v28, %v5393_v32 }
 0x7ed   : > { %5506 = vadd.xlane.f32.xlu1 %v5505_v23  ;;  %5503 = vadd.xlane.f32.xlu0 %v5502_v16  ;;  %v8818_v23 = vmov 0.0  }
 0x7ee   : > { %v5477_v30 = vpop.xlane.xlu1 %5476  ;;  %v5474_v58 = vpop.xlane.xlu0 %5473  ;;  %7773 = vmatprep.mubr.msk.f32.mxu0 %vm8817_vm8, %v8818_v23  ;;  %7738 = vmatprep.mubr.msk.f32.mxu1 %vm8817_vm8, %v8818_v23 }
 0x7ef   : > { %v5791_v61 = vsel %vm5785_vm4, %v5774_v2, %v5477_v30  ;;  %v5790_v52 = vsel %vm5785_vm4, %v5773_v60, %v5474_v58 }
 0x7f1   : > { %5587 = vadd.xlane.f32.xlu1 %v5586_v15  ;;  %5584 = vadd.xlane.f32.xlu0 %v5583_v43 }
 0x7f2   : > { %v5558_v3 = vpop.xlane.xlu1 %5557  ;;  %v5555_v51 = vpop.xlane.xlu0 %5554 }
 0x7f3   : > { %v5808_v19 = vsel %vm5802_vm5, %v5791_v61, %v5558_v3  ;;  %v5807_v20 = vsel %vm5802_vm5, %v5790_v52, %v5555_v51 }
 0x7f5   : > { %5668 = vadd.xlane.f32.xlu1 %v5667_v36  ;;  %5665 = vadd.xlane.f32.xlu0 %v5664_v25 }
 0x7f6   : > { %v5639_v4 = vpop.xlane.xlu1 %5638  ;;  %v5636_v46 = vpop.xlane.xlu0 %5635 }
 0x7f7   : > { %v5825_v14 = vsel %vm5819_vm6, %v5808_v19, %v5639_v4  ;;  %v5824_v10 = vsel %vm5819_vm6, %v5807_v20, %v5636_v46 }
 0x7f9   : > { %5749 = vadd.xlane.f32.xlu1 %v5748_v33  ;;  %5746 = vadd.xlane.f32.xlu0 %v5745_v5 }
 0x7fa   : > { %v5720_v34 = vpop.xlane.xlu1 %5719  ;;  %v5717_v26 = vpop.xlane.xlu0 %5716 }
 0x7fb   : > { %v5842_v59 = vsel %vm5836_vm7, %v5825_v14, %v5720_v34  ;;  %v5841_v57 = vsel %vm5836_vm7, %v5824_v10, %v5717_v26 }
 0x7fc   : > { %v7843_v37 = vpack.c.bf16 %v5842_v59, %v5841_v57 }
 0x7fe   : > { %v5240_v40 = vpop.xlane.xlu1 %5239  ;;  %7844 = vmatpush3.bf16.msra.mxu0 %v7843_v37  ;;  %v5237_v45 = vpop.xlane.xlu0 %5236 }
 0x7ff   : > { %7845 = vmatprep.subr.bf16.mxu0 %v8815_v48 }
 0x802   : > { %v5321_v27 = vpop.xlane.xlu1 %5320  ;;  %v5318_v7 = vpop.xlane.xlu0 %5317 }
 0x803   : > { %v5759_v62 = vsel %vm5751_vm2, %v5240_v40, %v5321_v27  ;;  %v5758_v39 = vsel %vm5751_vm2, %v5237_v45, %v5318_v7 }
 0x806   : > { %v5402_v22 = vpop.xlane.xlu1 %5401  ;;  %v5399_v38 = vpop.xlane.xlu0 %5398 }
 0x807   : > { %v5776_v30 = vsel %vm5768_vm3, %v5759_v62, %v5402_v22  ;;  %v5775_v58 = vsel %vm5768_vm3, %v5758_v39, %v5399_v38 }
 0x80a   : > { %4994 = vperm.xlu1 %8423, %v10335_v17   ;;  %v5483_v8 = vpop.xlane.xlu1 %5482  ;;  %v5480_v32 = vpop.xlane.xlu0 %5479 }
 0x80b   : > { %v5792_v15 = vsel %vm5785_vm4, %v5775_v58, %v5480_v32 }
 0x80e   : > { %4999 = vperm.xlu1 %8423, %v10417_v18   ;;  %v5564_v16 = vpop.xlane.xlu1 %5563  ;;  %v5561_v12 = vpop.xlane.xlu0 %5560  ;;  %v5793_v18 = vsel %vm5785_vm4, %v5776_v30, %v5483_v8 }
 0x80f   : > { %4989 = vperm.xlu0 %8422, %v10337_v42   ;;  %v5810_v42 = vsel %vm5802_vm5, %v5793_v18, %v5564_v16  ;;  %v5809_v43 = vsel %vm5802_vm5, %v5792_v15, %v5561_v12 }
 0x812   : > { %5004 = vperm.xlu1 %8423, %v10415_v6   ;;  %v5645_v9 = vpop.xlane.xlu1 %5644  ;;  %v5642_v17 = vpop.xlane.xlu0 %5641 }
 0x813   : > { %5034 = vperm.xlu0 %8422, %v10659_v44   ;;  %v5827_v13 = vsel %vm5819_vm6, %v5810_v42, %v5645_v9  ;;  %v5826_v6 = vsel %vm5819_vm6, %v5809_v43, %v5642_v17 }
 0x816   : > { %5009 = vperm.xlu1 %8423, %v10499_v50   ;;  %v5726_v1 = vpop.xlane.xlu1 %5725  ;;  %v5723_v63 = vpop.xlane.xlu0 %5722 }
 0x817   : > { %v5844_v41 = vsel %vm5836_vm7, %v5827_v13, %v5726_v1  ;;  %v5843_v44 = vsel %vm5836_vm7, %v5826_v6, %v5723_v63  ;;  %5044 = vperm.xlu0 %8422, %v10737_v21  }
 0x818   : > { %v7846_v3 = vpack.c.bf16 %v5844_v41, %v5843_v44 }
 0x81a   : > { %5014 = vperm.xlu1 %8423, %v10497_v29   ;;  %v5246_v51 = vpop.xlane.xlu1 %5245  ;;  %7847 = vmatpush3.bf16.msra.mxu0 %v7846_v3  ;;  %v5243_v36 = vpop.xlane.xlu0 %5242 }
 0x81b   : > { %5054 = vperm.xlu0 %8422, %v10823_v35   ;;  %7848 = vmatprep.subr.bf16.mxu0 %v8815_v48 }
 0x81e   : > { %5019 = vperm.xlu1 %8423, %v10583_v55   ;;  %v5327_v50 = vpop.xlane.xlu1 %5326  ;;  %v5324_v25 = vpop.xlane.xlu0 %5323 }
 0x81f   : > { %5064 = vperm.xlu0 %8422, %v10918_v24   ;;  %v5761_v28 = vsel %vm5751_vm2, %v5246_v51, %v5327_v50  ;;  %v5760_v55 = vsel %vm5751_vm2, %v5243_v36, %v5324_v25 }
 0x822   : > { %5024 = vperm.xlu1 %8423, %v10581_v11   ;;  %v5408_v31 = vpop.xlane.xlu1 %5407  ;;  %v5405_v21 = vpop.xlane.xlu0 %5404 }
 0x823   : > { %v5778_v11 = vsel %vm5768_vm3, %v5761_v28, %v5408_v31  ;;  %v5777_v46 = vsel %vm5768_vm3, %v5760_v55, %v5405_v21 }
 0x826   : > { %5029 = vperm.xlu1 %8423, %v10661_v47   ;;  %v5489_v29 = vpop.xlane.xlu1 %5488  ;;  %v5486_v56 = vpop.xlane.xlu0 %5485 }
 0x827   : > { %v5795_v47 = vsel %vm5785_vm4, %v5778_v11, %v5489_v29  ;;  %v5794_v2 = vsel %vm5785_vm4, %v5777_v46, %v5486_v56 }
 0x82a   : > { %5039 = vperm.xlu1 %8423, %v10739_v53   ;;  %v5570_v0 = vpop.xlane.xlu1 %5569  ;;  %v5567_v35 = vpop.xlane.xlu0 %5566 }
 0x82b   : > { %v5812_v53 = vsel %vm5802_vm5, %v5795_v47, %v5570_v0  ;;  %v5811_v60 = vsel %vm5802_vm5, %v5794_v2, %v5567_v35 }
 0x82e   : > { %5049 = vperm.xlu1 %8423, %v10825_v54   ;;  %v5651_v4 = vpop.xlane.xlu1 %5650  ;;  %v5648_v24 = vpop.xlane.xlu0 %5647 }
 0x82f   : > { %v5829_v61 = vsel %vm5819_vm6, %v5812_v53, %v5651_v4  ;;  %v5828_v52 = vsel %vm5819_vm6, %v5811_v60, %v5648_v24 }
 0x832   : > { %5059 = vperm.xlu1 %8423, %v10920_v49   ;;  %v5732_v54 = vpop.xlane.xlu1 %5731  ;;  %v5729_v33 = vpop.xlane.xlu0 %5728 }
 0x833   : > { %v5846_v5 = vsel %vm5836_vm7, %v5829_v61, %v5732_v54  ;;  %v5845_v19 = vsel %vm5836_vm7, %v5828_v52, %v5729_v33 }
 0x834   : > { %v7849_v20 = vpack.c.bf16 %v5846_v5, %v5845_v19 }
 0x836   : > { %v5252_v14 = vpop.xlane.xlu1 %5251  ;;  %7850 = vmatpush3.bf16.msra.mxu0 %v7849_v20  ;;  %v5249_v10 = vpop.xlane.xlu0 %5248 }
 0x837   : > { %7851 = vmatprep.subr.bf16.mxu0 %v8815_v48 }
 0x83a   : > { %v5333_v34 = vpop.xlane.xlu1 %5332  ;;  %v5330_v26 = vpop.xlane.xlu0 %5329 }
 0x83b   : > { %v5763_v27 = vsel %vm5751_vm2, %v5252_v14, %v5333_v34  ;;  %v5762_v7 = vsel %vm5751_vm2, %v5249_v10, %v5330_v26 }
 0x83e   : > { %v5414_v59 = vpop.xlane.xlu1 %5413  ;;  %v5411_v57 = vpop.xlane.xlu0 %5410 }
 0x83f   : > { %v5780_v8 = vsel %vm5768_vm3, %v5763_v27, %v5414_v59  ;;  %v5779_v32 = vsel %vm5768_vm3, %v5762_v7, %v5411_v57 }
 0x842   : > { %v5495_v37 = vpop.xlane.xlu1 %5494  ;;  %v5492_v40 = vpop.xlane.xlu0 %5491 }
 0x843   : > { %v5797_v23 = vsel %vm5785_vm4, %v5780_v8, %v5495_v37  ;;  %v5796_v16 = vsel %vm5785_vm4, %v5779_v32, %v5492_v40 }
 0x846   : > { %v5576_v45 = vpop.xlane.xlu1 %5575  ;;  %v5573_v49 = vpop.xlane.xlu0 %5572 }
 0x847   : > { %v5814_v12 = vsel %vm5802_vm5, %v5797_v23, %v5576_v45  ;;  %v5813_v62 = vsel %vm5802_vm5, %v5796_v16, %v5573_v49 }
 0x84a   : > { %v5657_v22 = vpop.xlane.xlu1 %5656  ;;  %v5654_v38 = vpop.xlane.xlu0 %5653 }
 0x84b   : > { %v5831_v39 = vsel %vm5819_vm6, %v5814_v12, %v5657_v22  ;;  %v5830_v9 = vsel %vm5819_vm6, %v5813_v62, %v5654_v38  ;;  %v11104_v62 = vld [vmem:[#allocation20] sm:$0x3] }
 0x84e   : > { %v5738_v17 = vpop.xlane.xlu1 %5737  ;;  %v5735_v30 = vpop.xlane.xlu0 %5734 }
 0x84f   : > { %v5848_v58 = vsel %vm5836_vm7, %v5831_v39, %v5738_v17  ;;  %v5847_v18 = vsel %vm5836_vm7, %v5830_v9, %v5735_v30  ;;  %v4972_v39 = vld [vmem:[%s11414_s4 + $0x8] sm:$0xff]  ;;  %v4971_v9 = vld [vmem:[%s11414_s4] sm:$0xff] }
 0x850   : > { %v7852_v15 = vpack.c.bf16 %v5848_v58, %v5847_v18 }
 0x852   : > { %v5258_v42 = vpop.xlane.xlu1 %5257  ;;  %7853 = vmatpush3.bf16.msra.mxu0 %v7852_v15  ;;  %v5255_v43 = vpop.xlane.xlu0 %5254  ;;  %v4973_v15 = vld [vmem:[%s11414_s4 + $0x10] sm:$0xff] }
 0x853   : > { %7854 = vmatprep.subr.bf16.mxu0 %v8815_v48 }
 0x856   : > { %v5339_v13 = vpop.xlane.xlu1 %5338  ;;  %v5336_v6 = vpop.xlane.xlu0 %5335 }
 0x857   : > { %v5765_v36 = vsel %vm5751_vm2, %v5258_v42, %v5339_v13  ;;  %v5764_v50 = vsel %vm5751_vm2, %v5255_v43, %v5336_v6  ;;  %v4974_v42 = vld [vmem:[%s11414_s4 + $0x18] sm:$0xff] }
 0x85a   : > { %v5420_v1 = vpop.xlane.xlu1 %5419  ;;  %v5417_v63 = vpop.xlane.xlu0 %5416 }
 0x85b   : > { %v5782_v21 = vsel %vm5768_vm3, %v5765_v36, %v5420_v1  ;;  %v5781_v29 = vsel %vm5768_vm3, %v5764_v50, %v5417_v63 }
 0x85e   : > { %v5501_v41 = vpop.xlane.xlu1 %5500  ;;  %v5498_v44 = vpop.xlane.xlu0 %5497 }
 0x85f   : > { %v5799_v56 = vsel %vm5785_vm4, %v5782_v21, %v5501_v41  ;;  %v5798_v0 = vsel %vm5785_vm4, %v5781_v29, %v5498_v44  ;;  %v4975_v44 = vld [vmem:[%s11414_s4 + $0x20] sm:$0xff]  ;;  %v4977_v29 = vld [vmem:[%s11414_s4 + $0x30] sm:$0xff] }
 0x862   : > { %v5582_v3 = vpop.xlane.xlu1 %5581  ;;  %v5579_v51 = vpop.xlane.xlu0 %5578 }
 0x863   : > { %v5816_v35 = vsel %vm5802_vm5, %v5799_v56, %v5582_v3  ;;  %v5815_v28 = vsel %vm5802_vm5, %v5798_v0, %v5579_v51  ;;  %v4976_v3 = vld [vmem:[%s11414_s4 + $0x28] sm:$0xff]  ;;  %v4978_v56 = vld [vmem:[%s11414_s4 + $0x38] sm:$0xff] }
 0x866   : > { %v5663_v25 = vpop.xlane.xlu1 %5662  ;;  %v5660_v31 = vpop.xlane.xlu0 %5659 }
 0x867   : > { %v5833_v55 = vsel %vm5819_vm6, %v5816_v35, %v5663_v25  ;;  %v5832_v4 = vsel %vm5819_vm6, %v5815_v28, %v5660_v31 }
 0x86a   : > { %v5744_v24 = vpop.xlane.xlu1 %5743  ;;  %v5741_v11 = vpop.xlane.xlu0 %5740 }
 0x86b   : > { %v5850_v46 = vsel %vm5836_vm7, %v5833_v55, %v5744_v24  ;;  %v5849_v47 = vsel %vm5836_vm7, %v5832_v4, %v5741_v11  ;;  %v4980_v55 = vld [vmem:[%s11414_s4 + $0x48] sm:$0xff]  ;;  %v4979_v24 = vld [vmem:[%s11414_s4 + $0x40] sm:$0xff] }
 0x86c   : > { %v7855_v2 = vpack.c.bf16 %v5850_v46, %v5849_v47 }
 0x86e   : > { %v5264_v53 = vpop.xlane.xlu1 %5263  ;;  %7856 = vmatpush3.bf16.msra.mxu0 %v7855_v2  ;;  %v5261_v60 = vpop.xlane.xlu0 %5260 }
 0x86f   : > { %7857 = vmatprep.subr.bf16.mxu0 %v8815_v48 }
 0x872   : > { %v5345_v61 = vpop.xlane.xlu1 %5344  ;;  %v5342_v52 = vpop.xlane.xlu0 %5341 }
 0x873   : > { %v5767_v10 = vsel %vm5751_vm2, %v5264_v53, %v5345_v61  ;;  %v5766_v34 = vsel %vm5751_vm2, %v5261_v60, %v5342_v52  ;;  %v4982_v53 = vld [vmem:[%s11414_s4 + $0x58] sm:$0xff]  ;;  %v4981_v60 = vld [vmem:[%s11414_s4 + $0x50] sm:$0xff] }
 0x876   : > { %v5426_v54 = vpop.xlane.xlu1 %5425  ;;  %v5423_v33 = vpop.xlane.xlu0 %5422 }
 0x877   : > { %v5784_v57 = vsel %vm5768_vm3, %v5767_v10, %v5426_v54  ;;  %v5783_v37 = vsel %vm5768_vm3, %v5766_v34, %v5423_v33 }
 0x87a   : > { %v5507_v5 = vpop.xlane.xlu1 %5506  ;;  %v5504_v19 = vpop.xlane.xlu0 %5503 }
 0x87b   : > { %v5801_v40 = vsel %vm5785_vm4, %v5784_v57, %v5507_v5  ;;  %v5800_v45 = vsel %vm5785_vm4, %v5783_v37, %v5504_v19  ;;  %v4984_v19 = vld [vmem:[%s11414_s4 + $0x68] sm:$0xff]  ;;  %v4985_v37 = vld [vmem:[%s11414_s4 + $0x70] sm:$0xff] }
 0x87e   : > { %v5588_v20 = vpop.xlane.xlu1 %5587  ;;  %v5585_v14 = vpop.xlane.xlu0 %5584 }
 0x87f   : > { %v5818_v49 = vsel %vm5802_vm5, %v5801_v40, %v5588_v20  ;;  %v5817_v27 = vsel %vm5802_vm5, %v5800_v45, %v5585_v14  ;;  %v4983_v20 = vld [vmem:[%s11414_s4 + $0x60] sm:$0xff] }
 0x882   : > { %v5669_v26 = vpop.xlane.xlu1 %5668  ;;  %v5666_v59 = vpop.xlane.xlu0 %5665 }
 0x883   : > { %v5835_v7 = vsel %vm5819_vm6, %v5818_v49, %v5669_v26  ;;  %v5834_v22 = vsel %vm5819_vm6, %v5817_v27, %v5666_v59  ;;  %v4986_v59 = vld [vmem:[%s11414_s4 + $0x78] sm:$0xff] }
 0x886   : > { %v5750_v38 = vpop.xlane.xlu1 %5749  ;;  %v5747_v8 = vpop.xlane.xlu0 %5746 }
 0x887   : > { %v5852_v32 = vsel %vm5836_vm7, %v5835_v7, %v5750_v38  ;;  %v5851_v23 = vsel %vm5836_vm7, %v5834_v22, %v5747_v8  ;;  %v6669_v22 = vld [vmem:[#allocation19] ss:$0 sm:$0xff] }
 0x888   : > { %v7858_v16 = vpack.c.bf16 %v5852_v32, %v5851_v23 }
 0x88a   : > { %v4995_v12 = vpop.permute.xlu1 %4994  ;;  %7859 = vmatpush3.bf16.msra.mxu0 %v7858_v16  ;;  %v6570_v16 = vld [vmem:[#allocation16] ss:$0 sm:$0xff] }
 0x88b   : > { %v5068_v58 = vmul.f32 %v4995_v12, %v4972_v39 }
 0x88d   : > { %7774 = vmatmul.mubr.f32.vlgmr.msra.gmra.mrb[16].mxu0 %v11104_v62 }
 0x88e   : > { %v5000_v17 = vpop.permute.xlu1 %4999  ;;  %v4990_v30 = vpop.permute.xlu0 %4989 }
 0x88f   : > { %v5067_v18 = vmul.f32 %v4990_v30, %v4971_v9  ;;  %v5069_v6 = vmul.f32 %v5000_v17, %v4973_v15  ;;  %v6571_v17 = vld [vmem:[#allocation17] ss:$0 sm:$0xff] }
 0x891   : > { %v7813_v43 = vpack.c.bf16 %v5068_v58, %v5067_v18 }
 0x892   : > { %v5005_v13 = vpop.permute.xlu1 %5004  ;;  %v5035_v31 = vpop.permute.xlu0 %5034 }
 0x893   : > { %v5070_v1 = vmul.f32 %v5005_v13, %v4974_v42  ;;  %7814 = vmatpush3.bf16.msra.mxu1 %v7813_v43  ;;  %v5076_v47 = vmul.f32 %v5035_v31, %v4980_v55  ;;  %v6572_v13 = vld [vmem:[#allocation4] ss:$0 sm:$0xff] }
 0x894   : > { %7815 = vmatprep.subr.bf16.mxu1 %v8815_v48 }
 0x895   : > { %v7816_v63 = vpack.c.bf16 %v5070_v1, %v5069_v6 }
 0x896   : > { %v5010_v41 = vpop.permute.xlu1 %5009  ;;  %v5045_v4 = vpop.permute.xlu0 %5044 }
 0x897   : > { %7817 = vmatpush3.bf16.msra.mxu1 %v7816_v63  ;;  %v5071_v36 = vmul.f32 %v5010_v41, %v4975_v44  ;;  %v5078_v33 = vmul.f32 %v5045_v4, %v4982_v53 }
 0x898   : > { %7818 = vmatprep.subr.bf16.mxu1 %v8815_v48 }
 0x89a   : > { %v5015_v51 = vpop.permute.xlu1 %5014  ;;  %v5055_v52 = vpop.permute.xlu0 %5054 }
 0x89b   : > { %v5072_v50 = vmul.f32 %v5015_v51, %v4976_v3  ;;  %v5080_v34 = vmul.f32 %v5055_v52, %v4984_v19 }
 0x89d   : > { %v7819_v25 = vpack.c.bf16 %v5072_v50, %v5071_v36 }
 0x89e   : > { %v5020_v21 = vpop.permute.xlu1 %5019  ;;  %v5065_v57 = vpop.permute.xlu0 %5064 }
 0x89f   : > { %7820 = vmatpush3.bf16.msra.mxu1 %v7819_v25  ;;  %v5073_v35 = vmul.f32 %v5020_v21, %v4977_v29  ;;  %v5082_v49 = vmul.f32 %v5065_v57, %v4986_v59 }
 0x8a0   : > { %7821 = vmatprep.subr.bf16.mxu1 %v8815_v48 }
 0x8a2   : > { %v5025_v0 = vpop.permute.xlu1 %5024 }
 0x8a3   : > { %v5074_v28 = vmul.f32 %v5025_v0, %v4978_v56 }
 0x8a5   : > { %v7822_v11 = vpack.c.bf16 %v5074_v28, %v5073_v35 }
 0x8a6   : > { %v5030_v46 = vpop.permute.xlu1 %5029 }
 0x8a7   : > { %v5075_v2 = vmul.f32 %v5030_v46, %v4979_v24  ;;  %7823 = vmatpush3.bf16.msra.mxu1 %v7822_v11 }
 0x8a8   : > { %7824 = vmatprep.subr.bf16.mxu1 %v8815_v48 }
 0x8a9   : > { %v7825_v61 = vpack.c.bf16 %v5076_v47, %v5075_v2 }
 0x8aa   : > { %v5040_v54 = vpop.permute.xlu1 %5039 }
 0x8ab   : > { %v5077_v5 = vmul.f32 %v5040_v54, %v4981_v60  ;;  %7826 = vmatpush3.bf16.msra.mxu1 %v7825_v61 }
 0x8ac   : > { %7827 = vmatprep.subr.bf16.mxu1 %v8815_v48 }
 0x8ad   : > { %v7828_v14 = vpack.c.bf16 %v5078_v33, %v5077_v5 }
 0x8ae   : > { %v5050_v10 = vpop.permute.xlu1 %5049 }
 0x8af   : > { %v5079_v26 = vmul.f32 %v5050_v10, %v4983_v20  ;;  %7829 = vmatpush3.bf16.msra.mxu1 %v7828_v14 }
 0x8b0   : > { %7830 = vmatprep.subr.bf16.mxu1 %v8815_v48 }
 0x8b1   : > { %v7831_v40 = vpack.c.bf16 %v5080_v34, %v5079_v26 }
 0x8b2   : > { %v5060_v45 = vpop.permute.xlu1 %5059 }
 0x8b3   : > { %v5081_v27 = vmul.f32 %v5060_v45, %v4985_v37  ;;  %7832 = vmatpush3.bf16.msra.mxu1 %v7831_v40 }
 0x8b4   : > { %7833 = vmatprep.subr.bf16.mxu1 %v8815_v48 }
 0x8b5   : > { %v7834_v7 = vpack.c.bf16 %v5082_v49, %v5081_v27 }
 0x8b7   : > { %7835 = vmatpush3.bf16.msra.mxu1 %v7834_v7 }
 0x8ba   : > { %7739 = vmatmul.mubr.f32.vlgmr.msra.gmra.mrb[0].mxu1 %v11104_v62 }
 0x960   : > { %v5926_v38 = vpop.f32.mrb[16].mxu0 }
 0x961   : > { %v5927_v8 = vadd.f32 %v6669_v22, %v5926_v38  ;;  %v7775_v32 = vpop.f32.mrb[17].mxu0 }
 0x963   : > { %v5931_v23 = vsel %vm5930_vm9, %v5927_v8, -inf }
 0x964   : > { %5932 = vmax.xlane.f32.xlu1 %v5931_v23 }
 0x98d   : > { %v5156_v12 = vpop.f32.mrb[0].mxu1 }
 0x98e   : > { %v5157_v39 = vadd.f32 %v6570_v16, %v5156_v12  ;;  %v7740_v9 = vpop.f32.mrb[1].mxu1 }
 0x990   : > { %v5160_v30 = vmax.f32 %v5157_v39, 0.0 }
 0x992   : > { %v5168_v48 = vmul.f32 %v6571_v17, %v5160_v30 }
 0x994   : > { %v5170_v58 = vsel %vm5169_vm10, %v5168_v48, 0.0 }
 0x995   : > { %5171 = vadd.xlane.f32.xlu0 %v5170_v58 }
 0x9f1   : > { %v5933_v18 = vpop.xlane.xlu1 %5932 }
 0x9f2   : > { %v5934_v62 = vsub.f32 %v5927_v8, %v5933_v18 }
 0x9f4   : > { %v5935_v15 = vmul.f32 1.442695, %v5934_v62 }
 0x9f6   : > { %8424 = vpow2.f32 %v5935_v15 }
 0xa00   : > { %v8425_v42 = vpop.eup %8424 }
 0xa01   : > { %v5937_v43 = vsel %vm5930_vm9, %v8425_v42, 0.0 }
 0xa02   : > { %5938 = vadd.xlane.f32.xlu0 %v5937_v43 }
 0xa22   : > { %v5172_v6 = vpop.xlane.xlu0 %5171 }
 0xa23   : > { %v5180_v1 = vadd.f32 %v6572_v13, %v5172_v6 }
 0xa25   : > { %8426 = vtanh.f32 %v5180_v1 }
 0xa2f   : > { %v8427_v63 = vpop.eup %8426 }
 0xa30   : > { %5183 = vst.msk [vmem:[%s11415_s2] sm:$0x3] %vm5182_vm11, %v8427_v63 }
 0xa8f   : > { %v5939_v41 = vpop.xlane.xlu0 %5938 }
 0xa90   : > { %8428 = vrcp.f32 %v5939_v41 }
 0xa9a   : > { %v8429_v44 = vpop.eup %8428 }
 0xa9b   : > { %v5941_v3 = vmul.f32 %v8429_v44, %v8425_v42 }
 0xa9d   : > { %5942 = vst.msk [vmem:[#allocation22] sm:$0x3] %vm5930_vm9, %v5941_v3 }
 0xa9e PF: > { %p8210_p13 = scmp.eq.s32.totalorder %s8929_s28, 18  ;;  %s8819_s30 = smov [#allocation22]  }
 0xa9f   : > { %s5950_s23 = sshll.u32 %s8819_s30, 4  ;;  %s5951_s23 = int_to_ptr.vmem [resolvable:$true] %s5950_s23 }
 0xaa0   : > { %s8714_s19 = scalar_lea.vmem %s5951_s23, 32  ;;  %p8721_p5 = scmp.lt.s32.totalorder %s5951_s23, %s5951_s23 }
 0xaa1   : > { %p8715_p10 = scmp.ne.s32.totalorder %s5951_s23, %s8714_s19  ;;  %p8722_p2 = scmp.lt.s32.totalorder %s8714_s19, %s8714_s19 }
 0xaa3   : > { %p8716_p12 = pnand %p8715_p10, %p8210_p13  ;;  %p8723_p9 = por %p8722_p2, %p8721_p5 }
 0xaa5   : > { %p8717_p0 = pneg %p8716_p12 }
 0xaa7   : > { %p8724_p3 = pnand %p8723_p9, %p8717_p0 }
 0xaa9   : > { %8727 = shalt.err (!%p8724_p3)
}
 0xaaa   : > { %s11416_s17 = sld [smem:[#allocation65_spill]] }
 0xab0   : > { %s8728_s15 = scalar_lea.hbm %s11416_s17, 32 }
 0xab1   : > { %p8729_p1 = scmp.ne.s32.totalorder %s11416_s17, %s8728_s15  ;;  %p8734_p7 = scmp.lt.u32.totalorder %s8728_s15, %s11416_s17 }
 0xab3   : > { %p8730_p8 = pnand %p8729_p1, %p8210_p13 }
 0xab5   : > { %p8731_p11 = pneg %p8730_p8 }
 0xab7   : > { %p8736_p4 = pnand %p8734_p7, %p8731_p11 }
 0xab9   : > { %8739 = shalt.err (!%p8736_p4)
}
 0xaba   : > { %8158 = dma.vmem_to_hbm [thread:$0]  (%p8210_p13), %s5951_s23, 32, %s11416_s17, [#allocation7]  }
 0xabb   : > { %8781 = dma.done.wait (%p8210_p13), [#allocation7], 32  }
 0xabc   : > { %8783 = vsyncadd (%p8210_p13), [#allocation7], 4294967264 }
 0xabd PF: > { %s11417_s26 = sld [smem:[#allocation30_spill]]  ;;  %s11418_s20 = sld [smem:[#allocation31_spill]] }
 0xabe   : > { %s11419_s23 = smov %s8790_s24  ;;  %s11420_s24 = smov %s8794_s25 }
 0xac3   : > { %p35_p6 = scmp.ge.s32.totalorder %s11417_s26, 21   ;;  %s11421_s25 = smov %s11418_s20 }
 0xac5   :  { %37 = sbr.rel (!%p35_p6) target bundleno = 20 (0x14), region = 200 }
 0xacc   :  { %5969 = vsyncpa [#allocation6], 1 }
 0xacd   :  { %5971 = vsyncpa [#allocation6 + $0x1], 1 }
 0xace   :  { %5972 = vsyncpa [#allocation9], 1 }
 0xacf   :  { %5973 = vsyncpa [#allocation12], 1 }
 0xad0   :  { %5975 = vsyncpa [#allocation12 + $0x1], 1 }
 0xad1   :  { %5976 = vsyncpa [#allocation15], 1 }
 0xad2   :  { %5977 = vsyncpa [#allocation18], 1 }
 0xad3   :  { %5978 = vsyncpa [#allocation21], 1 }
 0xad4   :  { %5979 = vsyncpa [#allocation7], 1 }
 0xad5   :  { %5981 = vsyncpa [#allocation7 + $0x1], 1 }

</bundles_post_ra>
